<compile_context>
chip_gen: v7x
topology: tpu7x:2x2x1
jax: 0.10.0
libtpu: 0.0.40
codegen_flags: <defaults>
</compile_context>

<pallas_src>
import functools

import jax
import jax.numpy as jnp
from jax.experimental import pallas as pl
from jax.experimental.pallas import tpu as pltpu  # noqa: F401  (TPU backend)

HYDRA_NAMES = ("im", "NC", "DAC", "TTC", "C", "EP")
HYDRA_SLAB = 128               # lane-dense output width for the 6 hydra scores
MATMUL_DTYPE = jnp.bfloat16    # matmul operand dtype; accum + epilogues stay f32


# ----------------------------------------------------------------------------
# Fused Pallas kernel
# ----------------------------------------------------------------------------
def _mm(x, w, b):
    """bf16-operand matmul with f32 accumulation, + f32 bias."""
    return jnp.dot(x.astype(w.dtype), w, preferred_element_type=jnp.float32) + b


def _layernorm(x, g, b):
    """One-pass LayerNorm over the last axis (eps = 1e-5), f32.

    sum(x) and sum(x*x) are independent -> the two XLU cross-lane reductions
    can dual-issue instead of being strictly serial.
    """
    inv_n = 1.0 / x.shape[-1]
    s1 = jnp.sum(x, axis=-1, keepdims=True)
    s2 = jnp.sum(x * x, axis=-1, keepdims=True)
    mu = s1 * inv_n
    var = jnp.maximum(s2 * inv_n - mu * mu, 0.0)   # guard tiny cancellation
    return (x - mu) * jax.lax.rsqrt(var + 1e-5) * g + b


def _decoder_kernel(*refs, num_layers, latent_dim, num_clusters):
    (env_ref,
     envp_w, envp_b,
     qp1_w, qp1_b, qp2_w, qp2_b,
     sa_w, sa_b,                       # composed Wv@Wo per layer  [L, D, D]
     ca_w, ca_b,                       # composed + concatenated   [D, L*D]
     ff1_w, ff1_b, ff2_w, ff2_b,
     ln1_g, ln1_b, ln2_g, ln2_b, ln3_g, ln3_b,
     hh_w, hh_b,                       # fused head + hydra l1     [D, C+6D]
     hyd2_v, hyd2_b,                   # dense hyd2 vector [1,6D], slab bias [1,128]
     feat_out, logits_out, probs_out, scores_out) = refs

    D = latent_dim
    C = num_clusters
    NH = len(HYDRA_NAMES)

    # env_proj: [B, 512] -> [B, D]
    env_emb = _mm(env_ref[...], envp_w[...], envp_b[...])
    env_bf = env_emb.astype(MATMUL_DTYPE)          # hoisted cast (qp1 + ca reuse)

    # generate_queries (k = 1): query_proj MLP on env_emb
    h = jnp.maximum(_mm(env_bf, qp1_w[...], qp1_b[...]), 0.0)
    x = _mm(h, qp2_w[...], qp2_b[...])

    # ALL layers' cross-attention outputs at once (independent of x): [B, L*D]
    ca_all = _mm(env_bf, ca_w[...], ca_b[...])

    for l in range(num_layers):   # static unroll (L is small)
        # self-attention block: composed out_proj(v_proj(x)) == one matmul
        sa = _mm(x, sa_w[l], sa_b[l])
        x = _layernorm(x + sa, ln1_g[l], ln1_b[l])
        # cross-attention block: precomputed, just residual + LN
        x = _layernorm(x + ca_all[:, l * D:(l + 1) * D], ln2_g[l], ln2_b[l])
        # feed-forward block (relu)
        ff = _mm(jnp.maximum(_mm(x, ff1_w[l], ff1_b[l]), 0.0), ff2_w[l], ff2_b[l])
        x = _layernorm(x + ff, ln3_g[l], ln3_b[l])

    feat_out[...] = x                              # decoded_features

    # fused trajectory head + hydra l1: one [B, D] x [D, C+6D] matmul
    hh = _mm(x, hh_w[...], hh_b[...])              # [B, C + 6D]

    # trajectory head + exact-softmax epilogue (f32)
    logits = hh[:, :C]
    logits_out[...] = logits
    m = jnp.max(logits, axis=-1, keepdims=True)
    e = jnp.exp(logits - m)
    probs_out[...] = e / jnp.sum(e, axis=-1, keepdims=True)

    # hydra l2: dense vector multiply (VPU) + per-block lane reduce (XLU),
    # scattered into a lane-dense [B, 128] slab (lanes >= 6 hold sigmoid(0),
    # sliced off outside the kernel).
    h1 = jnp.maximum(hh[:, C:], 0.0)               # [B, 6D]
    p = h1 * hyd2_v[...]                           # [B, 6D], f32 VPU
    lane = jax.lax.broadcasted_iota(jnp.int32, (1, HYDRA_SLAB), 1)
    acc = jnp.zeros((p.shape[0], HYDRA_SLAB), jnp.float32)
    for i in range(NH):
        s_i = jnp.sum(p[:, i * D:(i + 1) * D], axis=-1, keepdims=True)  # [B, 1]
        acc = acc + jnp.where(lane == i, s_i, 0.0)
    s_slab = acc + hyd2_b[...]
    scores_out[...] = jnp.clip(jax.nn.sigmoid(s_slab), 0.01, 0.99)


def _fused_decoder(env_tokens, p):
    B = env_tokens.shape[0]
    L, _, D = p["sa_w"].shape
    C = p["hh_w"].shape[1] - len(HYDRA_NAMES) * D
    kernel = functools.partial(_decoder_kernel, num_layers=L,
                               latent_dim=D, num_clusters=C)
    # No grid: every operand is a full-array VMEM block (total ~1.5 MB).
    return pl.pallas_call(
        kernel,
        out_shape=(
            jax.ShapeDtypeStruct((B, D), jnp.float32),           # decoded_features
            jax.ShapeDtypeStruct((B, C), jnp.float32),           # logits
            jax.ShapeDtypeStruct((B, C), jnp.float32),           # probs
            jax.ShapeDtypeStruct((B, HYDRA_SLAB), jnp.float32),  # hydra score slab
        ),
    )(
        env_tokens,
        p["envp_w"], p["envp_b"],
        p["qp1_w"], p["qp1_b"], p["qp2_w"], p["qp2_b"],
        p["sa_w"], p["sa_b"],
        p["ca_w"], p["ca_b"],
        p["ff1_w"], p["ff1_b"], p["ff2_w"], p["ff2_b"],
        p["ln1_g"], p["ln1_b"], p["ln2_g"], p["ln2_b"], p["ln3_g"], p["ln3_b"],
        p["hh_w"], p["hh_b"],
        p["hyd2_v"], p["hyd2_b"],
    )


# ----------------------------------------------------------------------------
# Jitted forward pass (kernel + top-k / gather glue in one XLA graph)
# ----------------------------------------------------------------------------
@jax.jit
def trajectory_decoder_forward(env_tokens, params):
    feat, logits, probs, score_slab = _fused_decoder(env_tokens, params)

    k_values = 5
    _, topk_indices = jax.lax.top_k(logits, k_values)
    best_idx = topk_indices[:, 0]                 # no redundant argmax pass

    vocab = params["vocabulary"]
    best_trajectories = vocab[best_idx]           # [B, T, 3]
    topk_all = vocab[topk_indices]                # [B, k, T, 3] single gather
    topk_trajectories = [topk_all[:, i] for i in range(k_values)]

    metric_scores = {name: score_slab[:, i] for i, name in enumerate(HYDRA_NAMES)}

    return {
        "logits": logits,
        "probs": probs,
        "best_idx": best_idx,
        "best_trajectories": best_trajectories,
        "topk_indices": topk_indices,
        "topk_trajectories": topk_trajectories,
        "decoded_features": feat,
        "metric_scores": metric_scores,
    }


# ----------------------------------------------------------------------------
# Parameter construction (deterministic, synthetic), in the fused layout
# ----------------------------------------------------------------------------
def init_params(key, cfg):
    D = cfg["latent_dim"]
    C = cfg["num_clusters"]
    L = cfg["transformer_layers"]
    T = cfg["total_timesteps"]
    NH = len(HYDRA_NAMES)

    keys = iter(jax.random.split(key, 128))

    def dense(din, dout, scale=0.02):
        kw, kb = jax.random.split(next(keys))
        w = scale * jax.random.normal(kw, (din, dout), jnp.float32)
        b = scale * jax.random.normal(kb, (1, dout), jnp.float32)
        return w, b

    def cast(w):
        return w.astype(MATMUL_DTYPE)

    def compose(v, o):
        """(x@Wv+bv)@Wo+bo  ==  x@(Wv@Wo) + (bv@Wo + bo)   (f32 compose)."""
        (wv, bv), (wo, bo) = v, o
        return wv @ wo, bv @ wo + bo

    p = {}
    w, b = dense(512, D);    p["envp_w"], p["envp_b"] = cast(w), b
    w, b = dense(D, 2 * D);  p["qp1_w"], p["qp1_b"] = cast(w), b
    w, b = dense(2 * D, D);  p["qp2_w"], p["qp2_b"] = cast(w), b

    sa_v = [dense(D, D) for _ in range(L)]
    sa_o = [dense(D, D) for _ in range(L)]
    ca_v = [dense(D, D) for _ in range(L)]
    ca_o = [dense(D, D) for _ in range(L)]
    ff1 = [dense(D, 4 * D) for _ in range(L)]
    ff2 = [dense(4 * D, D) for _ in range(L)]

    # composed self-attention weights, stacked per layer
    sa = [compose(sa_v[l], sa_o[l]) for l in range(L)]
    p["sa_w"] = cast(jnp.stack([w for w, _ in sa]))                 # [L, D, D]
    p["sa_b"] = jnp.stack([b for _, b in sa])                       # [L, 1, D]
    # composed cross-attention weights, concatenated along output axis
    ca = [compose(ca_v[l], ca_o[l]) for l in range(L)]
    p["ca_w"] = cast(jnp.concatenate([w for w, _ in ca], axis=1))   # [D, L*D]
    p["ca_b"] = jnp.concatenate([b for _, b in ca], axis=1)         # [1, L*D]

    stack_w = lambda ds: cast(jnp.stack([w for w, _ in ds]))
    stack_b = lambda ds: jnp.stack([b for _, b in ds])
    p["ff1_w"], p["ff1_b"] = stack_w(ff1), stack_b(ff1)
    p["ff2_w"], p["ff2_b"] = stack_w(ff2), stack_b(ff2)

    ones = jnp.ones((L, 1, D), jnp.float32)
    zeros = jnp.zeros((L, 1, D), jnp.float32)
    p["ln1_g"], p["ln1_b"] = ones, zeros
    p["ln2_g"], p["ln2_b"] = ones, zeros
    p["ln3_g"], p["ln3_b"] = ones, zeros

    # fused trajectory head + hydra l1:  [D, C + 6D]
    head_w, head_b = dense(D, C)
    hyd1 = [dense(D, D) for _ in HYDRA_NAMES]
    hyd1_w = jnp.concatenate([w for w, _ in hyd1], axis=1)          # [D, 6D]
    hyd1_b = jnp.concatenate([b for _, b in hyd1], axis=1)          # [1, 6D]
    p["hh_w"] = cast(jnp.concatenate([head_w, hyd1_w], axis=1))     # [D, C+6D]
    p["hh_b"] = jnp.concatenate([head_b, hyd1_b], axis=1)           # [1, C+6D]

    # hydra l2: dense [1, 6D] vector + lane-dense slab bias (no zero-padded matmul)
    hyd2 = [dense(D, 1) for _ in HYDRA_NAMES]
    p["hyd2_v"] = jnp.concatenate([w[:, 0] for w, _ in hyd2]).reshape(1, NH * D)
    b_slab = jnp.zeros((1, HYDRA_SLAB), jnp.float32)
    for i, (_, b_i) in enumerate(hyd2):
        b_slab = b_slab.at[0, i].set(b_i[0, 0])
    p["hyd2_b"] = b_slab

    # vocabulary buffer: [num_clusters, total_timesteps, 3]
    # (default buffer is zeros; filled as after `set_vocabulary` so gathers matter)
    p["vocabulary"] = jax.random.normal(next(keys), (C, T, 3), jnp.float32)
    return p


# ----------------------------------------------------------------------------
if __name__ == "__main__":
    cfg = {
        "num_clusters": 512,
        "latent_dim": 128,
        "transformer_layers": 2,
        "transformer_heads": 4,   # heads are irrelevant for length-1 attention
        "total_timesteps": 8,
    }
    batch = 8

    key = jax.random.PRNGKey(0)
    k_par, k_in = jax.random.split(key)
    params = init_params(k_par, cfg)
    env_tokens = jax.random.normal(k_in, (batch, 512), jnp.float32)

    out = trajectory_decoder_forward(env_tokens, params)
    jax.block_until_ready(out)

    # shape sanity checks
    assert out["logits"].shape == (batch, cfg["num_clusters"])
    assert out["probs"].shape == (batch, cfg["num_clusters"])
    assert out["decoded_features"].shape == (batch, cfg["latent_dim"])
    assert out["best_trajectories"].shape == (batch, cfg["total_timesteps"], 3)
    assert out["topk_indices"].shape == (batch, 5)
    assert len(out["topk_trajectories"]) == 5
    assert all(v.shape == (batch,) for v in out["metric_scores"].values())
    # probs is a valid softmax (exact division now)
    assert jnp.allclose(jnp.sum(out["probs"], axis=-1), 1.0, atol=1e-3)
    # best_idx consistent with logits
    assert jnp.array_equal(out["best_idx"], jnp.argmax(out["logits"], axis=1))
    # hydra scores respect the clamp
    for v in out["metric_scores"].values():
        assert jnp.all((v >= 0.01) & (v <= 0.99))

    print("KERNEL_OK")
</pallas_src>

<mosaic_0001>
module attributes {stable_mosaic.version = 11 : i64} {
  func.func @_decoder_kernel(%arg0: memref<8x512xf32, #tpu.memory_space<vmem>>, %arg1: memref<512x128xbf16, #tpu.memory_space<vmem>>, %arg2: memref<1x128xf32, #tpu.memory_space<vmem>>, %arg3: memref<128x256xbf16, #tpu.memory_space<vmem>>, %arg4: memref<1x256xf32, #tpu.memory_space<vmem>>, %arg5: memref<256x128xbf16, #tpu.memory_space<vmem>>, %arg6: memref<1x128xf32, #tpu.memory_space<vmem>>, %arg7: memref<2x128x128xbf16, #tpu.memory_space<vmem>>, %arg8: memref<2x1x128xf32, #tpu.memory_space<vmem>>, %arg9: memref<128x256xbf16, #tpu.memory_space<vmem>>, %arg10: memref<1x256xf32, #tpu.memory_space<vmem>>, %arg11: memref<2x128x512xbf16, #tpu.memory_space<vmem>>, %arg12: memref<2x1x512xf32, #tpu.memory_space<vmem>>, %arg13: memref<2x512x128xbf16, #tpu.memory_space<vmem>>, %arg14: memref<2x1x128xf32, #tpu.memory_space<vmem>>, %arg15: memref<2x1x128xf32, #tpu.memory_space<vmem>>, %arg16: memref<2x1x128xf32, #tpu.memory_space<vmem>>, %arg17: memref<2x1x128xf32, #tpu.memory_space<vmem>>, %arg18: memref<2x1x128xf32, #tpu.memory_space<vmem>>, %arg19: memref<2x1x128xf32, #tpu.memory_space<vmem>>, %arg20: memref<2x1x128xf32, #tpu.memory_space<vmem>>, %arg21: memref<128x1280xbf16, #tpu.memory_space<vmem>>, %arg22: memref<1x1280xf32, #tpu.memory_space<vmem>>, %arg23: memref<1x768xf32, #tpu.memory_space<vmem>>, %arg24: memref<1x128xf32, #tpu.memory_space<vmem>>, %arg25: memref<8x128xf32, #tpu.memory_space<vmem>>, %arg26: memref<8x512xf32, #tpu.memory_space<vmem>>, %arg27: memref<8x512xf32, #tpu.memory_space<vmem>>, %arg28: memref<8x128xf32, #tpu.memory_space<vmem>>) attributes {dimension_semantics = [], scalar_prefetch = 0 : i64, scratch_operands = 0 : i64, tpu.core_type = #tpu.core_type<tc>} {
    %c0 = arith.constant 0 : index
    %c0_0 = arith.constant 0 : index
    %0 = vector.load %arg0[%c0, %c0_0] : memref<8x512xf32, #tpu.memory_space<vmem>>, vector<8x512xf32>
    %c0_1 = arith.constant 0 : index
    %c0_2 = arith.constant 0 : index
    %1 = vector.load %arg1[%c0_1, %c0_2] : memref<512x128xbf16, #tpu.memory_space<vmem>>, vector<512x128xbf16>
    %c0_3 = arith.constant 0 : index
    %c0_4 = arith.constant 0 : index
    %2 = vector.load %arg2[%c0_3, %c0_4] : memref<1x128xf32, #tpu.memory_space<vmem>>, vector<1x128xf32>
    %3 = arith.truncf %0 : vector<8x512xf32> to vector<8x512xbf16>
    %cst = arith.constant dense<0.000000e+00> : vector<8x128xf32>
    %4 = tpu.matmul %3, %1, %cst {dimension_numbers = #tpu.dot_dimension_numbers<[1], [0], [0], [1], [0, 0, 1, 1], [], []>} : vector<8x512xbf16>, vector<512x128xbf16>, vector<8x128xf32> -> vector<8x128xf32>
    %5 = vector.broadcast %2 : vector<1x128xf32> to vector<8x128xf32>
    %6 = arith.addf %4, %5 : vector<8x128xf32>
    %7 = arith.truncf %6 : vector<8x128xf32> to vector<8x128xbf16>
    %c0_5 = arith.constant 0 : index
    %c0_6 = arith.constant 0 : index
    %8 = vector.load %arg3[%c0_5, %c0_6] : memref<128x256xbf16, #tpu.memory_space<vmem>>, vector<128x256xbf16>
    %c0_7 = arith.constant 0 : index
    %c0_8 = arith.constant 0 : index
    %9 = vector.load %arg4[%c0_7, %c0_8] : memref<1x256xf32, #tpu.memory_space<vmem>>, vector<1x256xf32>
    %cst_9 = arith.constant dense<0.000000e+00> : vector<8x256xf32>
    %10 = tpu.matmul %7, %8, %cst_9 {dimension_numbers = #tpu.dot_dimension_numbers<[1], [0], [0], [1], [0, 0, 1, 1], [], []>} : vector<8x128xbf16>, vector<128x256xbf16>, vector<8x256xf32> -> vector<8x256xf32>
    %11 = vector.broadcast %9 : vector<1x256xf32> to vector<8x256xf32>
    %12 = arith.addf %10, %11 : vector<8x256xf32>
    %cst_10 = arith.constant 0.000000e+00 : f32
    %13 = vector.broadcast %cst_10 : f32 to vector<8x256xf32>
    %14 = arith.maximumf %12, %13 : vector<8x256xf32>
    %c0_11 = arith.constant 0 : index
    %c0_12 = arith.constant 0 : index
    %15 = vector.load %arg5[%c0_11, %c0_12] : memref<256x128xbf16, #tpu.memory_space<vmem>>, vector<256x128xbf16>
    %c0_13 = arith.constant 0 : index
    %c0_14 = arith.constant 0 : index
    %16 = vector.load %arg6[%c0_13, %c0_14] : memref<1x128xf32, #tpu.memory_space<vmem>>, vector<1x128xf32>
    %17 = arith.truncf %14 : vector<8x256xf32> to vector<8x256xbf16>
    %cst_15 = arith.constant dense<0.000000e+00> : vector<8x128xf32>
    %18 = tpu.matmul %17, %15, %cst_15 {dimension_numbers = #tpu.dot_dimension_numbers<[1], [0], [0], [1], [0, 0, 1, 1], [], []>} : vector<8x256xbf16>, vector<256x128xbf16>, vector<8x128xf32> -> vector<8x128xf32>
    %19 = vector.broadcast %16 : vector<1x128xf32> to vector<8x128xf32>
    %20 = arith.addf %18, %19 : vector<8x128xf32>
    %c0_16 = arith.constant 0 : index
    %c0_17 = arith.constant 0 : index
    %21 = vector.load %arg9[%c0_16, %c0_17] : memref<128x256xbf16, #tpu.memory_space<vmem>>, vector<128x256xbf16>
    %c0_18 = arith.constant 0 : index
    %c0_19 = arith.constant 0 : index
    %22 = vector.load %arg10[%c0_18, %c0_19] : memref<1x256xf32, #tpu.memory_space<vmem>>, vector<1x256xf32>
    %cst_20 = arith.constant dense<0.000000e+00> : vector<8x256xf32>
    %23 = tpu.matmul %7, %21, %cst_20 {dimension_numbers = #tpu.dot_dimension_numbers<[1], [0], [0], [1], [0, 0, 1, 1], [], []>} : vector<8x128xbf16>, vector<128x256xbf16>, vector<8x256xf32> -> vector<8x256xf32>
    %24 = vector.broadcast %22 : vector<1x256xf32> to vector<8x256xf32>
    %25 = arith.addf %23, %24 : vector<8x256xf32>
    %c0_21 = arith.constant 0 : index
    %c0_22 = arith.constant 0 : index
    %c0_23 = arith.constant 0 : index
    %26 = vector.load %arg7[%c0_21, %c0_22, %c0_23] : memref<2x128x128xbf16, #tpu.memory_space<vmem>>, vector<1x128x128xbf16>
    %27 = vector.shape_cast %26 : vector<1x128x128xbf16> to vector<128x128xbf16>
    %c0_24 = arith.constant 0 : index
    %c0_25 = arith.constant 0 : index
    %c0_26 = arith.constant 0 : index
    %28 = vector.load %arg8[%c0_24, %c0_25, %c0_26] : memref<2x1x128xf32, #tpu.memory_space<vmem>>, vector<1x1x128xf32>
    %29 = vector.shape_cast %28 : vector<1x1x128xf32> to vector<1x128xf32>
    %30 = arith.truncf %20 : vector<8x128xf32> to vector<8x128xbf16>
    %cst_27 = arith.constant dense<0.000000e+00> : vector<8x128xf32>
    %31 = tpu.matmul %30, %27, %cst_27 {dimension_numbers = #tpu.dot_dimension_numbers<[1], [0], [0], [1], [0, 0, 1, 1], [], []>} : vector<8x128xbf16>, vector<128x128xbf16>, vector<8x128xf32> -> vector<8x128xf32>
    %32 = vector.broadcast %29 : vector<1x128xf32> to vector<8x128xf32>
    %33 = arith.addf %31, %32 : vector<8x128xf32>
    %34 = arith.addf %20, %33 : vector<8x128xf32>
    %c0_28 = arith.constant 0 : index
    %c0_29 = arith.constant 0 : index
    %c0_30 = arith.constant 0 : index
    %35 = vector.load %arg15[%c0_28, %c0_29, %c0_30] : memref<2x1x128xf32, #tpu.memory_space<vmem>>, vector<1x1x128xf32>
    %36 = vector.shape_cast %35 : vector<1x1x128xf32> to vector<1x128xf32>
    %c0_31 = arith.constant 0 : index
    %c0_32 = arith.constant 0 : index
    %c0_33 = arith.constant 0 : index
    %37 = vector.load %arg16[%c0_31, %c0_32, %c0_33] : memref<2x1x128xf32, #tpu.memory_space<vmem>>, vector<1x1x128xf32>
    %38 = vector.shape_cast %37 : vector<1x1x128xf32> to vector<1x128xf32>
    %cst_34 = arith.constant dense<0.000000e+00> : vector<8xf32>
    %39 = vector.multi_reduction <add>, %34, %cst_34 [1] : vector<8x128xf32> to vector<8xf32>
    %40 = vector.shape_cast %39 : vector<8xf32> to vector<8x1xf32>
    %41 = arith.mulf %34, %34 : vector<8x128xf32>
    %cst_35 = arith.constant dense<0.000000e+00> : vector<8xf32>
    %42 = vector.multi_reduction <add>, %41, %cst_35 [1] : vector<8x128xf32> to vector<8xf32>
    %43 = vector.shape_cast %42 : vector<8xf32> to vector<8x1xf32>
    %cst_36 = arith.constant 7.812500e-03 : f32
    %44 = vector.broadcast %cst_36 : f32 to vector<8x1xf32>
    %45 = arith.mulf %40, %44 : vector<8x1xf32>
    %cst_37 = arith.constant 7.812500e-03 : f32
    %46 = vector.broadcast %cst_37 : f32 to vector<8x1xf32>
    %47 = arith.mulf %43, %46 : vector<8x1xf32>
    %48 = arith.mulf %45, %45 : vector<8x1xf32>
    %49 = arith.subf %47, %48 : vector<8x1xf32>
    %cst_38 = arith.constant 0.000000e+00 : f32
    %50 = vector.broadcast %cst_38 : f32 to vector<8x1xf32>
    %51 = arith.maximumf %49, %50 : vector<8x1xf32>
    %52 = vector.broadcast %45 : vector<8x1xf32> to vector<8x128xf32>
    %53 = arith.subf %34, %52 : vector<8x128xf32>
    %cst_39 = arith.constant 9.99999974E-6 : f32
    %54 = vector.broadcast %cst_39 : f32 to vector<8x1xf32>
    %55 = arith.addf %51, %54 : vector<8x1xf32>
    %56 = math.rsqrt %55 : vector<8x1xf32>
    %57 = vector.broadcast %56 : vector<8x1xf32> to vector<8x128xf32>
    %58 = arith.mulf %53, %57 : vector<8x128xf32>
    %59 = vector.broadcast %36 : vector<1x128xf32> to vector<8x128xf32>
    %60 = arith.mulf %58, %59 : vector<8x128xf32>
    %61 = vector.broadcast %38 : vector<1x128xf32> to vector<8x128xf32>
    %62 = arith.addf %60, %61 : vector<8x128xf32>
    %63 = vector.extract_strided_slice %25 {offsets = [0, 0], sizes = [8, 128], strides = [1, 1]} : vector<8x256xf32> to vector<8x128xf32>
    %64 = arith.addf %62, %63 : vector<8x128xf32>
    %c0_40 = arith.constant 0 : index
    %c0_41 = arith.constant 0 : index
    %c0_42 = arith.constant 0 : index
    %65 = vector.load %arg17[%c0_40, %c0_41, %c0_42] : memref<2x1x128xf32, #tpu.memory_space<vmem>>, vector<1x1x128xf32>
    %66 = vector.shape_cast %65 : vector<1x1x128xf32> to vector<1x128xf32>
    %c0_43 = arith.constant 0 : index
    %c0_44 = arith.constant 0 : index
    %c0_45 = arith.constant 0 : index
    %67 = vector.load %arg18[%c0_43, %c0_44, %c0_45] : memref<2x1x128xf32, #tpu.memory_space<vmem>>, vector<1x1x128xf32>
    %68 = vector.shape_cast %67 : vector<1x1x128xf32> to vector<1x128xf32>
    %cst_46 = arith.constant dense<0.000000e+00> : vector<8xf32>
    %69 = vector.multi_reduction <add>, %64, %cst_46 [1] : vector<8x128xf32> to vector<8xf32>
    %70 = vector.shape_cast %69 : vector<8xf32> to vector<8x1xf32>
    %71 = arith.mulf %64, %64 : vector<8x128xf32>
    %cst_47 = arith.constant dense<0.000000e+00> : vector<8xf32>
    %72 = vector.multi_reduction <add>, %71, %cst_47 [1] : vector<8x128xf32> to vector<8xf32>
    %73 = vector.shape_cast %72 : vector<8xf32> to vector<8x1xf32>
    %cst_48 = arith.constant 7.812500e-03 : f32
    %74 = vector.broadcast %cst_48 : f32 to vector<8x1xf32>
    %75 = arith.mulf %70, %74 : vector<8x1xf32>
    %cst_49 = arith.constant 7.812500e-03 : f32
    %76 = vector.broadcast %cst_49 : f32 to vector<8x1xf32>
    %77 = arith.mulf %73, %76 : vector<8x1xf32>
    %78 = arith.mulf %75, %75 : vector<8x1xf32>
    %79 = arith.subf %77, %78 : vector<8x1xf32>
    %cst_50 = arith.constant 0.000000e+00 : f32
    %80 = vector.broadcast %cst_50 : f32 to vector<8x1xf32>
    %81 = arith.maximumf %79, %80 : vector<8x1xf32>
    %82 = vector.broadcast %75 : vector<8x1xf32> to vector<8x128xf32>
    %83 = arith.subf %64, %82 : vector<8x128xf32>
    %cst_51 = arith.constant 9.99999974E-6 : f32
    %84 = vector.broadcast %cst_51 : f32 to vector<8x1xf32>
    %85 = arith.addf %81, %84 : vector<8x1xf32>
    %86 = math.rsqrt %85 : vector<8x1xf32>
    %87 = vector.broadcast %86 : vector<8x1xf32> to vector<8x128xf32>
    %88 = arith.mulf %83, %87 : vector<8x128xf32>
    %89 = vector.broadcast %66 : vector<1x128xf32> to vector<8x128xf32>
    %90 = arith.mulf %88, %89 : vector<8x128xf32>
    %91 = vector.broadcast %68 : vector<1x128xf32> to vector<8x128xf32>
    %92 = arith.addf %90, %91 : vector<8x128xf32>
    %c0_52 = arith.constant 0 : index
    %c0_53 = arith.constant 0 : index
    %c0_54 = arith.constant 0 : index
    %93 = vector.load %arg11[%c0_52, %c0_53, %c0_54] : memref<2x128x512xbf16, #tpu.memory_space<vmem>>, vector<1x128x512xbf16>
    %94 = vector.shape_cast %93 : vector<1x128x512xbf16> to vector<128x512xbf16>
    %c0_55 = arith.constant 0 : index
    %c0_56 = arith.constant 0 : index
    %c0_57 = arith.constant 0 : index
    %95 = vector.load %arg12[%c0_55, %c0_56, %c0_57] : memref<2x1x512xf32, #tpu.memory_space<vmem>>, vector<1x1x512xf32>
    %96 = vector.shape_cast %95 : vector<1x1x512xf32> to vector<1x512xf32>
    %97 = arith.truncf %92 : vector<8x128xf32> to vector<8x128xbf16>
    %cst_58 = arith.constant dense<0.000000e+00> : vector<8x512xf32>
    %98 = tpu.matmul %97, %94, %cst_58 {dimension_numbers = #tpu.dot_dimension_numbers<[1], [0], [0], [1], [0, 0, 1, 1], [], []>} : vector<8x128xbf16>, vector<128x512xbf16>, vector<8x512xf32> -> vector<8x512xf32>
    %99 = vector.broadcast %96 : vector<1x512xf32> to vector<8x512xf32>
    %100 = arith.addf %98, %99 : vector<8x512xf32>
    %cst_59 = arith.constant 0.000000e+00 : f32
    %101 = vector.broadcast %cst_59 : f32 to vector<8x512xf32>
    %102 = arith.maximumf %100, %101 : vector<8x512xf32>
    %c0_60 = arith.constant 0 : index
    %c0_61 = arith.constant 0 : index
    %c0_62 = arith.constant 0 : index
    %103 = vector.load %arg13[%c0_60, %c0_61, %c0_62] : memref<2x512x128xbf16, #tpu.memory_space<vmem>>, vector<1x512x128xbf16>
    %104 = vector.shape_cast %103 : vector<1x512x128xbf16> to vector<512x128xbf16>
    %c0_63 = arith.constant 0 : index
    %c0_64 = arith.constant 0 : index
    %c0_65 = arith.constant 0 : index
    %105 = vector.load %arg14[%c0_63, %c0_64, %c0_65] : memref<2x1x128xf32, #tpu.memory_space<vmem>>, vector<1x1x128xf32>
    %106 = vector.shape_cast %105 : vector<1x1x128xf32> to vector<1x128xf32>
    %107 = arith.truncf %102 : vector<8x512xf32> to vector<8x512xbf16>
    %cst_66 = arith.constant dense<0.000000e+00> : vector<8x128xf32>
    %108 = tpu.matmul %107, %104, %cst_66 {dimension_numbers = #tpu.dot_dimension_numbers<[1], [0], [0], [1], [0, 0, 1, 1], [], []>} : vector<8x512xbf16>, vector<512x128xbf16>, vector<8x128xf32> -> vector<8x128xf32>
    %109 = vector.broadcast %106 : vector<1x128xf32> to vector<8x128xf32>
    %110 = arith.addf %108, %109 : vector<8x128xf32>
    %111 = arith.addf %92, %110 : vector<8x128xf32>
    %c0_67 = arith.constant 0 : index
    %c0_68 = arith.constant 0 : index
    %c0_69 = arith.constant 0 : index
    %112 = vector.load %arg19[%c0_67, %c0_68, %c0_69] : memref<2x1x128xf32, #tpu.memory_space<vmem>>, vector<1x1x128xf32>
    %113 = vector.shape_cast %112 : vector<1x1x128xf32> to vector<1x128xf32>
    %c0_70 = arith.constant 0 : index
    %c0_71 = arith.constant 0 : index
    %c0_72 = arith.constant 0 : index
    %114 = vector.load %arg20[%c0_70, %c0_71, %c0_72] : memref<2x1x128xf32, #tpu.memory_space<vmem>>, vector<1x1x128xf32>
    %115 = vector.shape_cast %114 : vector<1x1x128xf32> to vector<1x128xf32>
    %cst_73 = arith.constant dense<0.000000e+00> : vector<8xf32>
    %116 = vector.multi_reduction <add>, %111, %cst_73 [1] : vector<8x128xf32> to vector<8xf32>
    %117 = vector.shape_cast %116 : vector<8xf32> to vector<8x1xf32>
    %118 = arith.mulf %111, %111 : vector<8x128xf32>
    %cst_74 = arith.constant dense<0.000000e+00> : vector<8xf32>
    %119 = vector.multi_reduction <add>, %118, %cst_74 [1] : vector<8x128xf32> to vector<8xf32>
    %120 = vector.shape_cast %119 : vector<8xf32> to vector<8x1xf32>
    %cst_75 = arith.constant 7.812500e-03 : f32
    %121 = vector.broadcast %cst_75 : f32 to vector<8x1xf32>
    %122 = arith.mulf %117, %121 : vector<8x1xf32>
    %cst_76 = arith.constant 7.812500e-03 : f32
    %123 = vector.broadcast %cst_76 : f32 to vector<8x1xf32>
    %124 = arith.mulf %120, %123 : vector<8x1xf32>
    %125 = arith.mulf %122, %122 : vector<8x1xf32>
    %126 = arith.subf %124, %125 : vector<8x1xf32>
    %cst_77 = arith.constant 0.000000e+00 : f32
    %127 = vector.broadcast %cst_77 : f32 to vector<8x1xf32>
    %128 = arith.maximumf %126, %127 : vector<8x1xf32>
    %129 = vector.broadcast %122 : vector<8x1xf32> to vector<8x128xf32>
    %130 = arith.subf %111, %129 : vector<8x128xf32>
    %cst_78 = arith.constant 9.99999974E-6 : f32
    %131 = vector.broadcast %cst_78 : f32 to vector<8x1xf32>
    %132 = arith.addf %128, %131 : vector<8x1xf32>
    %133 = math.rsqrt %132 : vector<8x1xf32>
    %134 = vector.broadcast %133 : vector<8x1xf32> to vector<8x128xf32>
    %135 = arith.mulf %130, %134 : vector<8x128xf32>
    %136 = vector.broadcast %113 : vector<1x128xf32> to vector<8x128xf32>
    %137 = arith.mulf %135, %136 : vector<8x128xf32>
    %138 = vector.broadcast %115 : vector<1x128xf32> to vector<8x128xf32>
    %139 = arith.addf %137, %138 : vector<8x128xf32>
    %c1 = arith.constant 1 : index
    %c0_79 = arith.constant 0 : index
    %c0_80 = arith.constant 0 : index
    %140 = vector.load %arg7[%c1, %c0_79, %c0_80] : memref<2x128x128xbf16, #tpu.memory_space<vmem>>, vector<1x128x128xbf16>
    %141 = vector.shape_cast %140 : vector<1x128x128xbf16> to vector<128x128xbf16>
    %c1_81 = arith.constant 1 : index
    %c0_82 = arith.constant 0 : index
    %c0_83 = arith.constant 0 : index
    %142 = vector.load %arg8[%c1_81, %c0_82, %c0_83] : memref<2x1x128xf32, #tpu.memory_space<vmem>>, vector<1x1x128xf32>
    %143 = vector.shape_cast %142 : vector<1x1x128xf32> to vector<1x128xf32>
    %144 = arith.truncf %139 : vector<8x128xf32> to vector<8x128xbf16>
    %cst_84 = arith.constant dense<0.000000e+00> : vector<8x128xf32>
    %145 = tpu.matmul %144, %141, %cst_84 {dimension_numbers = #tpu.dot_dimension_numbers<[1], [0], [0], [1], [0, 0, 1, 1], [], []>} : vector<8x128xbf16>, vector<128x128xbf16>, vector<8x128xf32> -> vector<8x128xf32>
    %146 = vector.broadcast %143 : vector<1x128xf32> to vector<8x128xf32>
    %147 = arith.addf %145, %146 : vector<8x128xf32>
    %148 = arith.addf %139, %147 : vector<8x128xf32>
    %c1_85 = arith.constant 1 : index
    %c0_86 = arith.constant 0 : index
    %c0_87 = arith.constant 0 : index
    %149 = vector.load %arg15[%c1_85, %c0_86, %c0_87] : memref<2x1x128xf32, #tpu.memory_space<vmem>>, vector<1x1x128xf32>
    %150 = vector.shape_cast %149 : vector<1x1x128xf32> to vector<1x128xf32>
    %c1_88 = arith.constant 1 : index
    %c0_89 = arith.constant 0 : index
    %c0_90 = arith.constant 0 : index
    %151 = vector.load %arg16[%c1_88, %c0_89, %c0_90] : memref<2x1x128xf32, #tpu.memory_space<vmem>>, vector<1x1x128xf32>
    %152 = vector.shape_cast %151 : vector<1x1x128xf32> to vector<1x128xf32>
    %cst_91 = arith.constant dense<0.000000e+00> : vector<8xf32>
    %153 = vector.multi_reduction <add>, %148, %cst_91 [1] : vector<8x128xf32> to vector<8xf32>
    %154 = vector.shape_cast %153 : vector<8xf32> to vector<8x1xf32>
    %155 = arith.mulf %148, %148 : vector<8x128xf32>
    %cst_92 = arith.constant dense<0.000000e+00> : vector<8xf32>
    %156 = vector.multi_reduction <add>, %155, %cst_92 [1] : vector<8x128xf32> to vector<8xf32>
    %157 = vector.shape_cast %156 : vector<8xf32> to vector<8x1xf32>
    %cst_93 = arith.constant 7.812500e-03 : f32
    %158 = vector.broadcast %cst_93 : f32 to vector<8x1xf32>
    %159 = arith.mulf %154, %158 : vector<8x1xf32>
    %cst_94 = arith.constant 7.812500e-03 : f32
    %160 = vector.broadcast %cst_94 : f32 to vector<8x1xf32>
    %161 = arith.mulf %157, %160 : vector<8x1xf32>
    %162 = arith.mulf %159, %159 : vector<8x1xf32>
    %163 = arith.subf %161, %162 : vector<8x1xf32>
    %cst_95 = arith.constant 0.000000e+00 : f32
    %164 = vector.broadcast %cst_95 : f32 to vector<8x1xf32>
    %165 = arith.maximumf %163, %164 : vector<8x1xf32>
    %166 = vector.broadcast %159 : vector<8x1xf32> to vector<8x128xf32>
    %167 = arith.subf %148, %166 : vector<8x128xf32>
    %cst_96 = arith.constant 9.99999974E-6 : f32
    %168 = vector.broadcast %cst_96 : f32 to vector<8x1xf32>
    %169 = arith.addf %165, %168 : vector<8x1xf32>
    %170 = math.rsqrt %169 : vector<8x1xf32>
    %171 = vector.broadcast %170 : vector<8x1xf32> to vector<8x128xf32>
    %172 = arith.mulf %167, %171 : vector<8x128xf32>
    %173 = vector.broadcast %150 : vector<1x128xf32> to vector<8x128xf32>
    %174 = arith.mulf %172, %173 : vector<8x128xf32>
    %175 = vector.broadcast %152 : vector<1x128xf32> to vector<8x128xf32>
    %176 = arith.addf %174, %175 : vector<8x128xf32>
    %177 = vector.extract_strided_slice %25 {offsets = [0, 128], sizes = [8, 128], strides = [1, 1]} : vector<8x256xf32> to vector<8x128xf32>
    %178 = arith.addf %176, %177 : vector<8x128xf32>
    %c1_97 = arith.constant 1 : index
    %c0_98 = arith.constant 0 : index
    %c0_99 = arith.constant 0 : index
    %179 = vector.load %arg17[%c1_97, %c0_98, %c0_99] : memref<2x1x128xf32, #tpu.memory_space<vmem>>, vector<1x1x128xf32>
    %180 = vector.shape_cast %179 : vector<1x1x128xf32> to vector<1x128xf32>
    %c1_100 = arith.constant 1 : index
    %c0_101 = arith.constant 0 : index
    %c0_102 = arith.constant 0 : index
    %181 = vector.load %arg18[%c1_100, %c0_101, %c0_102] : memref<2x1x128xf32, #tpu.memory_space<vmem>>, vector<1x1x128xf32>
    %182 = vector.shape_cast %181 : vector<1x1x128xf32> to vector<1x128xf32>
    %cst_103 = arith.constant dense<0.000000e+00> : vector<8xf32>
    %183 = vector.multi_reduction <add>, %178, %cst_103 [1] : vector<8x128xf32> to vector<8xf32>
    %184 = vector.shape_cast %183 : vector<8xf32> to vector<8x1xf32>
    %185 = arith.mulf %178, %178 : vector<8x128xf32>
    %cst_104 = arith.constant dense<0.000000e+00> : vector<8xf32>
    %186 = vector.multi_reduction <add>, %185, %cst_104 [1] : vector<8x128xf32> to vector<8xf32>
    %187 = vector.shape_cast %186 : vector<8xf32> to vector<8x1xf32>
    %cst_105 = arith.constant 7.812500e-03 : f32
    %188 = vector.broadcast %cst_105 : f32 to vector<8x1xf32>
    %189 = arith.mulf %184, %188 : vector<8x1xf32>
    %cst_106 = arith.constant 7.812500e-03 : f32
    %190 = vector.broadcast %cst_106 : f32 to vector<8x1xf32>
    %191 = arith.mulf %187, %190 : vector<8x1xf32>
    %192 = arith.mulf %189, %189 : vector<8x1xf32>
    %193 = arith.subf %191, %192 : vector<8x1xf32>
    %cst_107 = arith.constant 0.000000e+00 : f32
    %194 = vector.broadcast %cst_107 : f32 to vector<8x1xf32>
    %195 = arith.maximumf %193, %194 : vector<8x1xf32>
    %196 = vector.broadcast %189 : vector<8x1xf32> to vector<8x128xf32>
    %197 = arith.subf %178, %196 : vector<8x128xf32>
    %cst_108 = arith.constant 9.99999974E-6 : f32
    %198 = vector.broadcast %cst_108 : f32 to vector<8x1xf32>
    %199 = arith.addf %195, %198 : vector<8x1xf32>
    %200 = math.rsqrt %199 : vector<8x1xf32>
    %201 = vector.broadcast %200 : vector<8x1xf32> to vector<8x128xf32>
    %202 = arith.mulf %197, %201 : vector<8x128xf32>
    %203 = vector.broadcast %180 : vector<1x128xf32> to vector<8x128xf32>
    %204 = arith.mulf %202, %203 : vector<8x128xf32>
    %205 = vector.broadcast %182 : vector<1x128xf32> to vector<8x128xf32>
    %206 = arith.addf %204, %205 : vector<8x128xf32>
    %c1_109 = arith.constant 1 : index
    %c0_110 = arith.constant 0 : index
    %c0_111 = arith.constant 0 : index
    %207 = vector.load %arg11[%c1_109, %c0_110, %c0_111] : memref<2x128x512xbf16, #tpu.memory_space<vmem>>, vector<1x128x512xbf16>
    %208 = vector.shape_cast %207 : vector<1x128x512xbf16> to vector<128x512xbf16>
    %c1_112 = arith.constant 1 : index
    %c0_113 = arith.constant 0 : index
    %c0_114 = arith.constant 0 : index
    %209 = vector.load %arg12[%c1_112, %c0_113, %c0_114] : memref<2x1x512xf32, #tpu.memory_space<vmem>>, vector<1x1x512xf32>
    %210 = vector.shape_cast %209 : vector<1x1x512xf32> to vector<1x512xf32>
    %211 = arith.truncf %206 : vector<8x128xf32> to vector<8x128xbf16>
    %cst_115 = arith.constant dense<0.000000e+00> : vector<8x512xf32>
    %212 = tpu.matmul %211, %208, %cst_115 {dimension_numbers = #tpu.dot_dimension_numbers<[1], [0], [0], [1], [0, 0, 1, 1], [], []>} : vector<8x128xbf16>, vector<128x512xbf16>, vector<8x512xf32> -> vector<8x512xf32>
    %213 = vector.broadcast %210 : vector<1x512xf32> to vector<8x512xf32>
    %214 = arith.addf %212, %213 : vector<8x512xf32>
    %cst_116 = arith.constant 0.000000e+00 : f32
    %215 = vector.broadcast %cst_116 : f32 to vector<8x512xf32>
    %216 = arith.maximumf %214, %215 : vector<8x512xf32>
    %c1_117 = arith.constant 1 : index
    %c0_118 = arith.constant 0 : index
    %c0_119 = arith.constant 0 : index
    %217 = vector.load %arg13[%c1_117, %c0_118, %c0_119] : memref<2x512x128xbf16, #tpu.memory_space<vmem>>, vector<1x512x128xbf16>
    %218 = vector.shape_cast %217 : vector<1x512x128xbf16> to vector<512x128xbf16>
    %c1_120 = arith.constant 1 : index
    %c0_121 = arith.constant 0 : index
    %c0_122 = arith.constant 0 : index
    %219 = vector.load %arg14[%c1_120, %c0_121, %c0_122] : memref<2x1x128xf32, #tpu.memory_space<vmem>>, vector<1x1x128xf32>
    %220 = vector.shape_cast %219 : vector<1x1x128xf32> to vector<1x128xf32>
    %221 = arith.truncf %216 : vector<8x512xf32> to vector<8x512xbf16>
    %cst_123 = arith.constant dense<0.000000e+00> : vector<8x128xf32>
    %222 = tpu.matmul %221, %218, %cst_123 {dimension_numbers = #tpu.dot_dimension_numbers<[1], [0], [0], [1], [0, 0, 1, 1], [], []>} : vector<8x512xbf16>, vector<512x128xbf16>, vector<8x128xf32> -> vector<8x128xf32>
    %223 = vector.broadcast %220 : vector<1x128xf32> to vector<8x128xf32>
    %224 = arith.addf %222, %223 : vector<8x128xf32>
    %225 = arith.addf %206, %224 : vector<8x128xf32>
    %c1_124 = arith.constant 1 : index
    %c0_125 = arith.constant 0 : index
    %c0_126 = arith.constant 0 : index
    %226 = vector.load %arg19[%c1_124, %c0_125, %c0_126] : memref<2x1x128xf32, #tpu.memory_space<vmem>>, vector<1x1x128xf32>
    %227 = vector.shape_cast %226 : vector<1x1x128xf32> to vector<1x128xf32>
    %c1_127 = arith.constant 1 : index
    %c0_128 = arith.constant 0 : index
    %c0_129 = arith.constant 0 : index
    %228 = vector.load %arg20[%c1_127, %c0_128, %c0_129] : memref<2x1x128xf32, #tpu.memory_space<vmem>>, vector<1x1x128xf32>
    %229 = vector.shape_cast %228 : vector<1x1x128xf32> to vector<1x128xf32>
    %cst_130 = arith.constant dense<0.000000e+00> : vector<8xf32>
    %230 = vector.multi_reduction <add>, %225, %cst_130 [1] : vector<8x128xf32> to vector<8xf32>
    %231 = vector.shape_cast %230 : vector<8xf32> to vector<8x1xf32>
    %232 = arith.mulf %225, %225 : vector<8x128xf32>
    %cst_131 = arith.constant dense<0.000000e+00> : vector<8xf32>
    %233 = vector.multi_reduction <add>, %232, %cst_131 [1] : vector<8x128xf32> to vector<8xf32>
    %234 = vector.shape_cast %233 : vector<8xf32> to vector<8x1xf32>
    %cst_132 = arith.constant 7.812500e-03 : f32
    %235 = vector.broadcast %cst_132 : f32 to vector<8x1xf32>
    %236 = arith.mulf %231, %235 : vector<8x1xf32>
    %cst_133 = arith.constant 7.812500e-03 : f32
    %237 = vector.broadcast %cst_133 : f32 to vector<8x1xf32>
    %238 = arith.mulf %234, %237 : vector<8x1xf32>
    %239 = arith.mulf %236, %236 : vector<8x1xf32>
    %240 = arith.subf %238, %239 : vector<8x1xf32>
    %cst_134 = arith.constant 0.000000e+00 : f32
    %241 = vector.broadcast %cst_134 : f32 to vector<8x1xf32>
    %242 = arith.maximumf %240, %241 : vector<8x1xf32>
    %243 = vector.broadcast %236 : vector<8x1xf32> to vector<8x128xf32>
    %244 = arith.subf %225, %243 : vector<8x128xf32>
    %cst_135 = arith.constant 9.99999974E-6 : f32
    %245 = vector.broadcast %cst_135 : f32 to vector<8x1xf32>
    %246 = arith.addf %242, %245 : vector<8x1xf32>
    %247 = math.rsqrt %246 : vector<8x1xf32>
    %248 = vector.broadcast %247 : vector<8x1xf32> to vector<8x128xf32>
    %249 = arith.mulf %244, %248 : vector<8x128xf32>
    %250 = vector.broadcast %227 : vector<1x128xf32> to vector<8x128xf32>
    %251 = arith.mulf %249, %250 : vector<8x128xf32>
    %252 = vector.broadcast %229 : vector<1x128xf32> to vector<8x128xf32>
    %253 = arith.addf %251, %252 : vector<8x128xf32>
    %c0_136 = arith.constant 0 : index
    %c0_137 = arith.constant 0 : index
    %254 = vector.load %arg25[%c0_136, %c0_137] : memref<8x128xf32, #tpu.memory_space<vmem>>, vector<8x128xf32>
    tpu.vector_store %arg25[%c0_136, %c0_137], %253 {strides = array<i32>} : memref<8x128xf32, #tpu.memory_space<vmem>>, vector<8x128xf32>,
    %c0_138 = arith.constant 0 : index
    %c0_139 = arith.constant 0 : index
    %255 = vector.load %arg21[%c0_138, %c0_139] : memref<128x1280xbf16, #tpu.memory_space<vmem>>, vector<128x1280xbf16>
    %c0_140 = arith.constant 0 : index
    %c0_141 = arith.constant 0 : index
    %256 = vector.load %arg22[%c0_140, %c0_141] : memref<1x1280xf32, #tpu.memory_space<vmem>>, vector<1x1280xf32>
    %257 = arith.truncf %253 : vector<8x128xf32> to vector<8x128xbf16>
    %cst_142 = arith.constant dense<0.000000e+00> : vector<8x1280xf32>
    %258 = tpu.matmul %257, %255, %cst_142 {dimension_numbers = #tpu.dot_dimension_numbers<[1], [0], [0], [1], [0, 0, 1, 1], [], []>} : vector<8x128xbf16>, vector<128x1280xbf16>, vector<8x1280xf32> -> vector<8x1280xf32>
    %259 = vector.broadcast %256 : vector<1x1280xf32> to vector<8x1280xf32>
    %260 = arith.addf %258, %259 : vector<8x1280xf32>
    %261 = vector.extract_strided_slice %260 {offsets = [0, 0], sizes = [8, 512], strides = [1, 1]} : vector<8x1280xf32> to vector<8x512xf32>
    %c0_143 = arith.constant 0 : index
    %c0_144 = arith.constant 0 : index
    %262 = vector.load %arg26[%c0_143, %c0_144] : memref<8x512xf32, #tpu.memory_space<vmem>>, vector<8x512xf32>
    tpu.vector_store %arg26[%c0_143, %c0_144], %261 {strides = array<i32>} : memref<8x512xf32, #tpu.memory_space<vmem>>, vector<8x512xf32>,
    %cst_145 = arith.constant dense<0xFF800000> : vector<8xf32>
    %263 = vector.multi_reduction <maximumf>, %261, %cst_145 [1] : vector<8x512xf32> to vector<8xf32>
    %264 = vector.shape_cast %263 : vector<8xf32> to vector<8x1xf32>
    %265 = vector.broadcast %264 : vector<8x1xf32> to vector<8x512xf32>
    %266 = arith.subf %261, %265 : vector<8x512xf32>
    %267 = math.exp %266 : vector<8x512xf32>
    %cst_146 = arith.constant dense<0.000000e+00> : vector<8xf32>
    %268 = vector.multi_reduction <add>, %267, %cst_146 [1] : vector<8x512xf32> to vector<8xf32>
    %269 = vector.shape_cast %268 : vector<8xf32> to vector<8x1xf32>
    %270 = vector.broadcast %269 : vector<8x1xf32> to vector<8x512xf32>
    %271 = arith.divf %267, %270 : vector<8x512xf32>
    %c0_147 = arith.constant 0 : index
    %c0_148 = arith.constant 0 : index
    %272 = vector.load %arg27[%c0_147, %c0_148] : memref<8x512xf32, #tpu.memory_space<vmem>>, vector<8x512xf32>
    tpu.vector_store %arg27[%c0_147, %c0_148], %271 {strides = array<i32>} : memref<8x512xf32, #tpu.memory_space<vmem>>, vector<8x512xf32>,
    %273 = vector.extract_strided_slice %260 {offsets = [0, 512], sizes = [8, 768], strides = [1, 1]} : vector<8x1280xf32> to vector<8x768xf32>
    %cst_149 = arith.constant 0.000000e+00 : f32
    %274 = vector.broadcast %cst_149 : f32 to vector<8x768xf32>
    %275 = arith.maximumf %273, %274 : vector<8x768xf32>
    %c0_150 = arith.constant 0 : index
    %c0_151 = arith.constant 0 : index
    %276 = vector.load %arg23[%c0_150, %c0_151] : memref<1x768xf32, #tpu.memory_space<vmem>>, vector<1x768xf32>
    %277 = vector.broadcast %276 : vector<1x768xf32> to vector<8x768xf32>
    %278 = arith.mulf %275, %277 : vector<8x768xf32>
    %279 = tpu.iota {dimensions = array<i32: 1>} : vector<1x128xi32>
    %cst_152 = arith.constant 0.000000e+00 : f32
    %280 = vector.broadcast %cst_152 : f32 to vector<8x128xf32>
    %281 = vector.extract_strided_slice %278 {offsets = [0, 0], sizes = [8, 128], strides = [1, 1]} : vector<8x768xf32> to vector<8x128xf32>
    %cst_153 = arith.constant dense<0.000000e+00> : vector<8xf32>
    %282 = vector.multi_reduction <add>, %281, %cst_153 [1] : vector<8x128xf32> to vector<8xf32>
    %283 = vector.shape_cast %282 : vector<8xf32> to vector<8x1xf32>
    %c0_i32 = arith.constant 0 : i32
    %284 = vector.broadcast %c0_i32 : i32 to vector<1x128xi32>
    %285 = arith.cmpi eq, %279, %284 : vector<1x128xi32>
    %cst_154 = arith.constant 0.000000e+00 : f32
    %286 = vector.shape_cast %285 : vector<1x128xi1> to vector<1x128xi1>
    %287 = vector.broadcast %286 : vector<1x128xi1> to vector<8x128xi1>
    %288 = vector.shape_cast %283 : vector<8x1xf32> to vector<8x1xf32>
    %289 = vector.broadcast %288 : vector<8x1xf32> to vector<8x128xf32>
    %290 = vector.broadcast %cst_154 : f32 to vector<8x128xf32>
    %291 = arith.select %287, %289, %290 : vector<8x128xi1>, vector<8x128xf32>
    %292 = arith.addf %280, %291 : vector<8x128xf32>
    %293 = vector.extract_strided_slice %278 {offsets = [0, 128], sizes = [8, 128], strides = [1, 1]} : vector<8x768xf32> to vector<8x128xf32>
    %cst_155 = arith.constant dense<0.000000e+00> : vector<8xf32>
    %294 = vector.multi_reduction <add>, %293, %cst_155 [1] : vector<8x128xf32> to vector<8xf32>
    %295 = vector.shape_cast %294 : vector<8xf32> to vector<8x1xf32>
    %c1_i32 = arith.constant 1 : i32
    %296 = vector.broadcast %c1_i32 : i32 to vector<1x128xi32>
    %297 = arith.cmpi eq, %279, %296 : vector<1x128xi32>
    %cst_156 = arith.constant 0.000000e+00 : f32
    %298 = vector.shape_cast %297 : vector<1x128xi1> to vector<1x128xi1>
    %299 = vector.broadcast %298 : vector<1x128xi1> to vector<8x128xi1>
    %300 = vector.shape_cast %295 : vector<8x1xf32> to vector<8x1xf32>
    %301 = vector.broadcast %300 : vector<8x1xf32> to vector<8x128xf32>
    %302 = vector.broadcast %cst_156 : f32 to vector<8x128xf32>
    %303 = arith.select %299, %301, %302 : vector<8x128xi1>, vector<8x128xf32>
    %304 = arith.addf %292, %303 : vector<8x128xf32>
    %305 = vector.extract_strided_slice %278 {offsets = [0, 256], sizes = [8, 128], strides = [1, 1]} : vector<8x768xf32> to vector<8x128xf32>
    %cst_157 = arith.constant dense<0.000000e+00> : vector<8xf32>
    %306 = vector.multi_reduction <add>, %305, %cst_157 [1] : vector<8x128xf32> to vector<8xf32>
    %307 = vector.shape_cast %306 : vector<8xf32> to vector<8x1xf32>
    %c2_i32 = arith.constant 2 : i32
    %308 = vector.broadcast %c2_i32 : i32 to vector<1x128xi32>
    %309 = arith.cmpi eq, %279, %308 : vector<1x128xi32>
    %cst_158 = arith.constant 0.000000e+00 : f32
    %310 = vector.shape_cast %309 : vector<1x128xi1> to vector<1x128xi1>
    %311 = vector.broadcast %310 : vector<1x128xi1> to vector<8x128xi1>
    %312 = vector.shape_cast %307 : vector<8x1xf32> to vector<8x1xf32>
    %313 = vector.broadcast %312 : vector<8x1xf32> to vector<8x128xf32>
    %314 = vector.broadcast %cst_158 : f32 to vector<8x128xf32>
    %315 = arith.select %311, %313, %314 : vector<8x128xi1>, vector<8x128xf32>
    %316 = arith.addf %304, %315 : vector<8x128xf32>
    %317 = vector.extract_strided_slice %278 {offsets = [0, 384], sizes = [8, 128], strides = [1, 1]} : vector<8x768xf32> to vector<8x128xf32>
    %cst_159 = arith.constant dense<0.000000e+00> : vector<8xf32>
    %318 = vector.multi_reduction <add>, %317, %cst_159 [1] : vector<8x128xf32> to vector<8xf32>
    %319 = vector.shape_cast %318 : vector<8xf32> to vector<8x1xf32>
    %c3_i32 = arith.constant 3 : i32
    %320 = vector.broadcast %c3_i32 : i32 to vector<1x128xi32>
    %321 = arith.cmpi eq, %279, %320 : vector<1x128xi32>
    %cst_160 = arith.constant 0.000000e+00 : f32
    %322 = vector.shape_cast %321 : vector<1x128xi1> to vector<1x128xi1>
    %323 = vector.broadcast %322 : vector<1x128xi1> to vector<8x128xi1>
    %324 = vector.shape_cast %319 : vector<8x1xf32> to vector<8x1xf32>
    %325 = vector.broadcast %324 : vector<8x1xf32> to vector<8x128xf32>
    %326 = vector.broadcast %cst_160 : f32 to vector<8x128xf32>
    %327 = arith.select %323, %325, %326 : vector<8x128xi1>, vector<8x128xf32>
    %328 = arith.addf %316, %327 : vector<8x128xf32>
    %329 = vector.extract_strided_slice %278 {offsets = [0, 512], sizes = [8, 128], strides = [1, 1]} : vector<8x768xf32> to vector<8x128xf32>
    %cst_161 = arith.constant dense<0.000000e+00> : vector<8xf32>
    %330 = vector.multi_reduction <add>, %329, %cst_161 [1] : vector<8x128xf32> to vector<8xf32>
    %331 = vector.shape_cast %330 : vector<8xf32> to vector<8x1xf32>
    %c4_i32 = arith.constant 4 : i32
    %332 = vector.broadcast %c4_i32 : i32 to vector<1x128xi32>
    %333 = arith.cmpi eq, %279, %332 : vector<1x128xi32>
    %cst_162 = arith.constant 0.000000e+00 : f32
    %334 = vector.shape_cast %333 : vector<1x128xi1> to vector<1x128xi1>
    %335 = vector.broadcast %334 : vector<1x128xi1> to vector<8x128xi1>
    %336 = vector.shape_cast %331 : vector<8x1xf32> to vector<8x1xf32>
    %337 = vector.broadcast %336 : vector<8x1xf32> to vector<8x128xf32>
    %338 = vector.broadcast %cst_162 : f32 to vector<8x128xf32>
    %339 = arith.select %335, %337, %338 : vector<8x128xi1>, vector<8x128xf32>
    %340 = arith.addf %328, %339 : vector<8x128xf32>
    %341 = vector.extract_strided_slice %278 {offsets = [0, 640], sizes = [8, 128], strides = [1, 1]} : vector<8x768xf32> to vector<8x128xf32>
    %cst_163 = arith.constant dense<0.000000e+00> : vector<8xf32>
    %342 = vector.multi_reduction <add>, %341, %cst_163 [1] : vector<8x128xf32> to vector<8xf32>
    %343 = vector.shape_cast %342 : vector<8xf32> to vector<8x1xf32>
    %c5_i32 = arith.constant 5 : i32
    %344 = vector.broadcast %c5_i32 : i32 to vector<1x128xi32>
    %345 = arith.cmpi eq, %279, %344 : vector<1x128xi32>
    %cst_164 = arith.constant 0.000000e+00 : f32
    %346 = vector.shape_cast %345 : vector<1x128xi1> to vector<1x128xi1>
    %347 = vector.broadcast %346 : vector<1x128xi1> to vector<8x128xi1>
    %348 = vector.shape_cast %343 : vector<8x1xf32> to vector<8x1xf32>
    %349 = vector.broadcast %348 : vector<8x1xf32> to vector<8x128xf32>
    %350 = vector.broadcast %cst_164 : f32 to vector<8x128xf32>
    %351 = arith.select %347, %349, %350 : vector<8x128xi1>, vector<8x128xf32>
    %352 = arith.addf %340, %351 : vector<8x128xf32>
    %c0_165 = arith.constant 0 : index
    %c0_166 = arith.constant 0 : index
    %353 = vector.load %arg24[%c0_165, %c0_166] : memref<1x128xf32, #tpu.memory_space<vmem>>, vector<1x128xf32>
    %354 = vector.broadcast %353 : vector<1x128xf32> to vector<8x128xf32>
    %355 = arith.addf %352, %354 : vector<8x128xf32>
    %356 = arith.negf %355 : vector<8x128xf32>
    %357 = math.exp %356 : vector<8x128xf32>
    %cst_167 = arith.constant 1.000000e+00 : f32
    %358 = vector.broadcast %cst_167 : f32 to vector<8x128xf32>
    %359 = arith.addf %358, %357 : vector<8x128xf32>
    %360 = arith.divf %358, %359 : vector<8x128xf32>
    %cst_168 = arith.constant 0.00999999977 : f32
    %cst_169 = arith.constant 9.900000e-01 : f32
    %361 = vector.broadcast %cst_168 : f32 to vector<8x128xf32>
    %362 = arith.maximumf %361, %360 : vector<8x128xf32>
    %363 = vector.broadcast %cst_169 : f32 to vector<8x128xf32>
    %364 = arith.minimumf %363, %362 : vector<8x128xf32>
    %c0_170 = arith.constant 0 : index
    %c0_171 = arith.constant 0 : index
    %365 = vector.load %arg28[%c0_170, %c0_171] : memref<8x128xf32, #tpu.memory_space<vmem>>, vector<8x128xf32>
    tpu.vector_store %arg28[%c0_170, %c0_171], %364 {strides = array<i32>} : memref<8x128xf32, #tpu.memory_space<vmem>>, vector<8x128xf32>,
    return
  }
}

</mosaic_0001>

<bundles_post_ra>
// kernel: trajectory_decoder_forward.1
= control target key start
LH: loop header
LB: loop body
LE: loop exit
PB: predicated region body
PF: predicated region fallthrough
CT: control target
= control target key end

     0   :  { %s5718_s0 = inlined_call_operand.vmem [shape: f32[8,512], index: 0, kind: input, shape index: {}]   ;;  %s5719_s1 = inlined_call_operand.hbm [shape: bf16[512,128], index: 1, kind: input, shape index: {}]   ;;  %s5720_s2 = inlined_call_operand.vmem [shape: f32[1,128], index: 2, kind: input, shape index: {}]   ;;  %s5721_s3 = inlined_call_operand.hbm [shape: bf16[128,256], index: 3, kind: input, shape index: {}]   ;;  %s5722_s4 = inlined_call_operand.vmem [shape: f32[1,256], index: 4, kind: input, shape index: {}]   ;;  %s5723_s5 = inlined_call_operand.hbm [shape: bf16[256,128], index: 5, kind: input, shape index: {}]   ;;  %s5724_s6 = inlined_call_operand.vmem [shape: f32[1,128], index: 6, kind: input, shape index: {}]   ;;  %s5725_s7 = inlined_call_operand.hbm [shape: bf16[2,128,128], index: 7, kind: input, shape index: {}]   ;;  %s5726_s8 = inlined_call_operand.vmem [shape: f32[2,1,128], index: 8, kind: input, shape index: {}]   ;;  %s5727_s9 = inlined_call_operand.hbm [shape: bf16[128,256], index: 9, kind: input, shape index: {}]   ;;  %s5728_s10 = inlined_call_operand.vmem [shape: f32[1,256], index: 10, kind: input, shape index: {}]   ;;  %s5729_s11 = inlined_call_operand.hbm [shape: bf16[2,128,512], index: 11, kind: input, shape index: {}]   ;;  %s5730_s12 = inlined_call_operand.vmem [shape: f32[2,1,512], index: 12, kind: input, shape index: {}]   ;;  %s5731_s13 = inlined_call_operand.hbm [shape: bf16[2,512,128], index: 13, kind: input, shape index: {}]   ;;  %s5732_s14 = inlined_call_operand.vmem [shape: f32[2,1,128], index: 14, kind: input, shape index: {}]   ;;  %s5733_s15 = inlined_call_operand.vmem [shape: f32[2,1,128], index: 15, kind: input, shape index: {}]   ;;  %s5734_s16 = inlined_call_operand.vmem [shape: f32[2,1,128], index: 16, kind: input, shape index: {}]   ;;  %s5735_s17 = inlined_call_operand.hbm [shape: f32[2,1,128], index: 17, kind: input, shape index: {}]   ;;  %s5736_s18 = inlined_call_operand.hbm [shape: f32[2,1,128], index: 18, kind: input, shape index: {}]   ;;  %s5737_s19 = inlined_call_operand.hbm [shape: f32[2,1,128], index: 19, kind: input, shape index: {}]   ;;  %s5738_s20 = inlined_call_operand.hbm [shape: f32[2,1,128], index: 20, kind: input, shape index: {}]   ;;  %s5739_s21 = inlined_call_operand.hbm [shape: bf16[128,1280], index: 21, kind: input, shape index: {}]   ;;  %s5740_s22 = inlined_call_operand.vmem [shape: f32[1,1280], index: 22, kind: input, shape index: {}]   ;;  %s5741_s23 = inlined_call_operand.hbm [shape: f32[1,768], index: 23, kind: input, shape index: {}]   ;;  %s5742_s24 = inlined_call_operand.hbm [shape: f32[1,128], index: 24, kind: input, shape index: {}]   ;;  %s5743_s25 = inlined_call_operand.hbm [shape: f32[8,128], index: 25, kind: output, shape index: {0}]   ;;  %s5744_s26 = inlined_call_operand.vmem [shape: f32[8,512], index: 26, kind: output, shape index: {1}]   ;;  %s5745_s27 = inlined_call_operand.hbm [shape: f32[8,512], index: 27, kind: output, shape index: {2}]   ;;  %s5746_s28 = inlined_call_operand.vmem [shape: f32[8,128], index: 28, kind: output, shape index: {3}]  }
   0x1   :  { %5762 = sst [smem:[#allocation38_spill]] %s5718_s0 }
   0x2   :  { %5763 = sst [smem:[#allocation39_spill]] %s5719_s1 }
   0x3   :  { %5764 = sst [smem:[#allocation40_spill]] %s5720_s2 }
   0x4   :  { %5765 = sst [smem:[#allocation41_spill]] %s5721_s3 }
   0x5   :  { %5766 = sst [smem:[#allocation42_spill]] %s5722_s4 }
   0x6   :  { %5767 = sst [smem:[#allocation43_spill]] %s5723_s5 }
   0x7   :  { %5768 = sst [smem:[#allocation44_spill]] %s5724_s6 }
   0x8   :  { %5769 = sst [smem:[#allocation45_spill]] %s5725_s7 }
   0x9   :  { %5770 = sst [smem:[#allocation46_spill]] %s5726_s8 }
   0xa   :  { %5771 = sst [smem:[#allocation47_spill]] %s5727_s9 }
   0xb   :  { %5772 = sst [smem:[#allocation48_spill]] %s5728_s10 }
   0xc   :  { %5773 = sst [smem:[#allocation49_spill]] %s5729_s11 }
   0xd   :  { %5774 = sst [smem:[#allocation50_spill]] %s5730_s12 }
   0xe   :  { %5775 = sst [smem:[#allocation51_spill]] %s5743_s25 }
   0xf   :  { %5776 = sst [smem:[#allocation52_spill]] %s5745_s27 }
  0x10   :  { %5777 = sst [smem:[#allocation53_spill]] %s5746_s28 }
  0x11   :  { %34 = vsyncpa [#allocation3], 0 }
  0x12   :  { %35 = vsyncpa [#allocation6], 0 }
  0x13   :  { %36 = vsyncpa [#allocation9], 0 }
  0x14   :  { %37 = vsyncpa [#allocation12], 0 }
  0x15   :  { %38 = vsyncpa [#allocation15], 0 }
  0x16   :  { %39 = vsyncpa [#allocation18], 0 }
  0x17   :  { %40 = vsyncpa [#allocation21], 0 }
  0x18   :  { %41 = vsyncpa [#allocation24], 0 }
  0x19   :  { %42 = vsyncpa [#allocation4], 0 }
  0x1a   :  { %43 = vsyncpa [#allocation27], 0  ;;  %s5104_s8 = smov [#allocation5]   ;;  %s5778_s3 = sld [smem:[#allocation41_spill]] }
  0x1b   :  { %s65_s5 = sshll.u32 %s5104_s8, 4  ;;  %s66_s5 = int_to_ptr.vmem [resolvable:$true] %s65_s5 }
  0x20   :  { %s4732_s6 = scalar_lea.hbm %s5778_s3, 2048 }
  0x21   :  { %p4733_p0 = scmp.ne.s32.totalorder %s5778_s3, %s4732_s6  ;;  %p4736_p1 = scmp.lt.u32.totalorder %s4732_s6, %s5778_s3 }
  0x23   :  { %p4738_p2 = pnand %p4736_p1, %p4733_p0 }
  0x25   :  { %4741 = shalt.err (!%p4738_p2)
}
  0x26   :  { %s4742_s2 = scalar_lea.vmem %s66_s5, 2048  ;;  %p4747_p4 = scmp.lt.s32.totalorder %s66_s5, %s66_s5 }
  0x27   :  { %p4743_p3 = scmp.ne.s32.totalorder %s66_s5, %s4742_s2  ;;  %p4748_p5 = scmp.lt.s32.totalorder %s4742_s2, %s4742_s2 }
  0x29   :  { %p4749_p6 = por %p4748_p5, %p4747_p4 }
  0x2b   :  { %p4750_p7 = pnand %p4749_p6, %p4743_p3 }
  0x2d   :  { %4753 = shalt.err (!%p4750_p7)
}
  0x2e   :  { %s5758_s7 = smov 128   ;;  %s5759_s12 = smov 8  }
  0x2f   :  { %71 = dma.hbm_to_vmem [thread:$0]  %s5778_s3, 2048, %s66_s5, [#allocation6], %s5758_s7, %s5758_s7, %s5759_s12  }
  0x30   :  { %s5107_s8 = smov [#allocation8]   ;;  %s5108_s30 = smov [#allocation11]  }
  0x31   :  { %s93_s9 = sshll.u32 %s5107_s8, 4  ;;  %s121_s6 = sshll.u32 %s5108_s30, 4  ;;  %s94_s9 = int_to_ptr.vmem [resolvable:$true] %s93_s9  ;;  %s122_s6 = int_to_ptr.vmem [resolvable:$true] %s121_s6 }
  0x32   :  { %s5779_s11 = sld [smem:[#allocation45_spill]] }
  0x38   :  { %s4754_s29 = scalar_lea.hbm %s5779_s11, 2048 }
  0x39   :  { %p4755_p8 = scmp.ne.s32.totalorder %s5779_s11, %s4754_s29  ;;  %p4758_p9 = scmp.lt.u32.totalorder %s4754_s29, %s5779_s11 }
  0x3b   :  { %p4760_p10 = pnand %p4758_p9, %p4755_p8 }
  0x3d   :  { %4763 = shalt.err (!%p4760_p10)
}
  0x3e   :  { %s4764_s5 = scalar_lea.vmem %s94_s9, 2048  ;;  %p4769_p12 = scmp.lt.s32.totalorder %s94_s9, %s94_s9 }
  0x3f   :  { %p4765_p11 = scmp.ne.s32.totalorder %s94_s9, %s4764_s5  ;;  %p4770_p13 = scmp.lt.s32.totalorder %s4764_s5, %s4764_s5 }
  0x41   :  { %p4771_p0 = por %p4770_p13, %p4769_p12 }
  0x43   :  { %p4772_p1 = pnand %p4771_p0, %p4765_p11 }
  0x45   :  { %4775 = shalt.err (!%p4772_p1)
}
  0x46   :  { %s5109_s3 = smov 64   ;;  %s5110_s1 = smov 4  }
  0x47   :  { %99 = dma.hbm_to_vmem [thread:$0]  %s5779_s11, 2048, %s94_s9, [#allocation9], %s5109_s3, %s5109_s3, %s5110_s1  }
  0x48   :  { %s5780_s8 = sld [smem:[#allocation49_spill]] }
  0x4e   :  { %s4776_s30 = scalar_lea.hbm %s5780_s8, 8192 }
  0x4f   :  { %p4777_p2 = scmp.ne.s32.totalorder %s5780_s8, %s4776_s30  ;;  %p4780_p3 = scmp.lt.u32.totalorder %s4776_s30, %s5780_s8 }
  0x51   :  { %p4782_p4 = pnand %p4780_p3, %p4777_p2 }
  0x53   :  { %4785 = shalt.err (!%p4782_p4)
}
  0x54   :  { %s4786_s5 = scalar_lea.vmem %s122_s6, 8192  ;;  %p4791_p6 = scmp.lt.s32.totalorder %s122_s6, %s122_s6 }
  0x55   :  { %p4787_p5 = scmp.ne.s32.totalorder %s122_s6, %s4786_s5  ;;  %p4792_p7 = scmp.lt.s32.totalorder %s4786_s5, %s4786_s5 }
  0x57   :  { %p4793_p8 = por %p4792_p7, %p4791_p6 }
  0x59   :  { %p4794_p9 = pnand %p4793_p8, %p4787_p5 }
  0x5b   :  { %4797 = shalt.err (!%p4794_p9)
}
  0x5c   :  { %s5111_s9 = smov 256   ;;  %s5760_s11 = smov 16  }
  0x5d   :  { %127 = dma.hbm_to_vmem [thread:$0]  %s5780_s8, 8192, %s122_s6, [#allocation12], %s5111_s9, %s5111_s9, %s5760_s11  }
  0x5e   :  { %s5113_s25 = smov [#allocation14]   ;;  %s4798_s0 = scalar_lea.hbm %s5735_s17, 32 }
  0x5f   :  { %s153_s28 = sshll.u32 %s5113_s25, 4  ;;  %p4799_p10 = scmp.ne.s32.totalorder %s5735_s17, %s4798_s0  ;;  %s154_s28 = int_to_ptr.vmem [resolvable:$true] %s153_s28 }
  0x60   :  { %p4802_p11 = scmp.lt.u32.totalorder %s4798_s0, %s5735_s17 }
  0x62   :  { %p4804_p12 = pnand %p4802_p11, %p4799_p10 }
  0x64   :  { %4807 = shalt.err (!%p4804_p12)
}
  0x65   :  { %s4808_s12 = scalar_lea.vmem %s154_s28, 32  ;;  %p4813_p0 = scmp.lt.s32.totalorder %s154_s28, %s154_s28 }
  0x66   :  { %p4809_p13 = scmp.ne.s32.totalorder %s154_s28, %s4808_s12  ;;  %p4814_p1 = scmp.lt.s32.totalorder %s4808_s12, %s4808_s12 }
  0x68   :  { %p4815_p2 = por %p4814_p1, %p4813_p0 }
  0x6a   :  { %p4816_p3 = pnand %p4815_p2, %p4809_p13 }
  0x6c   :  { %4819 = shalt.err (!%p4816_p3)
}
  0x6d   :  { %s5114_s6 = smov 1   ;;  %s5115_s27 = smov [#allocation17]  }
  0x6e   :  { %159 = dma.hbm_to_vmem [thread:$0]  %s5735_s17, 32, %s154_s28, [#allocation15], %s5760_s11, %s5760_s11, %s5114_s6  }
  0x6f   :  { %s177_s7 = sshll.u32 %s5115_s27, 4  ;;  %s5116_s4 = smov [#allocation20]   ;;  %s178_s7 = int_to_ptr.vmem [resolvable:$true] %s177_s7 }
  0x70   :  { %s201_s25 = sshll.u32 %s5116_s4, 4  ;;  %s4820_s12 = scalar_lea.hbm %s5737_s19, 32  ;;  %s202_s25 = int_to_ptr.vmem [resolvable:$true] %s201_s25 }
  0x71   :  { %p4821_p4 = scmp.ne.s32.totalorder %s5737_s19, %s4820_s12  ;;  %p4824_p5 = scmp.lt.u32.totalorder %s4820_s12, %s5737_s19 }
  0x73   :  { %p4826_p6 = pnand %p4824_p5, %p4821_p4 }
  0x75   :  { %4829 = shalt.err (!%p4826_p6)
}
  0x76   :  { %s4830_s17 = scalar_lea.vmem %s178_s7, 32  ;;  %p4835_p8 = scmp.lt.s32.totalorder %s178_s7, %s178_s7 }
  0x77   :  { %p4831_p7 = scmp.ne.s32.totalorder %s178_s7, %s4830_s17  ;;  %p4836_p9 = scmp.lt.s32.totalorder %s4830_s17, %s4830_s17 }
  0x79   :  { %p4837_p10 = por %p4836_p9, %p4835_p8 }
  0x7b   :  { %p4838_p11 = pnand %p4837_p10, %p4831_p7 }
  0x7d   :  { %4841 = shalt.err (!%p4838_p11)
}
  0x7e   :  { %183 = dma.hbm_to_vmem [thread:$0]  %s5737_s19, 32, %s178_s7, [#allocation18], %s5760_s11, %s5760_s11, %s5114_s6  }
  0x7f   :  { %s4842_s4 = scalar_lea.hbm %s5739_s21, 10240 }
  0x80   :  { %p4843_p12 = scmp.ne.s32.totalorder %s5739_s21, %s4842_s4  ;;  %p4846_p13 = scmp.lt.u32.totalorder %s4842_s4, %s5739_s21 }
  0x82   :  { %p4848_p0 = pnand %p4846_p13, %p4843_p12 }
  0x84   :  { %4851 = shalt.err (!%p4848_p0)
}
  0x85   :  { %s4852_s29 = scalar_lea.vmem %s202_s25, 10240  ;;  %p4857_p2 = scmp.lt.s32.totalorder %s202_s25, %s202_s25 }
  0x86   :  { %p4853_p1 = scmp.ne.s32.totalorder %s202_s25, %s4852_s29  ;;  %p4858_p3 = scmp.lt.s32.totalorder %s4852_s29, %s4852_s29 }
  0x88   :  { %p4859_p4 = por %p4858_p3, %p4857_p2 }
  0x8a   :  { %p4860_p5 = pnand %p4859_p4, %p4853_p1 }
  0x8c   :  { %4863 = shalt.err (!%p4860_p5)
}
  0x8d   :  { %s5117_s19 = smov 640   ;;  %s5118_s7 = smov 40  }
  0x8e   :  { %207 = dma.hbm_to_vmem [thread:$0]  %s5739_s21, 10240, %s202_s25, [#allocation21], %s5117_s19, %s5117_s19, %s5118_s7  }
  0x8f   :  { %s5119_s17 = smov [#allocation2]   ;;  %s5120_s8 = smov [#allocation7]  }
  0x90   :  { %s51_s28 = sshll.u32 %s5119_s17, 4  ;;  %s79_s9 = sshll.u32 %s5120_s8, 4  ;;  %s52_s28 = int_to_ptr.vmem [resolvable:$true] %s51_s28  ;;  %s80_s9 = int_to_ptr.vmem [resolvable:$true] %s79_s9 }
  0x91   :  { %s5781_s30 = sld [smem:[#allocation39_spill]] }
  0x97   :  { %s4864_s10 = scalar_lea.hbm %s5781_s30, 4096 }
  0x98   :  { %p4865_p6 = scmp.ne.s32.totalorder %s5781_s30, %s4864_s10  ;;  %p4868_p7 = scmp.lt.u32.totalorder %s4864_s10, %s5781_s30 }
  0x9a   :  { %p4870_p8 = pnand %p4868_p7, %p4865_p6 }
  0x9c   :  { %4873 = shalt.err (!%p4870_p8)
}
  0x9d   :  { %s4874_s21 = scalar_lea.vmem %s52_s28, 4096  ;;  %p4879_p10 = scmp.lt.s32.totalorder %s52_s28, %s52_s28 }
  0x9e   :  { %p4875_p9 = scmp.ne.s32.totalorder %s52_s28, %s4874_s21  ;;  %p4880_p11 = scmp.lt.s32.totalorder %s4874_s21, %s4874_s21 }
  0xa0   :  { %p4881_p12 = por %p4880_p11, %p4879_p10 }
  0xa2   :  { %p4882_p13 = pnand %p4881_p12, %p4875_p9 }
  0xa4   :  { %4885 = shalt.err (!%p4882_p13)
}
  0xa5   :  { %57 = dma.hbm_to_vmem [thread:$0]  %s5781_s30, 4096, %s52_s28, [#allocation3], %s5109_s3, %s5109_s3, %s5110_s1  }
  0xa6   :  { %s5782_s2 = sld [smem:[#allocation43_spill]] }
  0xac   :  { %s4886_s5 = scalar_lea.hbm %s5782_s2, 2048 }
  0xad   :  { %p4887_p0 = scmp.ne.s32.totalorder %s5782_s2, %s4886_s5  ;;  %p4890_p1 = scmp.lt.u32.totalorder %s4886_s5, %s5782_s2 }
  0xaf   :  { %p4892_p2 = pnand %p4890_p1, %p4887_p0 }
  0xb1   :  { %4895 = shalt.err (!%p4892_p2)
}
  0xb2   :  { %s4896_s10 = scalar_lea.vmem %s80_s9, 2048  ;;  %p4901_p4 = scmp.lt.s32.totalorder %s80_s9, %s80_s9 }
  0xb3   :  { %p4897_p3 = scmp.ne.s32.totalorder %s80_s9, %s4896_s10  ;;  %p4902_p5 = scmp.lt.s32.totalorder %s4896_s10, %s4896_s10 }
  0xb5   :  { %p4903_p6 = por %p4902_p5, %p4901_p4 }
  0xb7   :  { %p4904_p7 = pnand %p4903_p6, %p4897_p3 }
  0xb9   :  { %4907 = shalt.err (!%p4904_p7)
}
  0xba   :  { %85 = dma.hbm_to_vmem [thread:$0]  %s5782_s2, 2048, %s80_s9, [#allocation6], %s5109_s3, %s5109_s3, %s5110_s1  }
  0xbb   :  { %s5121_s12 = smov [#allocation10]   ;;  %s5122_s29 = smov [#allocation13]  }
  0xbc   :  { %s107_s0 = sshll.u32 %s5121_s12, 4  ;;  %s135_s21 = sshll.u32 %s5122_s29, 4  ;;  %s108_s0 = int_to_ptr.vmem [resolvable:$true] %s107_s0  ;;  %s136_s21 = int_to_ptr.vmem [resolvable:$true] %s135_s21 }
  0xbd   :  { %s5783_s7 = sld [smem:[#allocation47_spill]] }
  0xc3   :  { %s4908_s11 = scalar_lea.hbm %s5783_s7, 2048 }
  0xc4   :  { %p4909_p8 = scmp.ne.s32.totalorder %s5783_s7, %s4908_s11  ;;  %p4912_p9 = scmp.lt.u32.totalorder %s4908_s11, %s5783_s7 }
  0xc6   :  { %p4914_p10 = pnand %p4912_p9, %p4909_p8 }
  0xc8   :  { %4917 = shalt.err (!%p4914_p10)
}
  0xc9   :  { %s4918_s9 = scalar_lea.vmem %s108_s0, 2048  ;;  %p4923_p12 = scmp.lt.s32.totalorder %s108_s0, %s108_s0 }
  0xca   :  { %p4919_p11 = scmp.ne.s32.totalorder %s108_s0, %s4918_s9  ;;  %p4924_p13 = scmp.lt.s32.totalorder %s4918_s9, %s4918_s9 }
  0xcc   :  { %p4925_p0 = por %p4924_p13, %p4923_p12 }
  0xce   :  { %p4926_p1 = pnand %p4925_p0, %p4919_p11 }
  0xd0   :  { %4929 = shalt.err (!%p4926_p1)
}
  0xd1   :  { %s5784_s2 = smov 8   ;;  %s5785_s4 = smov 128  }
  0xd2   :  { %113 = dma.hbm_to_vmem [thread:$0]  %s5783_s7, 2048, %s108_s0, [#allocation9], %s5785_s4, %s5785_s4, %s5784_s2  }
  0xd3   :  { %s4930_s29 = scalar_lea.hbm %s5731_s13, 8192 }
  0xd4   :  { %p4931_p2 = scmp.ne.s32.totalorder %s5731_s13, %s4930_s29  ;;  %p4934_p3 = scmp.lt.u32.totalorder %s4930_s29, %s5731_s13 }
  0xd6   :  { %p4936_p4 = pnand %p4934_p3, %p4931_p2 }
  0xd8   :  { %4939 = shalt.err (!%p4936_p4)
}
  0xd9   :  { %s4940_s17 = scalar_lea.vmem %s136_s21, 8192  ;;  %p4945_p6 = scmp.lt.s32.totalorder %s136_s21, %s136_s21 }
  0xda   :  { %p4941_p5 = scmp.ne.s32.totalorder %s136_s21, %s4940_s17  ;;  %p4946_p7 = scmp.lt.s32.totalorder %s4940_s17, %s4940_s17 }
  0xdc   :  { %p4947_p8 = por %p4946_p7, %p4945_p6 }
  0xde   :  { %p4948_p9 = pnand %p4947_p8, %p4941_p5 }
  0xe0   :  { %4951 = shalt.err (!%p4948_p9)
}
  0xe1   :  { %141 = dma.hbm_to_vmem [thread:$0]  %s5731_s13, 8192, %s136_s21, [#allocation12], %s5109_s3, %s5109_s3, %s5110_s1  }
  0xe2   :  { %s5123_s8 = smov [#allocation16]   ;;  %s5124_s9 = smov [#allocation19]  }
  0xe3   :  { %s165_s27 = sshll.u32 %s5123_s8, 4  ;;  %s189_s2 = sshll.u32 %s5124_s9, 4  ;;  %s166_s27 = int_to_ptr.vmem [resolvable:$true] %s165_s27  ;;  %s190_s2 = int_to_ptr.vmem [resolvable:$true] %s189_s2 }
  0xe4   :  { %s4952_s28 = scalar_lea.hbm %s5736_s18, 32 }
  0xe5   :  { %p4953_p10 = scmp.ne.s32.totalorder %s5736_s18, %s4952_s28  ;;  %p4956_p11 = scmp.lt.u32.totalorder %s4952_s28, %s5736_s18 }
  0xe7   :  { %p4958_p12 = pnand %p4956_p11, %p4953_p10 }
  0xe9   :  { %4961 = shalt.err (!%p4958_p12)
}
  0xea   :  { %s4962_s13 = scalar_lea.vmem %s166_s27, 32  ;;  %p4967_p0 = scmp.lt.s32.totalorder %s166_s27, %s166_s27 }
  0xeb   :  { %p4963_p13 = scmp.ne.s32.totalorder %s166_s27, %s4962_s13  ;;  %p4968_p1 = scmp.lt.s32.totalorder %s4962_s13, %s4962_s13 }
  0xed   :  { %p4969_p2 = por %p4968_p1, %p4967_p0 }
  0xef   :  { %p4970_p3 = pnand %p4969_p2, %p4963_p13 }
  0xf1   :  { %4973 = shalt.err (!%p4970_p3)
}
  0xf2   :  { %s5786_s3 = smov 16   ;;  %s4974_s5 = scalar_lea.hbm %s5738_s20, 32 }
  0xf3   :  { %171 = dma.hbm_to_vmem [thread:$0]  %s5736_s18, 32, %s166_s27, [#allocation15], %s5786_s3, %s5786_s3, %s5114_s6  }
  0xf4   :  { %p4975_p4 = scmp.ne.s32.totalorder %s5738_s20, %s4974_s5  ;;  %p4978_p5 = scmp.lt.u32.totalorder %s4974_s5, %s5738_s20 }
  0xf6   :  { %p4980_p6 = pnand %p4978_p5, %p4975_p4 }
  0xf8   :  { %4983 = shalt.err (!%p4980_p6)
}
  0xf9   :  { %s4984_s9 = scalar_lea.vmem %s190_s2, 32  ;;  %p4989_p8 = scmp.lt.s32.totalorder %s190_s2, %s190_s2 }
  0xfa   :  { %p4985_p7 = scmp.ne.s32.totalorder %s190_s2, %s4984_s9  ;;  %p4990_p9 = scmp.lt.s32.totalorder %s4984_s9, %s4984_s9 }
  0xfc   :  { %p4991_p10 = por %p4990_p9, %p4989_p8 }
  0xfe   :  { %p4992_p11 = pnand %p4991_p10, %p4985_p7 }
 0x100   :  { %4995 = shalt.err (!%p4992_p11)
}
 0x101   :  { %195 = dma.hbm_to_vmem [thread:$0]  %s5738_s20, 32, %s190_s2, [#allocation18], %s5786_s3, %s5786_s3, %s5114_s6  }
 0x102   :  { %s5125_s4 = smov [#allocation22]   ;;  %s5126_s28 = smov [#allocation23]  }
 0x103   :  { %s216_s10 = sshll.u32 %s5125_s4, 4  ;;  %s226_s30 = sshll.u32 %s5126_s28, 4  ;;  %s217_s10 = int_to_ptr.vmem [resolvable:$true] %s216_s10  ;;  %s227_s30 = int_to_ptr.vmem [resolvable:$true] %s226_s30 }
 0x104   :  { %s4996_s25 = scalar_lea.hbm %s5741_s23, 96 }
 0x105   :  { %p4997_p12 = scmp.ne.s32.totalorder %s5741_s23, %s4996_s25  ;;  %p5000_p13 = scmp.lt.u32.totalorder %s4996_s25, %s5741_s23 }
 0x107   :  { %p5002_p0 = pnand %p5000_p13, %p4997_p12 }
 0x109   :  { %5005 = shalt.err (!%p5002_p0)
}
 0x10a   :  { %s5006_s20 = scalar_lea.vmem %s217_s10, 96  ;;  %p5011_p2 = scmp.lt.s32.totalorder %s217_s10, %s217_s10 }
 0x10b   :  { %p5007_p1 = scmp.ne.s32.totalorder %s217_s10, %s5006_s20  ;;  %p5012_p3 = scmp.lt.s32.totalorder %s5006_s20, %s5006_s20 }
 0x10d   :  { %p5013_p4 = por %p5012_p3, %p5011_p2 }
 0x10f   :  { %p5014_p5 = pnand %p5013_p4, %p5007_p1 }
 0x111   :  { %5017 = shalt.err (!%p5014_p5)
}
 0x112   :  { %219 = dma.hbm_to_vmem [thread:$0]  %s5741_s23, 96, %s217_s10, [#allocation21]  }
 0x113   :  { %s5018_s5 = scalar_lea.hbm %s5742_s24, 16 }
 0x114   :  { %p5019_p6 = scmp.ne.s32.totalorder %s5742_s24, %s5018_s5  ;;  %p5022_p7 = scmp.lt.u32.totalorder %s5018_s5, %s5742_s24 }
 0x116   :  { %p5024_p8 = pnand %p5022_p7, %p5019_p6 }
 0x118   :  { %5027 = shalt.err (!%p5024_p8)
}
 0x119   :  { %s5028_s9 = scalar_lea.vmem %s227_s30, 16  ;;  %s5032_s18 = scalar_lea.vmem %s227_s30, 32 }
 0x11a   :  { %p5029_p9 = scmp.ne.s32.totalorder %s227_s30, %s5028_s9  ;;  %p5033_p10 = scmp.lt.s32.totalorder %s227_s30, %s227_s30 }
 0x11b   :  { %p5034_p11 = scmp.lt.s32.totalorder %s5032_s18, %s5028_s9 }
 0x11d   :  { %p5035_p12 = por %p5034_p11, %p5033_p10 }
 0x11f   :  { %p5036_p13 = pnand %p5035_p12, %p5029_p9 }
 0x121   :  { %5039 = shalt.err (!%p5036_p13)
}
 0x122   :  { %229 = dma.hbm_to_vmem [thread:$0]  %s5742_s24, 16, %s227_s30, [#allocation24]  }
 0x123   :  { %5084 = dma.done.wait [#allocation3], 4096  }
 0x124   :  { %5085 = vsyncadd [#allocation3], 4294963200 }
 0x125   :  { %5086 = dma.done.wait [#allocation6], 4096  }
 0x126   :  { %5087 = vsyncadd [#allocation6], 4294963200 }
 0x127   :  { %5088 = dma.done.wait [#allocation9], 4096  }
 0x128   :  { %5089 = vsyncadd [#allocation9], 4294963200 }
 0x129   :  { %5090 = dma.done.wait [#allocation12], 16384  }
 0x12a   :  { %5091 = vsyncadd [#allocation12], 4294950912 }
 0x12b   :  { %5092 = dma.done.wait [#allocation15], 64  }
 0x12c   :  { %5093 = vsyncadd [#allocation15], 4294967232 }
 0x12d   :  { %5094 = dma.done.wait [#allocation18], 64  }
 0x12e   :  { %5095 = vsyncadd [#allocation18], 4294967232 }
 0x12f   :  { %5096 = dma.done.wait [#allocation21], 10336  }
 0x130   :  { %5097 = vsyncadd [#allocation21], 4294956960 }
 0x131   :  { %5098 = dma.done.wait [#allocation24], 16  }
 0x132   :  { %5099 = vsyncadd [#allocation24], 4294967280  ;;  %v4314_v0 = vld [vmem:[#allocation2 + $0x40] sm:$0xff]   ;;  %v4318_v4 = vld [vmem:[#allocation2 + $0x48] sm:$0xff]   ;;  %s5787_s10 = sld [smem:[#allocation38_spill]]  ;;  %v5127_v57 = vmov 0  }
 0x133   :  { %v4315_v1 = vld [vmem:[#allocation2 + $0xc0] sm:$0xff]   ;;  %4074 = vmatprep.subr.bf16.mxu0 %v4314_v0  ;;  %v4319_v5 = vld [vmem:[#allocation2 + $0xc8] sm:$0xff]   ;;  %v4322_v8 = vld [vmem:[#allocation2 + $0x50] sm:$0xff]   ;;  %s5788_s19 = sld [smem:[#allocation40_spill]]  ;;  %s5789_s2 = sld [smem:[#allocation42_spill]]  ;;  %vm5129_vm0 = vmmov 0  }
 0x134   :  { %v4316_v2 = vld [vmem:[#allocation2] sm:$0xff]   ;;  %4096 = vmatprep.subr.bf16.mxu1 %v4315_v1  ;;  %v4320_v6 = vld [vmem:[#allocation2 + $0x8] sm:$0xff]   ;;  %v4323_v9 = vld [vmem:[#allocation2 + $0xd0] sm:$0xff]   ;;  %s5790_s5 = sld [smem:[#allocation48_spill]]  ;;  %s5791_s7 = sld [smem:[#allocation44_spill]] }
 0x135   :  { %v4317_v3 = vld [vmem:[#allocation2 + $0x80] sm:$0xff]   ;;  %4075 = vmatpush3.bf16.msra.mxu0 %v4316_v2  ;;  %v4321_v7 = vld [vmem:[#allocation2 + $0x88] sm:$0xff]   ;;  %v4324_v10 = vld [vmem:[#allocation2 + $0x10] sm:$0xff]   ;;  %s5792_s18 = sld [smem:[#allocation46_spill]]  ;;  %s5793_s30 = sld [smem:[#allocation50_spill]] }
 0x136   :  { %4097 = vmatpush3.bf16.msra.mxu1 %v4317_v3  ;;  %4076 = vmatprep.subr.bf16.mxu0 %v4318_v4  ;;  %v4325_v11 = vld [vmem:[#allocation2 + $0x90] sm:$0xff]   ;;  %v4326_v12 = vld [vmem:[#allocation2 + $0x58] sm:$0xff]   ;;  %v4330_v16 = vld [vmem:[#allocation2 + $0x60] sm:$0xff]  }
 0x137   :  { %4098 = vmatprep.subr.bf16.mxu1 %v4319_v5  ;;  %v4327_v13 = vld [vmem:[#allocation2 + $0xd8] sm:$0xff]   ;;  %v4331_v17 = vld [vmem:[#allocation2 + $0xe0] sm:$0xff]   ;;  %v4334_v20 = vld [vmem:[#allocation2 + $0x68] sm:$0xff]  }
 0x138   :  { %v4328_v14 = vld [vmem:[#allocation2 + $0x18] sm:$0xff]   ;;  %v4332_v18 = vld [vmem:[#allocation2 + $0x20] sm:$0xff]   ;;  %v4335_v21 = vld [vmem:[#allocation2 + $0xe8] sm:$0xff]  }
 0x139   :  { %4077 = vmatpush3.bf16.msra.mxu0 %v4320_v6  ;;  %v4329_v15 = vld [vmem:[#allocation2 + $0x98] sm:$0xff]   ;;  %v4333_v19 = vld [vmem:[#allocation2 + $0xa0] sm:$0xff]   ;;  %v4336_v22 = vld [vmem:[#allocation2 + $0x28] sm:$0xff]  }
 0x13a   :  { %4099 = vmatpush3.bf16.msra.mxu1 %v4321_v7  ;;  %4078 = vmatprep.subr.bf16.mxu0 %v4322_v8  ;;  %v4337_v23 = vld [vmem:[#allocation2 + $0xa8] sm:$0xff]   ;;  %v4338_v24 = vld [vmem:[#allocation2 + $0x70] sm:$0xff]   ;;  %v4342_v28 = vld [vmem:[#allocation2 + $0x78] sm:$0xff]  }
 0x13b   :  { %4100 = vmatprep.subr.bf16.mxu1 %v4323_v9  ;;  %v4339_v25 = vld [vmem:[#allocation2 + $0xf0] sm:$0xff]   ;;  %v4343_v29 = vld [vmem:[#allocation2 + $0xf8] sm:$0xff]   ;;  %v274_v32 = vld [vmem:[%s5787_s10 + $0x8] sm:$0xff] }
 0x13c   :  { %v4340_v26 = vld [vmem:[#allocation2 + $0x30] sm:$0xff]   ;;  %v4344_v30 = vld [vmem:[#allocation2 + $0x38] sm:$0xff]   ;;  %v273_v34 = vld [vmem:[%s5787_s10] sm:$0xff]  ;;  %v343_v35 = vpack.c.bf16 %v274_v32, %v274_v32 }
 0x13d   :  { %4079 = vmatpush3.bf16.msra.mxu0 %v4324_v10  ;;  %v4341_v27 = vld [vmem:[#allocation2 + $0xb0] sm:$0xff]   ;;  %v4345_v31 = vld [vmem:[#allocation2 + $0xb8] sm:$0xff]   ;;  %v342_v37 = vpack.c.bf16 %v273_v34, %v273_v34  ;;  %v4346_v40 = vld [vmem:[#allocation5] ss:$8 sps:$4 sm:$0xff]  }
 0x13e   :  { %4101 = vmatpush3.bf16.msra.mxu1 %v4325_v11  ;;  %4080 = vmatprep.subr.bf16.mxu0 %v4326_v12  ;;  %v276_v33 = vld [vmem:[%s5787_s10 + $0x18] sm:$0xff]  ;;  %v275_v38 = vld [vmem:[%s5787_s10 + $0x10] sm:$0xff]  ;;  %v4348_v41 = vld [vmem:[#allocation5 + $0x4] ss:$8 sps:$4 sm:$0xff]  }
 0x13f   :  { %4102 = vmatprep.subr.bf16.mxu1 %v4327_v13  ;;  %v345_v36 = vpack.c.bf16 %v276_v33, %v276_v33  ;;  %v344_v39 = vpack.c.bf16 %v275_v38, %v275_v38  ;;  %576 = vmatprep.mubr.bf16.mxu0 %v343_v35  ;;  %v4351_v42 = vld [vmem:[#allocation5 + $0x14] ss:$8 sps:$4 sm:$0xff]   ;;  %v4349_v43 = vld [vmem:[#allocation5 + $0x10] ss:$8 sps:$4 sm:$0xff]   ;;  %v4354_v44 = vld [vmem:[#allocation5 + $0x24] ss:$8 sps:$4 sm:$0xff]  }
 0x140   :  { %v4352_v45 = vld [vmem:[#allocation5 + $0x20] ss:$8 sps:$4 sm:$0xff]   ;;  %v4357_v46 = vld [vmem:[#allocation5 + $0x34] ss:$8 sps:$4 sm:$0xff]   ;;  %v4355_v47 = vld [vmem:[#allocation5 + $0x30] ss:$8 sps:$4 sm:$0xff]  }
 0x141   :  { %4081 = vmatpush3.bf16.msra.mxu0 %v4328_v14  ;;  %616 = vmatprep.mubr.bf16.mxu1 %v345_v36  ;;  %v4360_v48 = vld [vmem:[#allocation5 + $0x44] ss:$8 sps:$4 sm:$0xff]   ;;  %v4358_v49 = vld [vmem:[#allocation5 + $0x40] ss:$8 sps:$4 sm:$0xff]   ;;  %v4363_v50 = vld [vmem:[#allocation5 + $0x54] ss:$8 sps:$4 sm:$0xff]  }
 0x142   :  { %4103 = vmatpush3.bf16.msra.mxu1 %v4329_v15  ;;  %4082 = vmatprep.subr.bf16.mxu0 %v4330_v16  ;;  %v4361_v51 = vld [vmem:[#allocation5 + $0x50] ss:$8 sps:$4 sm:$0xff]   ;;  %v4366_v52 = vld [vmem:[#allocation5 + $0x64] ss:$8 sps:$4 sm:$0xff]   ;;  %v4364_v53 = vld [vmem:[#allocation5 + $0x60] ss:$8 sps:$4 sm:$0xff]  }
 0x143   :  { %4104 = vmatprep.subr.bf16.mxu1 %v4331_v17  ;;  %v4369_v54 = vld [vmem:[#allocation5 + $0x74] ss:$8 sps:$4 sm:$0xff]   ;;  %v4367_v55 = vld [vmem:[#allocation5 + $0x70] ss:$8 sps:$4 sm:$0xff]   ;;  %v4372_v56 = vld [vmem:[#allocation10 + $0x4] ss:$8 sps:$4 sm:$0xff]  }
 0x144   :  { %v4394_v58 = vld [vmem:[#allocation7 + $0x40] sm:$0xff]   ;;  %v4396_v60 = vld [vmem:[#allocation7 + $0x48] sm:$0xff]   ;;  %v4398_v62 = vld [vmem:[#allocation7 + $0x50] sm:$0xff]  }
 0x145   :  { %4083 = vmatpush3.bf16.msra.mxu0 %v4332_v18  ;;  %v4395_v59 = vld [vmem:[#allocation7] sm:$0xff]   ;;  %v4397_v61 = vld [vmem:[#allocation7 + $0x8] sm:$0xff]   ;;  %v4399_v63 = vld [vmem:[#allocation7 + $0x10] sm:$0xff]  }
 0x146   :  { %4105 = vmatpush3.bf16.msra.mxu1 %v4333_v19  ;;  %4084 = vmatprep.subr.bf16.mxu0 %v4334_v20  ;;  %v4400_v0 = vld [vmem:[#allocation7 + $0x58] sm:$0xff]   ;;  %v4402_v2 = vld [vmem:[#allocation7 + $0x60] sm:$0xff]   ;;  %v4404_v4 = vld [vmem:[#allocation7 + $0x68] sm:$0xff]  }
 0x147   :  { %4106 = vmatprep.subr.bf16.mxu1 %v4335_v21  ;;  %v4401_v1 = vld [vmem:[#allocation7 + $0x18] sm:$0xff]   ;;  %v4403_v3 = vld [vmem:[#allocation7 + $0x20] sm:$0xff]   ;;  %v4405_v5 = vld [vmem:[#allocation7 + $0x28] sm:$0xff]  }
 0x148   :  { %v3745_v8 = vld [vmem:[%s5788_s19] ss:$0 sm:$0xff]  ;;  %v4375_v21 = vld [vmem:[#allocation10 + $0x14] ss:$8 sps:$4 sm:$0xff]   ;;  %v4391_v34 = vld [vmem:[#allocation10 + $0x70] ss:$8 sps:$4 sm:$0xff]  }
 0x149   :  { %4085 = vmatpush3.bf16.msra.mxu0 %v4336_v22  ;;  %v4370_v19 = vld [vmem:[#allocation10] ss:$8 sps:$4 sm:$0xff]   ;;  %v4373_v22 = vld [vmem:[#allocation10 + $0x10] ss:$8 sps:$4 sm:$0xff]   ;;  %v4393_v33 = vld [vmem:[#allocation10 + $0x74] ss:$8 sps:$4 sm:$0xff]  }
 0x14a   :  { %4107 = vmatpush3.bf16.msra.mxu1 %v4337_v23  ;;  %4086 = vmatprep.subr.bf16.mxu0 %v4338_v24  ;;  %v4378_v23 = vld [vmem:[#allocation10 + $0x24] ss:$8 sps:$4 sm:$0xff]   ;;  %v4376_v24 = vld [vmem:[#allocation10 + $0x20] ss:$8 sps:$4 sm:$0xff]   ;;  %v4406_v35 = vld [vmem:[#allocation7 + $0x70] sm:$0xff]  }
 0x14b   :  { %4108 = vmatprep.subr.bf16.mxu1 %v4339_v25  ;;  %v4381_v25 = vld [vmem:[#allocation10 + $0x34] ss:$8 sps:$4 sm:$0xff]   ;;  %v4388_v32 = vld [vmem:[#allocation10 + $0x60] ss:$8 sps:$4 sm:$0xff]  }
 0x14c   :  { %v4407_v36 = vld [vmem:[#allocation7 + $0x30] sm:$0xff]   ;;  %v4409_v38 = vld [vmem:[#allocation7 + $0x38] sm:$0xff]  }
 0x14d   :  { %4087 = vmatpush3.bf16.msra.mxu0 %v4340_v26  ;;  %v4379_v26 = vld [vmem:[#allocation10 + $0x30] ss:$8 sps:$4 sm:$0xff]  }
 0x14e   :  { %4109 = vmatpush3.bf16.msra.mxu1 %v4341_v27  ;;  %4088 = vmatprep.subr.bf16.mxu0 %v4342_v28  ;;  %v4384_v27 = vld [vmem:[#allocation10 + $0x44] ss:$8 sps:$4 sm:$0xff]   ;;  %v4382_v28 = vld [vmem:[#allocation10 + $0x40] ss:$8 sps:$4 sm:$0xff]  }
 0x14f   :  { %4110 = vmatprep.subr.bf16.mxu1 %v4343_v29  ;;  %v4387_v29 = vld [vmem:[#allocation10 + $0x54] ss:$8 sps:$4 sm:$0xff]  }
 0x151   :  { %4089 = vmatpush3.bf16.msra.mxu0 %v4344_v30  ;;  %v4385_v30 = vld [vmem:[#allocation10 + $0x50] ss:$8 sps:$4 sm:$0xff]  }
 0x152   :  { %4111 = vmatpush3.bf16.msra.mxu1 %v4345_v31  ;;  %733 = vmatprep.subr.bf16.mxu0 %v4348_v41  ;;  %v4390_v31 = vld [vmem:[#allocation10 + $0x64] ss:$8 sps:$4 sm:$0xff]  }
 0x153   :  { %4118 = vmatprep.subr.bf16.mxu1 %v4394_v58 }
 0x154   :  { %577 = vmatmul.mubr.bf16.vlgmr.msra.gmra.mrb[0].mxu0 %v342_v37  ;;  %v4408_v37 = vld [vmem:[#allocation7 + $0x78] sm:$0xff]  }
 0x155   :  { %617 = vmatmul.mubr.bf16.vlgmr.msra.gmra.mrb[0].mxu1 %v344_v39  ;;  %734 = vmatpush1.bf16.msra.mxu0 %v4346_v40  ;;  %v5128_v39 = vmov 0.0   ;;  %v643_v40 = vlaneseq }
 0x156   :  { %735 = vmatprep.subr.bf16.mxu0 %v4351_v42  ;;  %765 = vmatprep.mubr.bf16.mxu0 %v5127_v57 }
 0x157   :  { %4119 = vmatpush3.bf16.msra.mxu1 %v4395_v59  ;;  %v5496_v41 = vshrl.u32 %v643_v40, 7  ;;  %v4411_v59 = vld [vmem:[#allocation8 + $0x8] sm:$0xff]  }
 0x158   :  { %4120 = vmatprep.subr.bf16.mxu1 %v4396_v60  ;;  %v4412_v60 = vld [vmem:[#allocation8 + $0x10] sm:$0xff]  }
 0x159   :  { %736 = vmatpush1.bf16.msra.mxu0 %v4349_v43  ;;  %v5499_v42 = vsub.s32 0, %v5496_v41  ;;  %v641_v43 = vld [vmem:[%s5789_s2] sm:$0x3] }
 0x15a   :  { %737 = vmatprep.subr.bf16.mxu0 %v4354_v44  ;;  %v5505_v44 = vsub.s32 1, %v5496_v41 }
 0x15b   :  { %4121 = vmatpush3.bf16.msra.mxu1 %v4397_v61  ;;  %v4413_v61 = vld [vmem:[#allocation8 + $0x18] sm:$0xff]  }
 0x15c   :  { %4122 = vmatprep.subr.bf16.mxu1 %v4398_v62  ;;  %v4414_v62 = vld [vmem:[#allocation8 + $0x20] sm:$0xff]  }
 0x15d   :  { %738 = vmatpush1.bf16.msra.mxu0 %v4352_v45  ;;  %v646_v45 = vrot.slane %v641_v43, %v5499_v42 }
 0x15e   :  { %739 = vmatprep.subr.bf16.mxu0 %v4357_v46  ;;  %v650_v46 = vrot.slane %v641_v43, %v5505_v44  ;;  %v3836_v43 = vld [vmem:[%s5733_s15] ss:$0 sm:$0xff] }
 0x15f   :  { %4123 = vmatpush3.bf16.msra.mxu1 %v4399_v63  ;;  %v4415_v63 = vld [vmem:[#allocation8 + $0x28] sm:$0xff]  }
 0x160   :  { %4124 = vmatprep.subr.bf16.mxu1 %v4400_v0  ;;  %v969_v0 = vld [vmem:[%s5790_s5] sm:$0x3] }
 0x161   :  { %740 = vmatpush1.bf16.msra.mxu0 %v4355_v47 }
 0x162   :  { %741 = vmatprep.subr.bf16.mxu0 %v4360_v48 }
 0x163   :  { %4125 = vmatpush3.bf16.msra.mxu1 %v4401_v1  ;;  %v978_v1 = vrot.slane %v969_v0, %v5505_v44 }
 0x164   :  { %4126 = vmatprep.subr.bf16.mxu1 %v4402_v2 }
 0x165   :  { %742 = vmatpush1.bf16.msra.mxu0 %v4358_v49 }
 0x166   :  { %743 = vmatprep.subr.bf16.mxu0 %v4363_v50 }
 0x167   :  { %4127 = vmatpush3.bf16.msra.mxu1 %v4403_v3 }
 0x168   :  { %4128 = vmatprep.subr.bf16.mxu1 %v4404_v4 }
 0x169   :  { %744 = vmatpush1.bf16.msra.mxu0 %v4361_v51 }
 0x16a   :  { %745 = vmatprep.subr.bf16.mxu0 %v4366_v52 }
 0x16b   :  { %4129 = vmatpush3.bf16.msra.mxu1 %v4405_v5 }
 0x16c   :  { %4130 = vmatprep.subr.bf16.mxu1 %v4406_v35 }
 0x16d   :  { %746 = vmatpush1.bf16.msra.mxu0 %v4364_v53 }
 0x16e   :  { %747 = vmatprep.subr.bf16.mxu0 %v4369_v54 }
 0x16f   :  { %4131 = vmatpush3.bf16.msra.mxu1 %v4407_v36 }
 0x170   :  { %4132 = vmatprep.subr.bf16.mxu1 %v4408_v37 }
 0x171   :  { %748 = vmatpush1.bf16.msra.mxu0 %v4367_v55 }
 0x172   :  { %1061 = vmatprep.subr.bf16.mxu0 %v4372_v56  ;;  %v4410_v56 = vld [vmem:[#allocation8] sm:$0xff]  }
 0x173   :  { %4133 = vmatpush3.bf16.msra.mxu1 %v4409_v38 }
 0x174   :  { %4246 = vmatprep.subr.bf16.mxu1 %v5128_v39 }
 0x227   :  { %v4090_v6 = vpop.f32.mrb[0].mxu0 }
 0x228   :  { %v4112_v7 = vpop.f32.mrb[0].mxu1  ;;  %v4091_v9 = vpop.f32.mrb[1].mxu0 }
 0x229   :  { %v4113_v10 = vpop.f32.mrb[1].mxu1  ;;  %v4092_v11 = vadd.f32 %v4091_v9, %v4090_v6  ;;  %v4093_v13 = vpop.f32.mrb[2].mxu0 }
 0x22a   :  { %v4114_v12 = vadd.f32 %v4113_v10, %v4112_v7  ;;  %v4115_v14 = vpop.f32.mrb[2].mxu1  ;;  %v4094_v15 = vpop.f32.mrb[3].mxu0  ;;  %v4416_v7 = vld [vmem:[#allocation8 + $0x30] sm:$0xff]   ;;  %v3794_v10 = vld [vmem:[%s5791_s7] ss:$0 sm:$0xff] }
 0x22b   :  { %v4116_v16 = vpop.f32.mrb[3].mxu1  ;;  %v579_v17 = vadd.f32 %v4092_v11, %v3745_v8  ;;  %v4417_v8 = vld [vmem:[#allocation8 + $0x38] sm:$0xff]  }
 0x22d   :  { %v619_v18 = vadd.f32 %v4114_v12, %v579_v17  ;;  %v3827_v17 = vld [vmem:[%s5792_s18] ss:$0 sm:$0xff] }
 0x22f   :  { %v624_v20 = vpack.c.bf16 %v619_v18, %v619_v18 }
 0x231   :  { %766 = vmatmul.mubr.bf16.vlgmr.msra.gmra.mrb[4].mxu0 %v624_v20 }
 0x232   :  { %1062 = vmatpush1.bf16.msra.mxu0 %v4370_v19  ;;  %1093 = vmatprep.mubr.bf16.mxu0 %v5127_v57 }
 0x233   :  { %1063 = vmatprep.subr.bf16.mxu0 %v4375_v21 }
 0x236   :  { %1064 = vmatpush1.bf16.msra.mxu0 %v4373_v22 }
 0x237   :  { %1065 = vmatprep.subr.bf16.mxu0 %v4378_v23 }
 0x23a   :  { %1066 = vmatpush1.bf16.msra.mxu0 %v4376_v24 }
 0x23b   :  { %1067 = vmatprep.subr.bf16.mxu0 %v4381_v25  ;;  %v4418_v25 = vld [vmem:[#allocation11] ss:$16 sps:$4 sm:$0xff]  }
 0x23e   :  { %1068 = vmatpush1.bf16.msra.mxu0 %v4379_v26  ;;  %v4420_v26 = vld [vmem:[#allocation11 + $0x4] ss:$16 sps:$4 sm:$0xff]  }
 0x23f   :  { %1069 = vmatprep.subr.bf16.mxu0 %v4384_v27  ;;  %v4421_v27 = vld [vmem:[#allocation11 + $0x8] ss:$16 sps:$4 sm:$0xff]  }
 0x242   :  { %1070 = vmatpush1.bf16.msra.mxu0 %v4382_v28  ;;  %v4423_v28 = vld [vmem:[#allocation11 + $0xc] ss:$16 sps:$4 sm:$0xff]  }
 0x243   :  { %1071 = vmatprep.subr.bf16.mxu0 %v4387_v29 }
 0x246   :  { %1072 = vmatpush1.bf16.msra.mxu0 %v4385_v30 }
 0x247   :  { %1073 = vmatprep.subr.bf16.mxu0 %v4390_v31 }
 0x24a   :  { %1074 = vmatpush1.bf16.msra.mxu0 %v4388_v32 }
 0x24b   :  { %1075 = vmatprep.subr.bf16.mxu0 %v4393_v33 }
 0x24e   :  { %1076 = vmatpush1.bf16.msra.mxu0 %v4391_v34 }
 0x24f   :  { %1491 = vmatprep.subr.bf16.mxu0 %v4420_v26 }
 0x251   :  { %1094 = vmatmul.mubr.bf16.vlgmr.msra.gmra.mrb[8].mxu0 %v624_v20 }
 0x252   :  { %1523 = vmatprep.mubr.bf16.mxu0 %v5127_v57  ;;  %1492 = vmatpush1.bf16.msra.mxu0 %v4418_v25 }
 0x304   :  { %v767_v47 = vpop.f32.mrb[4].mxu0 }
 0x305   :  { %v768_v48 = vadd.f32 %v767_v47, %v646_v45  ;;  %v769_v49 = vpop.f32.mrb[5].mxu0  ;;  %v974_v45 = vrot.slane %v969_v0, %v5499_v42  ;;  %v3837_v47 = vld [vmem:[%s5734_s16] ss:$0 sm:$0xff] }
 0x306   :  { %v770_v50 = vadd.f32 %v769_v49, %v650_v46  ;;  %v771_v51 = vpop.f32.mrb[6].mxu0  ;;  %v4436_v0 = vld [vmem:[#allocation11 + $0x60] ss:$16 sps:$4 sm:$0xff]  }
 0x307   :  { %v774_v52 = vmax.f32 %v768_v48, 0.0  ;;  %v772_v53 = vpop.f32.mrb[7].mxu0 }
 0x308   :  { %v775_v54 = vmax.f32 %v770_v50, 0.0  ;;  %v4424_v53 = vld [vmem:[#allocation11 + $0x20] ss:$16 sps:$4 sm:$0xff]  }
 0x309   :  { %v809_v58 = vpack.c.bf16 %v774_v52, %v774_v52 }
 0x30a   :  { %v810_v55 = vpack.c.bf16 %v775_v54, %v775_v54  ;;  %v4426_v54 = vld [vmem:[#allocation11 + $0x24] ss:$16 sps:$4 sm:$0xff]  }
 0x30b   :  { %1493 = vmatprep.subr.bf16.mxu0 %v4426_v54  ;;  %v4480_v54 = vld [vmem:[#allocation13 + $0x18] sm:$0xff]  }
 0x30c   :  { %945 = vmatprep.mubr.bf16.mxu1 %v810_v55  ;;  %v4427_v55 = vld [vmem:[#allocation11 + $0x28] ss:$16 sps:$4 sm:$0xff]   ;;  %1494 = vmatpush1.bf16.msra.mxu0 %v4424_v53 }
 0x30d   :  { %946 = vmatmul.mubr.bf16.vlgmr.msra.gmra.mrb[4].mxu1 %v809_v58  ;;  %v4432_v58 = vld [vmem:[#allocation11 + $0x44] ss:$16 sps:$4 sm:$0xff]   ;;  %v4479_v53 = vld [vmem:[#allocation13 + $0xd8] sm:$0xff]  }
 0x30e   :  { %4247 = vmatpush3.bf16.msra.mxu1 %v4410_v56  ;;  %4262 = vmatprep.mubr.msk.bf16.mxu1 %vm5129_vm0, %v5128_v39  ;;  %v4429_v56 = vld [vmem:[#allocation11 + $0x2c] ss:$16 sps:$4 sm:$0xff]  }
 0x30f   :  { %4248 = vmatprep.subr.bf16.mxu1 %v5128_v39  ;;  %1495 = vmatprep.subr.bf16.mxu0 %v4432_v58  ;;  %v4483_v58 = vld [vmem:[#allocation13 + $0xe0] sm:$0xff]  }
 0x312   :  { %4249 = vmatpush3.bf16.msra.mxu1 %v4411_v59  ;;  %v4435_v59 = vld [vmem:[#allocation11 + $0x4c] ss:$16 sps:$4 sm:$0xff]  }
 0x313   :  { %4250 = vmatprep.subr.bf16.mxu1 %v5128_v39 }
 0x316   :  { %4251 = vmatpush3.bf16.msra.mxu1 %v4412_v60  ;;  %v4430_v60 = vld [vmem:[#allocation11 + $0x40] ss:$16 sps:$4 sm:$0xff]  }
 0x317   :  { %4252 = vmatprep.subr.bf16.mxu1 %v5128_v39  ;;  %1496 = vmatpush1.bf16.msra.mxu0 %v4430_v60  ;;  %v4485_v60 = vld [vmem:[#allocation13 + $0xa0] sm:$0xff]  }
 0x31a   :  { %4253 = vmatpush3.bf16.msra.mxu1 %v4413_v61  ;;  %v4433_v61 = vld [vmem:[#allocation11 + $0x48] ss:$16 sps:$4 sm:$0xff]  }
 0x31b   :  { %4254 = vmatprep.subr.bf16.mxu1 %v5128_v39 }
 0x31e   :  { %4255 = vmatpush3.bf16.msra.mxu1 %v4414_v62  ;;  %v4438_v62 = vld [vmem:[#allocation11 + $0x64] ss:$16 sps:$4 sm:$0xff]  }
 0x31f   :  { %4256 = vmatprep.subr.bf16.mxu1 %v5128_v39  ;;  %1497 = vmatprep.subr.bf16.mxu0 %v4438_v62  ;;  %v4487_v62 = vld [vmem:[#allocation13 + $0xe8] sm:$0xff]  }
 0x320   :  { %1498 = vmatpush1.bf16.msra.mxu0 %v4436_v0  ;;  %v4489_v0 = vld [vmem:[#allocation13 + $0xa8] sm:$0xff]  }
 0x322   :  { %4257 = vmatpush3.bf16.msra.mxu1 %v4415_v63  ;;  %v4441_v63 = vld [vmem:[#allocation11 + $0x6c] ss:$16 sps:$4 sm:$0xff]  }
 0x323   :  { %4258 = vmatprep.subr.bf16.mxu1 %v5128_v39 }
 0x324   :  { %v1095_v2 = vpop.f32.mrb[8].mxu0 }
 0x325   :  { %v1097_v3 = vpop.f32.mrb[9].mxu0  ;;  %v1096_v49 = vadd.f32 %v1095_v2, %v974_v45  ;;  %v4444_v2 = vld [vmem:[#allocation11 + $0x84] ss:$16 sps:$4 sm:$0xff]   ;;  %v4471_v45 = vld [vmem:[#allocation13 + $0xc8] sm:$0xff]  }
 0x326   :  { %v5519_v4 = vadd.f32 %v1097_v3, %v978_v1  ;;  %v1099_v5 = vpop.f32.mrb[10].mxu0  ;;  %4259 = vmatpush3.bf16.msra.mxu1 %v4416_v7  ;;  %v4439_v1 = vld [vmem:[#allocation11 + $0x68] ss:$16 sps:$4 sm:$0xff]   ;;  %v4442_v3 = vld [vmem:[#allocation11 + $0x80] ss:$16 sps:$4 sm:$0xff]   ;;  %1499 = vmatprep.subr.bf16.mxu0 %v4444_v2 }
 0x327   :  { %v1100_v6 = vpop.f32.mrb[11].mxu0  ;;  %4260 = vmatprep.subr.bf16.mxu1 %v5128_v39  ;;  %v4447_v5 = vld [vmem:[#allocation11 + $0x8c] ss:$16 sps:$4 sm:$0xff]   ;;  %v4450_v7 = vld [vmem:[#allocation11 + $0xa4] ss:$16 sps:$4 sm:$0xff]   ;;  %1500 = vmatpush1.bf16.msra.mxu0 %v4442_v3 }
 0x328   :  { %v4445_v6 = vld [vmem:[#allocation11 + $0x88] ss:$16 sps:$4 sm:$0xff]   ;;  %1501 = vmatprep.subr.bf16.mxu0 %v4450_v7  ;;  %v4491_v2 = vld [vmem:[#allocation13 + $0xf0] sm:$0xff]  }
 0x329   :  { %v4492_v3 = vld [vmem:[#allocation13 + $0x30] sm:$0xff]   ;;  %v4495_v7 = vld [vmem:[#allocation13 + $0xf8] sm:$0xff]  }
 0x32a   :  { %4261 = vmatpush3.bf16.msra.mxu1 %v4417_v8  ;;  %v4453_v8 = vld [vmem:[#allocation11 + $0xac] ss:$16 sps:$4 sm:$0xff]  }
 0x32b   :  { %1532 = vmatprep.subr.bf16.mxu1 %v4423_v28 }
 0x3e0   :  { %v4134_v9 = vpop.f32.mrb[4].mxu1 }
 0x3e1   :  { %v4135_v11 = vpop.f32.mrb[5].mxu1 }
 0x3e2   :  { %v4136_v12 = vadd.f32 %v4135_v11, %v4134_v9  ;;  %v4137_v13 = vpop.f32.mrb[6].mxu1  ;;  %v4448_v9 = vld [vmem:[#allocation11 + $0xa0] ss:$16 sps:$4 sm:$0xff]   ;;  %v4456_v11 = vld [vmem:[#allocation11 + $0xc4] ss:$16 sps:$4 sm:$0xff]  }
 0x3e3   :  { %v4138_v14 = vpop.f32.mrb[7].mxu1  ;;  %1502 = vmatpush1.bf16.msra.mxu0 %v4448_v9  ;;  %v4454_v13 = vld [vmem:[#allocation11 + $0xc0] ss:$16 sps:$4 sm:$0xff]   ;;  %v4497_v9 = vld [vmem:[#allocation13 + $0xb8] sm:$0xff]  }
 0x3e4   :  { %v948_v15 = vadd.f32 %v4136_v12, %v3794_v10  ;;  %v4451_v10 = vld [vmem:[#allocation11 + $0xa8] ss:$16 sps:$4 sm:$0xff]   ;;  %v4459_v12 = vld [vmem:[#allocation11 + $0xcc] ss:$16 sps:$4 sm:$0xff]   ;;  %1503 = vmatprep.subr.bf16.mxu0 %v4456_v11  ;;  %v1308_v11 = vld [vmem:[%s5793_s30] sm:$0xf] }
 0x3e5   :  { %v4457_v14 = vld [vmem:[#allocation11 + $0xc8] ss:$16 sps:$4 sm:$0xff]  }
 0x3e6   :  { %v1119_v16 = vpack.c.bf16 %v948_v15, %v948_v15 }
 0x3e7   :  { %1504 = vmatpush1.bf16.msra.mxu0 %v4454_v13  ;;  %v1314_v13 = vrot.slane %v1308_v11, %v5499_v42 }
 0x3e8   :  { %4263 = vmatmul.mubr.bf16.vlgmr.msra.gmra.mrb[8].mxu1 %v1119_v16  ;;  %v4465_v16 = vld [vmem:[#allocation11 + $0xec] ss:$16 sps:$4 sm:$0xff]  }
 0x3e9   :  { %1564 = vmatprep.mubr.bf16.mxu1 %v5127_v57  ;;  %1533 = vmatpush1.bf16.msra.mxu1 %v4421_v27 }
 0x3ea   :  { %1534 = vmatprep.subr.bf16.mxu1 %v4429_v56  ;;  %v4482_v56 = vld [vmem:[#allocation13 + $0x60] sm:$0xff]  }
 0x3ed   :  { %1535 = vmatpush1.bf16.msra.mxu1 %v4427_v55  ;;  %v4481_v55 = vld [vmem:[#allocation13 + $0x98] sm:$0xff]  }
 0x3ee   :  { %1536 = vmatprep.subr.bf16.mxu1 %v4435_v59  ;;  %v4484_v59 = vld [vmem:[#allocation13 + $0x20] sm:$0xff]  }
 0x3f1   :  { %1537 = vmatpush1.bf16.msra.mxu1 %v4433_v61  ;;  %v4486_v61 = vld [vmem:[#allocation13 + $0x68] sm:$0xff]  }
 0x3f2   :  { %1538 = vmatprep.subr.bf16.mxu1 %v4441_v63  ;;  %v4488_v63 = vld [vmem:[#allocation13 + $0x28] sm:$0xff]  }
 0x3f5   :  { %1539 = vmatpush1.bf16.msra.mxu1 %v4439_v1  ;;  %v4490_v1 = vld [vmem:[#allocation13 + $0x70] sm:$0xff]  }
 0x3f6   :  { %1540 = vmatprep.subr.bf16.mxu1 %v4447_v5  ;;  %v4493_v5 = vld [vmem:[#allocation13 + $0xb0] sm:$0xff]  }
 0x3f9   :  { %1541 = vmatpush1.bf16.msra.mxu1 %v4445_v6  ;;  %v4494_v6 = vld [vmem:[#allocation13 + $0x78] sm:$0xff]  }
 0x3fa   :  { %1542 = vmatprep.subr.bf16.mxu1 %v4453_v8  ;;  %v4496_v8 = vld [vmem:[#allocation13 + $0x38] sm:$0xff]  }
 0x3fd   :  { %1543 = vmatpush1.bf16.msra.mxu1 %v4451_v10  ;;  %v5550_v10 = vsub.s32 2, %v5496_v41 }
 0x3fe   :  { %1544 = vmatprep.subr.bf16.mxu1 %v4459_v12  ;;  %v5556_v12 = vsub.s32 3, %v5496_v41 }
 0x401   :  { %1545 = vmatpush1.bf16.msra.mxu1 %v4457_v14  ;;  %v1322_v14 = vrot.slane %v1308_v11, %v5550_v10 }
 0x402   :  { %1546 = vmatprep.subr.bf16.mxu1 %v4465_v16  ;;  %v1326_v16 = vrot.slane %v1308_v11, %v5556_v12 }
 0x4bb   :  { %v1208_v18 = vpop.f32.mrb[8].mxu1 }
 0x4bc   :  { %v1209_v19 = vadd.f32 %v3827_v17, %v1208_v18  ;;  %v4264_v20 = vpop.f32.mrb[9].mxu1  ;;  %v4460_v17 = vld [vmem:[#allocation11 + $0xe0] ss:$16 sps:$4 sm:$0xff]   ;;  %v4463_v18 = vld [vmem:[#allocation11 + $0xe8] ss:$16 sps:$4 sm:$0xff]  }
 0x4bd   :  { %v1211_v21 = vpop.f32.mrb[10].mxu1  ;;  %1547 = vmatpush1.bf16.msra.mxu1 %v4463_v18  ;;  %v4467_v20 = vld [vmem:[#allocation13 + $0xc0] sm:$0xff]  }
 0x4be   :  { %v1214_v22 = vadd.f32 %v1209_v19, %v948_v15  ;;  %v4265_v23 = vpop.f32.mrb[11].mxu1  ;;  %v4462_v15 = vld [vmem:[#allocation11 + $0xe4] ss:$16 sps:$4 sm:$0xff]   ;;  %4171 = vmatprep.subr.bf16.mxu1 %v4467_v20 }
 0x4bf   :  { %1505 = vmatprep.subr.bf16.mxu0 %v4462_v15  ;;  %v4466_v19 = vld [vmem:[#allocation13 + $0x40] sm:$0xff]   ;;  %v1318_v15 = vrot.slane %v1308_v11, %v5505_v44 }
 0x4c0   :  { %1217 = vadd.xlane.f32.xlu0 %v1214_v22  ;;  %v1219_v24 = vmul.f32 %v1214_v22, %v1214_v22  ;;  %1506 = vmatpush1.bf16.msra.mxu0 %v4460_v17 }
 0x4c1   :  { %4149 = vmatprep.subr.bf16.mxu0 %v4466_v19 }
 0x4c4   :  { %1220 = vadd.xlane.f32.xlu0 %v1219_v24 }
 0x54d   :  { %v1218_v29 = vpop.xlane.xlu0 %1217 }
 0x54e   :  { %v1222_v30 = vmul.f32 0.0078125, %v1218_v29 }
 0x550   :  { %v1224_v32 = vmul.f32 %v1222_v30, %v1222_v30  ;;  %v1227_v37 = vsub.f32 %v1214_v22, %v1222_v30 }
 0x551   :  { %v1221_v31 = vpop.xlane.xlu0 %1220 }
 0x552   :  { %v1223_v33 = vmul.f32 0.0078125, %v1221_v31  ;;  %v3838_v31 = vld [vmem:[#allocation14] ss:$0 sm:$0xff] }
 0x554   :  { %v1225_v34 = vsub.f32 %v1223_v33, %v1224_v32  ;;  %v3839_v33 = vld [vmem:[#allocation16] ss:$0 sm:$0xff] }
 0x556   :  { %v1226_v35 = vmax.f32 %v1225_v34, 0.0 }
 0x558   :  { %v1228_v36 = vadd.f32 1e-05, %v1226_v35 }
 0x55a   :  { %4706 = vrsqrt.f32 %v1228_v36  ;;  %v4468_v36 = vld [vmem:[#allocation13] sm:$0xff]  }
 0x564   :  { %v4707_v38 = vpop.eup %4706 }
 0x565   :  { %v1230_v46 = vmul.f32 %v4707_v38, %v1227_v37  ;;  %v4469_v37 = vld [vmem:[#allocation13 + $0x80] sm:$0xff]  }
 0x567   :  { %v1237_v48 = vmul.f32 %v3836_v43, %v1230_v46  ;;  %v4470_v43 = vld [vmem:[#allocation13 + $0x48] sm:$0xff]  }
 0x568   :  { %v4472_v46 = vld [vmem:[#allocation13 + $0x8] sm:$0xff]  }
 0x569   :  { %v1244_v50 = vadd.f32 %v3837_v47, %v1237_v48  ;;  %v4473_v47 = vld [vmem:[#allocation13 + $0x88] sm:$0xff]   ;;  %v4474_v48 = vld [vmem:[#allocation13 + $0x50] sm:$0xff]  }
 0x56b   :  { %v5538_v51 = vadd.f32 %v1244_v50, %v1096_v49  ;;  %v4475_v49 = vld [vmem:[#allocation13 + $0xd0] sm:$0xff]  }
 0x56c   :  { %v4476_v50 = vld [vmem:[#allocation13 + $0x10] sm:$0xff]  }
 0x56d   :  { %1248 = vadd.xlane.f32.xlu1 %v5538_v51  ;;  %v1250_v52 = vmul.f32 %v5538_v51, %v5538_v51 }
 0x571   :  { %1251 = vadd.xlane.f32.xlu1 %v1250_v52  ;;  %v4478_v52 = vld [vmem:[#allocation13 + $0x58] sm:$0xff]  }
 0x5fa   :  { %v1249_v21 = vpop.xlane.xlu1 %1248 }
 0x5fb   :  { %v1253_v22 = vmul.f32 0.0078125, %v1249_v21 }
 0x5fd   :  { %v1255_v24 = vmul.f32 %v1253_v22, %v1253_v22  ;;  %v1258_v29 = vsub.f32 %v5538_v51, %v1253_v22  ;;  %v4477_v51 = vld [vmem:[#allocation13 + $0x90] sm:$0xff]  }
 0x5fe   :  { %v1252_v23 = vpop.xlane.xlu1 %1251 }
 0x5ff   :  { %v1254_v25 = vmul.f32 0.0078125, %v1252_v23 }
 0x601   :  { %v1256_v26 = vsub.f32 %v1254_v25, %v1255_v24 }
 0x603   :  { %v1257_v27 = vmax.f32 %v1256_v26, 0.0 }
 0x605   :  { %v1259_v28 = vadd.f32 1e-05, %v1257_v27 }
 0x607   :  { %4708 = vrsqrt.f32 %v1259_v28 }
 0x611   :  { %v4709_v30 = vpop.eup %4708 }
 0x612   :  { %v1261_v32 = vmul.f32 %v4709_v30, %v1258_v29 }
 0x614   :  { %v1268_v34 = vmul.f32 %v3838_v31, %v1261_v32 }
 0x616   :  { %v5544_v35 = vadd.f32 %v3839_v33, %v1268_v34 }
 0x618   :  { %v1309_v38 = vpack.c.bf16 %v5544_v35, %v5544_v35 }
 0x61a   :  { %1524 = vmatmul.mubr.bf16.vlgmr.msra.gmra.mrb[12].mxu0 %v1309_v38  ;;  %1565 = vmatmul.mubr.bf16.vlgmr.msra.gmra.mrb[12].mxu1 %v1309_v38  ;;  %v4498_v38 = vld [vmem:[#allocation8 + $0x40] sm:$0xff]  }
 0x61b   :  { %4150 = vmatpush3.bf16.msra.mxu0 %v4468_v36  ;;  %4172 = vmatpush3.bf16.msra.mxu1 %v4469_v37 }
 0x61c   :  { %4151 = vmatprep.subr.bf16.mxu0 %v4470_v43  ;;  %4173 = vmatprep.subr.bf16.mxu1 %v4471_v45 }
 0x61f   :  { %4152 = vmatpush3.bf16.msra.mxu0 %v4472_v46  ;;  %4174 = vmatpush3.bf16.msra.mxu1 %v4473_v47  ;;  %v3872_v46 = vld [vmem:[%s5732_s14] ss:$0 sm:$0xff] }
 0x620   :  { %4153 = vmatprep.subr.bf16.mxu0 %v4474_v48  ;;  %4175 = vmatprep.subr.bf16.mxu1 %v4475_v49 }
 0x623   :  { %4154 = vmatpush3.bf16.msra.mxu0 %v4476_v50  ;;  %4176 = vmatpush3.bf16.msra.mxu1 %v4477_v51 }
 0x624   :  { %4155 = vmatprep.subr.bf16.mxu0 %v4478_v52  ;;  %4177 = vmatprep.subr.bf16.mxu1 %v4479_v53 }
 0x627   :  { %4156 = vmatpush3.bf16.msra.mxu0 %v4480_v54  ;;  %4178 = vmatpush3.bf16.msra.mxu1 %v4481_v55 }
 0x628   :  { %4157 = vmatprep.subr.bf16.mxu0 %v4482_v56  ;;  %4179 = vmatprep.subr.bf16.mxu1 %v4483_v58 }
 0x62b   :  { %4158 = vmatpush3.bf16.msra.mxu0 %v4484_v59  ;;  %4180 = vmatpush3.bf16.msra.mxu1 %v4485_v60  ;;  %v4499_v60 = vld [vmem:[#allocation8 + $0x48] sm:$0xff]  }
 0x62c   :  { %4159 = vmatprep.subr.bf16.mxu0 %v4486_v61  ;;  %4181 = vmatprep.subr.bf16.mxu1 %v4487_v62  ;;  %v4500_v61 = vld [vmem:[#allocation8 + $0x50] sm:$0xff]   ;;  %v4501_v62 = vld [vmem:[#allocation8 + $0x58] sm:$0xff]  }
 0x62f   :  { %4160 = vmatpush3.bf16.msra.mxu0 %v4488_v63  ;;  %4182 = vmatpush3.bf16.msra.mxu1 %v4489_v0  ;;  %v4502_v63 = vld [vmem:[#allocation8 + $0x60] sm:$0xff]   ;;  %v4503_v0 = vld [vmem:[#allocation8 + $0x68] sm:$0xff]  }
 0x630   :  { %4161 = vmatprep.subr.bf16.mxu0 %v4490_v1  ;;  %4183 = vmatprep.subr.bf16.mxu1 %v4491_v2  ;;  %v4505_v1 = vld [vmem:[#allocation8 + $0x78] sm:$0xff]  }
 0x633   :  { %4162 = vmatpush3.bf16.msra.mxu0 %v4492_v3  ;;  %4184 = vmatpush3.bf16.msra.mxu1 %v4493_v5 }
 0x634   :  { %4163 = vmatprep.subr.bf16.mxu0 %v4494_v6  ;;  %4185 = vmatprep.subr.bf16.mxu1 %v4495_v7 }
 0x637   :  { %4164 = vmatpush3.bf16.msra.mxu0 %v4496_v8  ;;  %4186 = vmatpush3.bf16.msra.mxu1 %v4497_v9 }
 0x638   :  { %4266 = vmatprep.subr.bf16.mxu0 %v5128_v39 }
 0x6ed   :  { %v1525_v17 = vpop.f32.mrb[12].mxu0  ;;  %v1566_v18 = vpop.f32.mrb[12].mxu1 }
 0x6ee   :  { %v1526_v19 = vadd.f32 %v1525_v17, %v1314_v13  ;;  %v1567_v20 = vadd.f32 %v1566_v18, %v1322_v14  ;;  %v1527_v21 = vpop.f32.mrb[13].mxu0  ;;  %v1568_v22 = vpop.f32.mrb[13].mxu1  ;;  %v3906_v17 = vld [vmem:[#allocation19] ss:$0 sm:$0xff] }
 0x6ef   :  { %v1528_v23 = vadd.f32 %v1527_v21, %v1318_v15  ;;  %v1569_v24 = vadd.f32 %v1568_v22, %v1326_v16  ;;  %v1529_v25 = vpop.f32.mrb[14].mxu0  ;;  %v1570_v26 = vpop.f32.mrb[14].mxu1  ;;  %v3905_v15 = vld [vmem:[#allocation17] ss:$0 sm:$0xff] }
 0x6f0   :  { %v1573_v27 = vmax.f32 %v1526_v19, 0.0  ;;  %v1575_v28 = vmax.f32 %v1567_v20, 0.0  ;;  %v1530_v29 = vpop.f32.mrb[15].mxu0  ;;  %v1571_v30 = vpop.f32.mrb[15].mxu1 }
 0x6f1   :  { %v1574_v31 = vmax.f32 %v1528_v23, 0.0  ;;  %v1576_v32 = vmax.f32 %v1569_v24, 0.0  ;;  %v4508_v29 = vld [vmem:[#allocation11 + $0x104] ss:$16 sps:$4 sm:$0xff]   ;;  %v4509_v30 = vld [vmem:[#allocation11 + $0x108] ss:$16 sps:$4 sm:$0xff]  }
 0x6f2   :  { %v1642_v36 = vpack.c.bf16 %v1573_v27, %v1573_v27  ;;  %v1644_v37 = vpack.c.bf16 %v1575_v28, %v1575_v28  ;;  %v4506_v28 = vld [vmem:[#allocation11 + $0x100] ss:$16 sps:$4 sm:$0xff]   ;;  %2352 = vmatprep.subr.bf16.mxu1 %v4508_v29 }
 0x6f3   :  { %v1643_v33 = vpack.c.bf16 %v1574_v31, %v1574_v31  ;;  %v1645_v34 = vpack.c.bf16 %v1576_v32, %v1576_v32  ;;  %v4511_v31 = vld [vmem:[#allocation11 + $0x10c] ss:$16 sps:$4 sm:$0xff]  }
 0x6f5   :  { %1876 = vmatprep.mubr.bf16.mxu0 %v1643_v33  ;;  %1916 = vmatprep.mubr.bf16.mxu1 %v1645_v34 }
 0x6f6   :  { %1877 = vmatmul.mubr.bf16.vlgmr.msra.gmra.mrb[16].mxu0 %v1642_v36  ;;  %1917 = vmatmul.mubr.bf16.vlgmr.msra.gmra.mrb[16].mxu1 %v1644_v37 }
 0x6f7   :  { %4282 = vmatprep.mubr.msk.bf16.mxu0 %vm5129_vm0, %v5128_v39  ;;  %2384 = vmatprep.mubr.bf16.mxu1 %v5127_v57 }
 0x6f8   :  { %4267 = vmatpush3.bf16.msra.mxu0 %v4498_v38  ;;  %2353 = vmatpush1.bf16.msra.mxu1 %v4506_v28 }
 0x6f9   :  { %4268 = vmatprep.subr.bf16.mxu0 %v5128_v39 }
 0x6fc   :  { %4269 = vmatpush3.bf16.msra.mxu0 %v4499_v60  ;;  %v4520_v60 = vld [vmem:[#allocation11 + $0x144] ss:$16 sps:$4 sm:$0xff]  }
 0x6fd   :  { %4270 = vmatprep.subr.bf16.mxu0 %v5128_v39 }
 0x700   :  { %4271 = vmatpush3.bf16.msra.mxu0 %v4500_v61  ;;  %v4523_v61 = vld [vmem:[#allocation11 + $0x14c] ss:$16 sps:$4 sm:$0xff]  }
 0x701   :  { %4272 = vmatprep.subr.bf16.mxu0 %v5128_v39 }
 0x704   :  { %4273 = vmatpush3.bf16.msra.mxu0 %v4501_v62  ;;  %v4518_v62 = vld [vmem:[#allocation11 + $0x140] ss:$16 sps:$4 sm:$0xff]  }
 0x705   :  { %4274 = vmatprep.subr.bf16.mxu0 %v5128_v39 }
 0x708   :  { %4275 = vmatpush3.bf16.msra.mxu0 %v4502_v63  ;;  %v4521_v63 = vld [vmem:[#allocation11 + $0x148] ss:$16 sps:$4 sm:$0xff]  }
 0x709   :  { %4276 = vmatprep.subr.bf16.mxu0 %v5128_v39 }
 0x70c   :  { %4277 = vmatpush3.bf16.msra.mxu0 %v4503_v0  ;;  %v4529_v0 = vld [vmem:[#allocation11 + $0x16c] ss:$16 sps:$4 sm:$0xff]  }
 0x70d   :  { %4278 = vmatprep.subr.bf16.mxu0 %v5128_v39 }
 0x7c9   :  { %v4165_v43 = vpop.f32.mrb[16].mxu0  ;;  %v4187_v45 = vpop.f32.mrb[16].mxu1 }
 0x7ca   :  { %v4166_v47 = vpop.f32.mrb[17].mxu0  ;;  %v4188_v48 = vpop.f32.mrb[17].mxu1 }
 0x7cb   :  { %v4167_v49 = vadd.f32 %v4166_v47, %v4165_v43  ;;  %v4189_v50 = vadd.f32 %v4188_v48, %v4187_v45  ;;  %v4168_v51 = vpop.f32.mrb[18].mxu0  ;;  %v4190_v52 = vpop.f32.mrb[18].mxu1  ;;  %v3919_v48 = vld [vmem:[%s5733_s15 + $0x1] ss:$0 sm:$0xff] }
 0x7cc   :  { %v4169_v53 = vpop.f32.mrb[19].mxu0  ;;  %v4191_v54 = vpop.f32.mrb[19].mxu1 }
 0x7cd   :  { %v1879_v55 = vadd.f32 %v4167_v49, %v3872_v46 }
 0x7cf   :  { %v1919_v56 = vadd.f32 %v4189_v50, %v1879_v55  ;;  %v3920_v50 = vld [vmem:[%s5734_s16 + $0x1] ss:$0 sm:$0xff]  ;;  %v4514_v55 = vld [vmem:[#allocation11 + $0x124] ss:$16 sps:$4 sm:$0xff]  }
 0x7d0   :  { %2354 = vmatprep.subr.bf16.mxu1 %v4514_v55  ;;  %v4567_v55 = vld [vmem:[#allocation13 + $0x1d8] sm:$0xff]  }
 0x7d1   :  { %v1924_v58 = vadd.f32 %v1919_v56, %v5544_v35  ;;  %v4504_v35 = vld [vmem:[#allocation8 + $0x70] sm:$0xff]   ;;  %v4517_v56 = vld [vmem:[#allocation11 + $0x12c] ss:$16 sps:$4 sm:$0xff]  }
 0x7d2   :  { %4279 = vmatpush3.bf16.msra.mxu0 %v4504_v35  ;;  %v4524_v35 = vld [vmem:[#allocation11 + $0x160] ss:$16 sps:$4 sm:$0xff]  }
 0x7d3   :  { %1927 = vadd.xlane.f32.xlu0 %v1924_v58  ;;  %v1929_v59 = vmul.f32 %v1924_v58, %v1924_v58  ;;  %4280 = vmatprep.subr.bf16.mxu0 %v5128_v39  ;;  %v3908_v39 = vld [vmem:[%s5792_s18 + $0x1] ss:$0 sm:$0xff] }
 0x7d5   :  { %1930 = vadd.xlane.f32.xlu1 %v1929_v59  ;;  %v4515_v59 = vld [vmem:[#allocation11 + $0x128] ss:$16 sps:$4 sm:$0xff]  }
 0x7d6   :  { %4281 = vmatpush3.bf16.msra.mxu0 %v4505_v1  ;;  %v4527_v1 = vld [vmem:[#allocation11 + $0x168] ss:$16 sps:$4 sm:$0xff]  }
 0x7d7   :  { %2393 = vmatprep.subr.bf16.mxu0 %v4511_v31 }
 0x860   :  { %v1928_v2 = vpop.xlane.xlu0 %1927 }
 0x861   :  { %v1932_v3 = vmul.f32 0.0078125, %v1928_v2  ;;  %v4532_v2 = vld [vmem:[#allocation11 + $0x184] ss:$16 sps:$4 sm:$0xff]  }
 0x862   :  { %v1931_v5 = vpop.xlane.xlu1 %1930 }
 0x863   :  { %v1934_v6 = vmul.f32 %v1932_v3, %v1932_v3  ;;  %v1933_v7 = vmul.f32 0.0078125, %v1931_v5  ;;  %v1937_v13 = vsub.f32 %v1924_v58, %v1932_v3  ;;  %v4512_v58 = vld [vmem:[#allocation11 + $0x120] ss:$16 sps:$4 sm:$0xff]   ;;  %v4533_v5 = vld [vmem:[#allocation11 + $0x188] ss:$16 sps:$4 sm:$0xff]  }
 0x864   :  { %2355 = vmatpush1.bf16.msra.mxu1 %v4512_v58  ;;  %v4530_v3 = vld [vmem:[#allocation11 + $0x180] ss:$16 sps:$4 sm:$0xff]   ;;  %v4569_v58 = vld [vmem:[#allocation13 + $0x198] sm:$0xff]  }
 0x865   :  { %v1935_v8 = vsub.f32 %v1933_v7, %v1934_v6  ;;  %2356 = vmatprep.subr.bf16.mxu1 %v4520_v60  ;;  %v4535_v6 = vld [vmem:[#allocation11 + $0x18c] ss:$16 sps:$4 sm:$0xff]   ;;  %v4538_v7 = vld [vmem:[#allocation11 + $0x1a4] ss:$16 sps:$4 sm:$0xff]  }
 0x866   :  { %v4571_v60 = vld [vmem:[#allocation13 + $0x1e0] sm:$0xff]  }
 0x867   :  { %v1936_v9 = vmax.f32 %v1935_v8, 0.0  ;;  %v4541_v8 = vld [vmem:[#allocation11 + $0x1ac] ss:$16 sps:$4 sm:$0xff]  }
 0x868   :  { %2357 = vmatpush1.bf16.msra.mxu1 %v4518_v62  ;;  %v4573_v62 = vld [vmem:[#allocation13 + $0x1a0] sm:$0xff]  }
 0x869   :  { %v1938_v11 = vadd.f32 1e-05, %v1936_v9  ;;  %v4536_v9 = vld [vmem:[#allocation11 + $0x1a0] ss:$16 sps:$4 sm:$0xff]  }
 0x86b   :  { %4710 = vrsqrt.f32 %v1938_v11  ;;  %v4539_v11 = vld [vmem:[#allocation11 + $0x1a8] ss:$16 sps:$4 sm:$0xff]  }
 0x875   :  { %v4711_v14 = vpop.eup %4710 }
 0x876   :  { %v1940_v16 = vmul.f32 %v4711_v14, %v1937_v13  ;;  %v4544_v13 = vld [vmem:[#allocation11 + $0x1c4] ss:$16 sps:$4 sm:$0xff]   ;;  %v4547_v14 = vld [vmem:[#allocation11 + $0x1cc] ss:$16 sps:$4 sm:$0xff]  }
 0x878   :  { %v1947_v18 = vmul.f32 %v3905_v15, %v1940_v16  ;;  %v4542_v15 = vld [vmem:[#allocation11 + $0x1c0] ss:$16 sps:$4 sm:$0xff]   ;;  %v4545_v16 = vld [vmem:[#allocation11 + $0x1c8] ss:$16 sps:$4 sm:$0xff]  }
 0x87a   :  { %v1954_v19 = vadd.f32 %v3906_v17, %v1947_v18  ;;  %v4550_v17 = vld [vmem:[#allocation11 + $0x1e4] ss:$16 sps:$4 sm:$0xff]   ;;  %v4553_v18 = vld [vmem:[#allocation11 + $0x1ec] ss:$16 sps:$4 sm:$0xff]  }
 0x87c   :  { %v1974_v20 = vpack.c.bf16 %v1954_v19, %v1954_v19 }
 0x87e   :  { %4283 = vmatmul.mubr.bf16.vlgmr.msra.gmra.mrb[20].mxu0 %v1974_v20  ;;  %v4551_v20 = vld [vmem:[#allocation11 + $0x1e8] ss:$16 sps:$4 sm:$0xff]  }
 0x87f   :  { %2425 = vmatprep.mubr.bf16.mxu0 %v5127_v57  ;;  %2394 = vmatpush1.bf16.msra.mxu0 %v4509_v30 }
 0x880   :  { %2395 = vmatprep.subr.bf16.mxu0 %v4517_v56  ;;  %v4568_v56 = vld [vmem:[#allocation13 + $0x118] sm:$0xff]  }
 0x883   :  { %2396 = vmatpush1.bf16.msra.mxu0 %v4515_v59  ;;  %v4570_v59 = vld [vmem:[#allocation13 + $0x160] sm:$0xff]  }
 0x884   :  { %2397 = vmatprep.subr.bf16.mxu0 %v4523_v61  ;;  %v4572_v61 = vld [vmem:[#allocation13 + $0x120] sm:$0xff]  }
 0x887   :  { %2398 = vmatpush1.bf16.msra.mxu0 %v4521_v63  ;;  %v4574_v63 = vld [vmem:[#allocation13 + $0x168] sm:$0xff]  }
 0x888   :  { %2399 = vmatprep.subr.bf16.mxu0 %v4529_v0  ;;  %v4576_v0 = vld [vmem:[#allocation13 + $0x128] sm:$0xff]  }
 0x88b   :  { %2400 = vmatpush1.bf16.msra.mxu0 %v4527_v1  ;;  %v4578_v1 = vld [vmem:[#allocation13 + $0x170] sm:$0xff]  }
 0x88c   :  { %2401 = vmatprep.subr.bf16.mxu0 %v4535_v6  ;;  %v4582_v6 = vld [vmem:[#allocation13 + $0x178] sm:$0xff]  }
 0x88f   :  { %2402 = vmatpush1.bf16.msra.mxu0 %v4533_v5  ;;  %v4581_v5 = vld [vmem:[#allocation13 + $0x1b0] sm:$0xff]  }
 0x890   :  { %2403 = vmatprep.subr.bf16.mxu0 %v4541_v8  ;;  %v4584_v8 = vld [vmem:[#allocation13 + $0x138] sm:$0xff]  }
 0x893   :  { %2404 = vmatpush1.bf16.msra.mxu0 %v4539_v11  ;;  %v3923_v11 = vld [vmem:[%s5793_s30 + $0x4] sm:$0xf] }
 0x894   :  { %2405 = vmatprep.subr.bf16.mxu0 %v4547_v14  ;;  %v2183_v14 = vrot.slane %v3923_v11, %v5550_v10 }
 0x897   :  { %2406 = vmatpush1.bf16.msra.mxu0 %v4545_v16  ;;  %v2187_v16 = vrot.slane %v3923_v11, %v5556_v12 }
 0x898   :  { %2407 = vmatprep.subr.bf16.mxu0 %v4553_v18 }
 0x89b   :  { %2408 = vmatpush1.bf16.msra.mxu0 %v4551_v20 }
 0x951   :  { %v2063_v21 = vpop.f32.mrb[20].mxu0 }
 0x952   :  { %v2064_v22 = vadd.f32 %v3908_v39, %v2063_v21  ;;  %v4284_v23 = vpop.f32.mrb[21].mxu0  ;;  %v4554_v39 = vld [vmem:[#allocation13 + $0x140] sm:$0xff]  }
 0x953   :  { %v2066_v24 = vpop.f32.mrb[22].mxu0  ;;  %v4555_v21 = vld [vmem:[#allocation13 + $0x1c0] sm:$0xff]  }
 0x954   :  { %v2069_v25 = vadd.f32 %v2064_v22, %v1954_v19  ;;  %v4285_v26 = vpop.f32.mrb[23].mxu0  ;;  %v4548_v19 = vld [vmem:[#allocation11 + $0x1e0] ss:$16 sps:$4 sm:$0xff]   ;;  %4224 = vmatprep.subr.bf16.mxu0 %v4555_v21 }
 0x956   :  { %2074 = vadd.xlane.f32.xlu0 %v2069_v25  ;;  %v2076_v27 = vmul.f32 %v2069_v25, %v2069_v25 }
 0x958   :  { %2077 = vadd.xlane.f32.xlu1 %v2076_v27 }
 0x9e3   :  { %v2075_v32 = vpop.xlane.xlu0 %2074 }
 0x9e4   :  { %v2079_v33 = vmul.f32 0.0078125, %v2075_v32  ;;  %v3921_v32 = vld [vmem:[#allocation14 + $0x1] ss:$0 sm:$0xff] }
 0x9e5   :  { %v2078_v34 = vpop.xlane.xlu1 %2077 }
 0x9e6   :  { %v2081_v36 = vmul.f32 %v2079_v33, %v2079_v33  ;;  %v2080_v37 = vmul.f32 0.0078125, %v2078_v34  ;;  %v2084_v46 = vsub.f32 %v2069_v25, %v2079_v33  ;;  %v3922_v34 = vld [vmem:[#allocation16 + $0x1] ss:$0 sm:$0xff] }
 0x9e8   :  { %v2082_v38 = vsub.f32 %v2080_v37, %v2081_v36 }
 0x9ea   :  { %v2083_v43 = vmax.f32 %v2082_v38, 0.0  ;;  %v4556_v38 = vld [vmem:[#allocation13 + $0x100] sm:$0xff]  }
 0x9ec   :  { %v2085_v45 = vadd.f32 1e-05, %v2083_v43  ;;  %v4557_v43 = vld [vmem:[#allocation13 + $0x180] sm:$0xff]  }
 0x9ee   :  { %4712 = vrsqrt.f32 %v2085_v45 }
 0x9f8   :  { %v4713_v47 = vpop.eup %4712 }
 0x9f9   :  { %v2087_v49 = vmul.f32 %v4713_v47, %v2084_v46  ;;  %v4558_v46 = vld [vmem:[#allocation13 + $0x148] sm:$0xff]  }
 0x9fa   :  { %v4559_v47 = vld [vmem:[#allocation13 + $0x1c8] sm:$0xff]  }
 0x9fb   :  { %v2094_v51 = vmul.f32 %v3919_v48, %v2087_v49  ;;  %v4560_v48 = vld [vmem:[#allocation13 + $0x108] sm:$0xff]  }
 0x9fc   :  { %v4561_v49 = vld [vmem:[#allocation13 + $0x188] sm:$0xff]  }
 0x9fd   :  { %v2101_v52 = vadd.f32 %v3920_v50, %v2094_v51  ;;  %v4562_v50 = vld [vmem:[#allocation13 + $0x150] sm:$0xff]  }
 0x9fe   :  { %v4563_v51 = vld [vmem:[#allocation13 + $0x1d0] sm:$0xff]  }
 0x9ff   :  { %v5587_v53 = vadd.f32 %v2101_v52, %v5519_v4  ;;  %v4526_v4 = vld [vmem:[#allocation11 + $0x164] ss:$16 sps:$4 sm:$0xff]  }
 0xa00   :  { %2358 = vmatprep.subr.bf16.mxu1 %v4526_v4  ;;  %v4564_v52 = vld [vmem:[#allocation13 + $0x110] sm:$0xff]   ;;  %v4575_v4 = vld [vmem:[#allocation13 + $0x1e8] sm:$0xff]  }
 0xa01   :  { %2107 = vadd.xlane.f32.xlu0 %v5587_v53  ;;  %v2109_v54 = vmul.f32 %v5587_v53, %v5587_v53  ;;  %2359 = vmatpush1.bf16.msra.mxu1 %v4524_v35  ;;  %v4577_v35 = vld [vmem:[#allocation13 + $0x1a8] sm:$0xff]  }
 0xa02   :  { %2360 = vmatprep.subr.bf16.mxu1 %v4532_v2  ;;  %v4579_v2 = vld [vmem:[#allocation13 + $0x1f0] sm:$0xff]  }
 0xa03   :  { %2110 = vadd.xlane.f32.xlu1 %v2109_v54  ;;  %v4566_v54 = vld [vmem:[#allocation13 + $0x158] sm:$0xff]  }
 0xa05   :  { %2361 = vmatpush1.bf16.msra.mxu1 %v4530_v3  ;;  %v4580_v3 = vld [vmem:[#allocation13 + $0x130] sm:$0xff]  }
 0xa06   :  { %2362 = vmatprep.subr.bf16.mxu1 %v4538_v7  ;;  %v4583_v7 = vld [vmem:[#allocation13 + $0x1f8] sm:$0xff]  }
 0xa09   :  { %2363 = vmatpush1.bf16.msra.mxu1 %v4536_v9  ;;  %v4585_v9 = vld [vmem:[#allocation13 + $0x1b8] sm:$0xff]  }
 0xa0a   :  { %2364 = vmatprep.subr.bf16.mxu1 %v4544_v13  ;;  %v2175_v13 = vrot.slane %v3923_v11, %v5499_v42 }
 0xa0d   :  { %2365 = vmatpush1.bf16.msra.mxu1 %v4542_v15  ;;  %v2179_v15 = vrot.slane %v3923_v11, %v5505_v44  ;;  %v4615_v11 = vld [vmem:[#allocation20 + $0x14c] ss:$40 sps:$4 sm:$0xff]  }
 0xa0e   :  { %2366 = vmatprep.subr.bf16.mxu1 %v4550_v17 }
 0xa11   :  { %2367 = vmatpush1.bf16.msra.mxu1 %v4548_v19 }
 0xa12   :  { %4202 = vmatprep.subr.bf16.mxu1 %v4554_v39 }
 0xa8e   :  { %v2108_v22 = vpop.xlane.xlu0 %2107 }
 0xa8f   :  { %v2112_v23 = vmul.f32 0.0078125, %v2108_v22 }
 0xa90   :  { %v2111_v24 = vpop.xlane.xlu1 %2110 }
 0xa91   :  { %v2114_v25 = vmul.f32 %v2112_v23, %v2112_v23  ;;  %v2113_v26 = vmul.f32 0.0078125, %v2111_v24  ;;  %v2117_v30 = vsub.f32 %v5587_v53, %v2112_v23  ;;  %v4565_v53 = vld [vmem:[#allocation13 + $0x190] sm:$0xff]  }
 0xa93   :  { %v2115_v27 = vsub.f32 %v2113_v26, %v2114_v25 }
 0xa95   :  { %v2116_v28 = vmax.f32 %v2115_v27, 0.0 }
 0xa97   :  { %v2118_v29 = vadd.f32 1e-05, %v2116_v28 }
 0xa99   :  { %4714 = vrsqrt.f32 %v2118_v29 }
 0xaa3   :  { %v4715_v31 = vpop.eup %4714 }
 0xaa4   :  { %v2120_v33 = vmul.f32 %v4715_v31, %v2117_v30 }
 0xaa6   :  { %v2127_v36 = vmul.f32 %v3921_v32, %v2120_v33 }
 0xaa8   :  { %v5593_v37 = vadd.f32 %v3922_v34, %v2127_v36 }
 0xaaa   :  { %v2170_v45 = vpack.c.bf16 %v5593_v37, %v5593_v37 }
 0xaac   :  { %2385 = vmatmul.mubr.bf16.vlgmr.msra.gmra.mrb[20].mxu1 %v2170_v45  ;;  %2426 = vmatmul.mubr.bf16.vlgmr.msra.gmra.mrb[24].mxu0 %v2170_v45  ;;  %v4589_v45 = vld [vmem:[#allocation20 + $0x8] ss:$40 sps:$4 sm:$0xff]  }
 0xaad   :  { %4203 = vmatpush3.bf16.msra.mxu1 %v4556_v38  ;;  %4225 = vmatpush3.bf16.msra.mxu0 %v4557_v43  ;;  %v4586_v38 = vld [vmem:[#allocation20] ss:$40 sps:$4 sm:$0xff]   ;;  %v4588_v43 = vld [vmem:[#allocation20 + $0x4] ss:$40 sps:$4 sm:$0xff]  }
 0xaae   :  { %4204 = vmatprep.subr.bf16.mxu1 %v4558_v46  ;;  %4226 = vmatprep.subr.bf16.mxu0 %v4559_v47  ;;  %v4591_v46 = vld [vmem:[#allocation20 + $0xc] ss:$40 sps:$4 sm:$0xff]  }
 0xab1   :  { %4205 = vmatpush3.bf16.msra.mxu1 %v4560_v48  ;;  %4227 = vmatpush3.bf16.msra.mxu0 %v4561_v49  ;;  %v3957_v49 = vld [vmem:[%s5732_s14 + $0x1] ss:$0 sm:$0xff] }
 0xab2   :  { %4206 = vmatprep.subr.bf16.mxu1 %v4562_v50  ;;  %4228 = vmatprep.subr.bf16.mxu0 %v4563_v51 }
 0xab5   :  { %4207 = vmatpush3.bf16.msra.mxu1 %v4564_v52  ;;  %4229 = vmatpush3.bf16.msra.mxu0 %v4565_v53 }
 0xab6   :  { %4208 = vmatprep.subr.bf16.mxu1 %v4566_v54  ;;  %4230 = vmatprep.subr.bf16.mxu0 %v4567_v55 }
 0xab9   :  { %4209 = vmatpush3.bf16.msra.mxu1 %v4568_v56  ;;  %4231 = vmatpush3.bf16.msra.mxu0 %v4569_v58 }
 0xaba   :  { %4210 = vmatprep.subr.bf16.mxu1 %v4570_v59  ;;  %4232 = vmatprep.subr.bf16.mxu0 %v4571_v60 }
 0xabd   :  { %4211 = vmatpush3.bf16.msra.mxu1 %v4572_v61  ;;  %4233 = vmatpush3.bf16.msra.mxu0 %v4573_v62 }
 0xabe   :  { %4212 = vmatprep.subr.bf16.mxu1 %v4574_v63  ;;  %4234 = vmatprep.subr.bf16.mxu0 %v4575_v4  ;;  %v4594_v63 = vld [vmem:[#allocation20 + $0x54] ss:$40 sps:$4 sm:$0xff]  }
 0xabf   :  { %v4597_v4 = vld [vmem:[#allocation20 + $0x5c] ss:$40 sps:$4 sm:$0xff]  }
 0xac1   :  { %4213 = vmatpush3.bf16.msra.mxu1 %v4576_v0  ;;  %4235 = vmatpush3.bf16.msra.mxu0 %v4577_v35  ;;  %v4592_v0 = vld [vmem:[#allocation20 + $0x50] ss:$40 sps:$4 sm:$0xff]  }
 0xac2   :  { %4214 = vmatprep.subr.bf16.mxu1 %v4578_v1  ;;  %4236 = vmatprep.subr.bf16.mxu0 %v4579_v2  ;;  %v4595_v35 = vld [vmem:[#allocation20 + $0x58] ss:$40 sps:$4 sm:$0xff]   ;;  %v4600_v1 = vld [vmem:[#allocation20 + $0xa4] ss:$40 sps:$4 sm:$0xff]  }
 0xac3   :  { %v4603_v2 = vld [vmem:[#allocation20 + $0xac] ss:$40 sps:$4 sm:$0xff]  }
 0xac5   :  { %4215 = vmatpush3.bf16.msra.mxu1 %v4580_v3  ;;  %4237 = vmatpush3.bf16.msra.mxu0 %v4581_v5  ;;  %v4598_v3 = vld [vmem:[#allocation20 + $0xa0] ss:$40 sps:$4 sm:$0xff]  }
 0xac6   :  { %4216 = vmatprep.subr.bf16.mxu1 %v4582_v6  ;;  %4238 = vmatprep.subr.bf16.mxu0 %v4583_v7  ;;  %v4601_v5 = vld [vmem:[#allocation20 + $0xa8] ss:$40 sps:$4 sm:$0xff]   ;;  %v4609_v6 = vld [vmem:[#allocation20 + $0xfc] ss:$40 sps:$4 sm:$0xff]  }
 0xac7   :  { %v4604_v7 = vld [vmem:[#allocation20 + $0xf0] ss:$40 sps:$4 sm:$0xff]  }
 0xac9   :  { %4217 = vmatpush3.bf16.msra.mxu1 %v4584_v8  ;;  %4239 = vmatpush3.bf16.msra.mxu0 %v4585_v9  ;;  %v4607_v8 = vld [vmem:[#allocation20 + $0xf8] ss:$40 sps:$4 sm:$0xff]   ;;  %v4612_v9 = vld [vmem:[#allocation20 + $0x144] ss:$40 sps:$4 sm:$0xff]  }
 0xaca   :  { %3356 = vmatprep.subr.bf16.mxu1 %v4588_v43  ;;  %3397 = vmatprep.subr.bf16.mxu0 %v4591_v46 }
 0xb7f   :  { %v2386_v17 = vpop.f32.mrb[20].mxu1  ;;  %v2427_v18 = vpop.f32.mrb[24].mxu0 }
 0xb80   :  { %v2387_v19 = vadd.f32 %v2386_v17, %v2175_v13  ;;  %v2428_v20 = vadd.f32 %v2427_v18, %v2183_v14  ;;  %v2388_v39 = vpop.f32.mrb[21].mxu1  ;;  %v2429_v21 = vpop.f32.mrb[25].mxu0  ;;  %v4610_v13 = vld [vmem:[#allocation20 + $0x140] ss:$40 sps:$4 sm:$0xff]   ;;  %v4616_v17 = vld [vmem:[#allocation20 + $0x190] ss:$40 sps:$4 sm:$0xff]  }
 0xb81   :  { %v2389_v22 = vadd.f32 %v2388_v39, %v2179_v15  ;;  %v2430_v23 = vadd.f32 %v2429_v21, %v2187_v16  ;;  %v2390_v24 = vpop.f32.mrb[22].mxu1  ;;  %v2431_v25 = vpop.f32.mrb[26].mxu0  ;;  %v4613_v14 = vld [vmem:[#allocation20 + $0x148] ss:$40 sps:$4 sm:$0xff]   ;;  %v4618_v15 = vld [vmem:[#allocation20 + $0x194] ss:$40 sps:$4 sm:$0xff]  }
 0xb82   :  { %v2434_v26 = vmax.f32 %v2387_v19, 0.0  ;;  %v2436_v27 = vmax.f32 %v2428_v20, 0.0  ;;  %v2391_v28 = vpop.f32.mrb[23].mxu1  ;;  %v2432_v29 = vpop.f32.mrb[27].mxu0  ;;  %v4621_v16 = vld [vmem:[#allocation20 + $0x19c] ss:$40 sps:$4 sm:$0xff]  }
 0xb83   :  { %v2435_v30 = vmax.f32 %v2389_v22, 0.0  ;;  %v2437_v31 = vmax.f32 %v2430_v23, 0.0  ;;  %v4619_v18 = vld [vmem:[#allocation20 + $0x198] ss:$40 sps:$4 sm:$0xff]   ;;  %v4624_v19 = vld [vmem:[#allocation20 + $0x1e4] ss:$40 sps:$4 sm:$0xff]  }
 0xb84   :  { %v2505_v34 = vpack.c.bf16 %v2434_v26, %v2434_v26  ;;  %v2507_v36 = vpack.c.bf16 %v2436_v27, %v2436_v27  ;;  %v4627_v20 = vld [vmem:[#allocation20 + $0x1ec] ss:$40 sps:$4 sm:$0xff]   ;;  %v4622_v39 = vld [vmem:[#allocation20 + $0x1e0] ss:$40 sps:$4 sm:$0xff]   ;;  %v4628_v23 = vld [vmem:[#allocation20 + $0x230] ss:$40 sps:$4 sm:$0xff]  }
 0xb85   :  { %v2506_v32 = vpack.c.bf16 %v2435_v30, %v2435_v30  ;;  %v2508_v33 = vpack.c.bf16 %v2437_v31, %v2437_v31  ;;  %v4625_v21 = vld [vmem:[#allocation20 + $0x1e8] ss:$40 sps:$4 sm:$0xff]   ;;  %v4630_v22 = vld [vmem:[#allocation20 + $0x234] ss:$40 sps:$4 sm:$0xff]   ;;  %v4631_v24 = vld [vmem:[#allocation20 + $0x238] ss:$40 sps:$4 sm:$0xff]  }
 0xb86   :  { %v4633_v25 = vld [vmem:[#allocation20 + $0x23c] ss:$40 sps:$4 sm:$0xff]  }
 0xb87   :  { %2739 = vmatprep.mubr.bf16.mxu1 %v2506_v32  ;;  %2779 = vmatprep.mubr.bf16.mxu0 %v2508_v33  ;;  %v4636_v26 = vld [vmem:[#allocation20 + $0x14] ss:$40 sps:$4 sm:$0xff]  }
 0xb88   :  { %2740 = vmatmul.mubr.bf16.vlgmr.msra.gmra.mrb[24].mxu1 %v2505_v34  ;;  %2780 = vmatmul.mubr.bf16.vlgmr.msra.gmra.mrb[28].mxu0 %v2507_v36  ;;  %v4639_v27 = vld [vmem:[#allocation20 + $0x1c] ss:$40 sps:$4 sm:$0xff]  }
 0xb89   :  { %3388 = vmatprep.mubr.bf16.mxu1 %v5127_v57  ;;  %3429 = vmatprep.mubr.bf16.mxu0 %v5127_v57 }
 0xb8a   :  { %3357 = vmatpush1.bf16.msra.mxu1 %v4586_v38  ;;  %3398 = vmatpush1.bf16.msra.mxu0 %v4589_v45  ;;  %v3990_v45 = vld [vmem:[#allocation17 + $0x1] ss:$0 sm:$0xff] }
 0xb8b   :  { %3358 = vmatprep.subr.bf16.mxu1 %v4594_v63  ;;  %3399 = vmatprep.subr.bf16.mxu0 %v4597_v4  ;;  %v4657_v63 = vld [vmem:[#allocation20 + $0x10c] ss:$40 sps:$4 sm:$0xff]   ;;  %v4652_v4 = vld [vmem:[#allocation20 + $0x100] ss:$40 sps:$4 sm:$0xff]  }
 0xb8e   :  { %3359 = vmatpush1.bf16.msra.mxu1 %v4592_v0  ;;  %3400 = vmatpush1.bf16.msra.mxu0 %v4595_v35  ;;  %v4655_v0 = vld [vmem:[#allocation20 + $0x108] ss:$40 sps:$4 sm:$0xff]   ;;  %v4660_v35 = vld [vmem:[#allocation20 + $0x154] ss:$40 sps:$4 sm:$0xff]  }
 0xb8f   :  { %3360 = vmatprep.subr.bf16.mxu1 %v4600_v1  ;;  %3401 = vmatprep.subr.bf16.mxu0 %v4603_v2  ;;  %v4663_v1 = vld [vmem:[#allocation20 + $0x15c] ss:$40 sps:$4 sm:$0xff]   ;;  %v4658_v2 = vld [vmem:[#allocation20 + $0x150] ss:$40 sps:$4 sm:$0xff]  }
 0xb92   :  { %3361 = vmatpush1.bf16.msra.mxu1 %v4598_v3  ;;  %3402 = vmatpush1.bf16.msra.mxu0 %v4601_v5  ;;  %v4661_v3 = vld [vmem:[#allocation20 + $0x158] ss:$40 sps:$4 sm:$0xff]   ;;  %v4666_v5 = vld [vmem:[#allocation20 + $0x1a4] ss:$40 sps:$4 sm:$0xff]  }
 0xb93   :  { %3403 = vmatprep.subr.bf16.mxu0 %v4609_v6  ;;  %v4664_v6 = vld [vmem:[#allocation20 + $0x1a0] ss:$40 sps:$4 sm:$0xff]  }
 0xb96   :  { %3404 = vmatpush1.bf16.msra.mxu0 %v4607_v8  ;;  %v4672_v8 = vld [vmem:[#allocation20 + $0x1f4] ss:$40 sps:$4 sm:$0xff]  }
 0xb97   :  { %3405 = vmatprep.subr.bf16.mxu0 %v4615_v11  ;;  %v4670_v11 = vld [vmem:[#allocation20 + $0x1f0] ss:$40 sps:$4 sm:$0xff]  }
 0xb9a   :  { %3406 = vmatpush1.bf16.msra.mxu0 %v4613_v14  ;;  %v4678_v14 = vld [vmem:[#allocation20 + $0x244] ss:$40 sps:$4 sm:$0xff]  }
 0xb9b   :  { %3407 = vmatprep.subr.bf16.mxu0 %v4621_v16  ;;  %v4676_v16 = vld [vmem:[#allocation20 + $0x240] ss:$40 sps:$4 sm:$0xff]  }
 0xb9e   :  { %3408 = vmatpush1.bf16.msra.mxu0 %v4619_v18  ;;  %v4684_v18 = vld [vmem:[#allocation20 + $0x24] ss:$40 sps:$4 sm:$0xff]  }
 0xb9f   :  { %3409 = vmatprep.subr.bf16.mxu0 %v4627_v20  ;;  %v4687_v20 = vld [vmem:[#allocation20 + $0x74] ss:$40 sps:$4 sm:$0xff]  }
 0xba2   :  { %3410 = vmatpush1.bf16.msra.mxu0 %v4625_v21  ;;  %v4690_v21 = vld [vmem:[#allocation20 + $0xc4] ss:$40 sps:$4 sm:$0xff]  }
 0xba3   :  { %3411 = vmatprep.subr.bf16.mxu0 %v4633_v25  ;;  %v4696_v25 = vld [vmem:[#allocation20 + $0x164] ss:$40 sps:$4 sm:$0xff]  }
 0xba6   :  { %3412 = vmatpush1.bf16.msra.mxu0 %v4631_v24  ;;  %v4691_v24 = vld [vmem:[#allocation20 + $0x110] ss:$40 sps:$4 sm:$0xff]  }
 0xba7   :  { %3479 = vmatprep.subr.bf16.mxu0 %v4639_v27  ;;  %v4699_v27 = vld [vmem:[#allocation20 + $0x1b4] ss:$40 sps:$4 sm:$0xff]  }
 0xc5b   :  { %v4218_v47 = vpop.f32.mrb[24].mxu1  ;;  %v4240_v48 = vpop.f32.mrb[28].mxu0 }
 0xc5c   :  { %v4219_v50 = vpop.f32.mrb[25].mxu1  ;;  %v4241_v51 = vpop.f32.mrb[29].mxu0 }
 0xc5d   :  { %v4220_v52 = vadd.f32 %v4219_v50, %v4218_v47  ;;  %v4242_v53 = vadd.f32 %v4241_v51, %v4240_v48  ;;  %v4221_v54 = vpop.f32.mrb[26].mxu1  ;;  %v4243_v55 = vpop.f32.mrb[30].mxu0  ;;  %v3991_v47 = vld [vmem:[#allocation19 + $0x1] ss:$0 sm:$0xff]  ;;  %v4634_v50 = vld [vmem:[#allocation20 + $0x10] ss:$40 sps:$4 sm:$0xff]  }
 0xc5e   :  { %v4222_v56 = vpop.f32.mrb[27].mxu1  ;;  %v4244_v58 = vpop.f32.mrb[31].mxu0  ;;  %v4637_v51 = vld [vmem:[#allocation20 + $0x18] ss:$40 sps:$4 sm:$0xff]   ;;  %v4645_v54 = vld [vmem:[#allocation20 + $0x6c] ss:$40 sps:$4 sm:$0xff]  }
 0xc5f   :  { %v2742_v59 = vadd.f32 %v4220_v52, %v3957_v49  ;;  %v4640_v55 = vld [vmem:[#allocation20 + $0x60] ss:$40 sps:$4 sm:$0xff]   ;;  %v4648_v58 = vld [vmem:[#allocation20 + $0xb4] ss:$40 sps:$4 sm:$0xff]  }
 0xc60   :  { %v4643_v56 = vld [vmem:[#allocation20 + $0x68] ss:$40 sps:$4 sm:$0xff]  }
 0xc61   :  { %v2782_v60 = vadd.f32 %v4242_v53, %v2742_v59  ;;  %v4642_v53 = vld [vmem:[#allocation20 + $0x64] ss:$40 sps:$4 sm:$0xff]  }
 0xc62   :  { %v4651_v59 = vld [vmem:[#allocation20 + $0xbc] ss:$40 sps:$4 sm:$0xff]  }
 0xc63   :  { %v5610_v61 = vadd.f32 %v2782_v60, %v5593_v37  ;;  %v4606_v37 = vld [vmem:[#allocation20 + $0xf4] ss:$40 sps:$4 sm:$0xff]   ;;  %v4646_v60 = vld [vmem:[#allocation20 + $0xb0] ss:$40 sps:$4 sm:$0xff]  }
 0xc64   :  { %3362 = vmatprep.subr.bf16.mxu1 %v4606_v37  ;;  %v4669_v37 = vld [vmem:[#allocation20 + $0x1ac] ss:$40 sps:$4 sm:$0xff]  }
 0xc65   :  { %2792 = vadd.xlane.f32.xlu0 %v5610_v61  ;;  %v2794_v62 = vmul.f32 %v5610_v61, %v5610_v61  ;;  %3363 = vmatpush1.bf16.msra.mxu1 %v4604_v7  ;;  %v4667_v7 = vld [vmem:[#allocation20 + $0x1a8] ss:$40 sps:$4 sm:$0xff]  }
 0xc66   :  { %3364 = vmatprep.subr.bf16.mxu1 %v4612_v9  ;;  %v4675_v9 = vld [vmem:[#allocation20 + $0x1fc] ss:$40 sps:$4 sm:$0xff]  }
 0xc67   :  { %2795 = vadd.xlane.f32.xlu1 %v2794_v62  ;;  %v4654_v62 = vld [vmem:[#allocation20 + $0x104] ss:$40 sps:$4 sm:$0xff]  }
 0xc69   :  { %3365 = vmatpush1.bf16.msra.mxu1 %v4610_v13  ;;  %v4673_v13 = vld [vmem:[#allocation20 + $0x1f8] ss:$40 sps:$4 sm:$0xff]  }
 0xc6a   :  { %3366 = vmatprep.subr.bf16.mxu1 %v4618_v15  ;;  %v4681_v15 = vld [vmem:[#allocation20 + $0x24c] ss:$40 sps:$4 sm:$0xff]  }
 0xc6d   :  { %3367 = vmatpush1.bf16.msra.mxu1 %v4616_v17  ;;  %v4679_v17 = vld [vmem:[#allocation20 + $0x248] ss:$40 sps:$4 sm:$0xff]  }
 0xc6e   :  { %3368 = vmatprep.subr.bf16.mxu1 %v4624_v19  ;;  %v4682_v19 = vld [vmem:[#allocation20 + $0x20] ss:$40 sps:$4 sm:$0xff]  }
 0xc71   :  { %3369 = vmatpush1.bf16.msra.mxu1 %v4622_v39  ;;  %v4685_v39 = vld [vmem:[#allocation20 + $0x70] ss:$40 sps:$4 sm:$0xff]  }
 0xc72   :  { %3370 = vmatprep.subr.bf16.mxu1 %v4630_v22  ;;  %v4688_v22 = vld [vmem:[#allocation20 + $0xc0] ss:$40 sps:$4 sm:$0xff]  }
 0xc75   :  { %3371 = vmatpush1.bf16.msra.mxu1 %v4628_v23  ;;  %v4693_v23 = vld [vmem:[#allocation20 + $0x114] ss:$40 sps:$4 sm:$0xff]  }
 0xc76   :  { %3438 = vmatprep.subr.bf16.mxu1 %v4636_v26  ;;  %v4694_v26 = vld [vmem:[#allocation20 + $0x160] ss:$40 sps:$4 sm:$0xff]  }
 0xcf2   :  { %v2793_v28 = vpop.xlane.xlu0 %2792 }
 0xcf3   :  { %v2797_v29 = vmul.f32 0.0078125, %v2793_v28  ;;  %v4697_v28 = vld [vmem:[#allocation20 + $0x1b0] ss:$40 sps:$4 sm:$0xff]  }
 0xcf4   :  { %v2796_v30 = vpop.xlane.xlu1 %2795 }
 0xcf5   :  { %v2799_v31 = vmul.f32 %v2797_v29, %v2797_v29  ;;  %v2798_v32 = vmul.f32 0.0078125, %v2796_v30  ;;  %v2802_v38 = vsub.f32 %v5610_v61, %v2797_v29  ;;  %v4649_v61 = vld [vmem:[#allocation20 + $0xb8] ss:$40 sps:$4 sm:$0xff]   ;;  %v4702_v29 = vld [vmem:[#allocation20 + $0x204] ss:$40 sps:$4 sm:$0xff]  }
 0xcf6   :  { %v4705_v30 = vld [vmem:[#allocation20 + $0x254] ss:$40 sps:$4 sm:$0xff]  }
 0xcf7   :  { %v2800_v33 = vsub.f32 %v2798_v32, %v2799_v31  ;;  %v4703_v31 = vld [vmem:[#allocation20 + $0x250] ss:$40 sps:$4 sm:$0xff]  }
 0xcf8   :  { %v2901_v32 = vld [vmem:[%s5740_s22] sm:$0xff] }
 0xcf9   :  { %v2801_v34 = vmax.f32 %v2800_v33, 0.0  ;;  %v2909_v33 = vrot.slane %v2901_v32, %v5499_v42 }
 0xcfb   :  { %v2803_v36 = vadd.f32 1e-05, %v2801_v34  ;;  %v2917_v34 = vrot.slane %v2901_v32, %v5550_v10 }
 0xcfd   :  { %4716 = vrsqrt.f32 %v2803_v36  ;;  %v2913_v36 = vrot.slane %v2901_v32, %v5505_v44 }
 0xd07   :  { %v4717_v43 = vpop.eup %4716 }
 0xd08   :  { %v2805_v46 = vmul.f32 %v4717_v43, %v2802_v38  ;;  %v2921_v38 = vrot.slane %v2901_v32, %v5556_v12 }
 0xd0a   :  { %v2812_v48 = vmul.f32 %v3990_v45, %v2805_v46 }
 0xd0c   :  { %v2819_v49 = vadd.f32 %v3991_v47, %v2812_v48 }
 0xd0e   :  { %v5616_v52 = vpack.c.bf16 %v2819_v49, %v2819_v49  ;;  %2820 = vst [vmem:[#allocation25] sm:$0xff] %v2819_v49 }
 0xd10   :  { %3389 = vmatmul.mubr.bf16.vlgmr.msra.gmra.mrb[28].mxu1 %v5616_v52  ;;  %3430 = vmatmul.mubr.bf16.vlgmr.msra.gmra.mrb[32].mxu0 %v5616_v52 }
 0xd11   :  { %3439 = vmatpush1.bf16.msra.mxu1 %v4634_v50  ;;  %3480 = vmatpush1.bf16.msra.mxu0 %v4637_v51 }
 0xd12   :  { %3440 = vmatprep.subr.bf16.mxu1 %v4642_v53  ;;  %3481 = vmatprep.subr.bf16.mxu0 %v4645_v54 }
 0xd13   :  { %3470 = vmatprep.mubr.bf16.mxu1 %v5127_v57  ;;  %3511 = vmatprep.mubr.bf16.mxu0 %v5127_v57 }
 0xd15   :  { %3441 = vmatpush1.bf16.msra.mxu1 %v4640_v55  ;;  %3482 = vmatpush1.bf16.msra.mxu0 %v4643_v56 }
 0xd16   :  { %3442 = vmatprep.subr.bf16.mxu1 %v4648_v58  ;;  %3483 = vmatprep.subr.bf16.mxu0 %v4651_v59 }
 0xd19   :  { %3443 = vmatpush1.bf16.msra.mxu1 %v4646_v60  ;;  %3484 = vmatpush1.bf16.msra.mxu0 %v4649_v61  ;;  %v2924_v60 = vsub.s32 4, %v5496_v41  ;;  %v2932_v61 = vsub.s32 6, %v5496_v41 }
 0xd1a   :  { %3444 = vmatprep.subr.bf16.mxu1 %v4654_v62  ;;  %3485 = vmatprep.subr.bf16.mxu0 %v4657_v63  ;;  %v2928_v62 = vsub.s32 5, %v5496_v41  ;;  %v2936_v63 = vsub.s32 7, %v5496_v41 }
 0xd1d   :  { %3445 = vmatpush1.bf16.msra.mxu1 %v4652_v4  ;;  %3486 = vmatpush1.bf16.msra.mxu0 %v4655_v0  ;;  %v2925_v4 = vrot.slane %v2901_v32, %v2924_v60  ;;  %v2933_v0 = vrot.slane %v2901_v32, %v2932_v61 }
 0xd1e   :  { %3446 = vmatprep.subr.bf16.mxu1 %v4660_v35  ;;  %3487 = vmatprep.subr.bf16.mxu0 %v4663_v1  ;;  %v2929_v35 = vrot.slane %v2901_v32, %v2928_v62  ;;  %v2937_v1 = vrot.slane %v2901_v32, %v2936_v63 }
 0xd21   :  { %3447 = vmatpush1.bf16.msra.mxu1 %v4658_v2  ;;  %3488 = vmatpush1.bf16.msra.mxu0 %v4661_v3  ;;  %v3602_v2 = vld [vmem:[#allocation22] sm:$0x3f] }
 0xd22   :  { %3448 = vmatprep.subr.bf16.mxu1 %v4666_v5  ;;  %3489 = vmatprep.subr.bf16.mxu0 %v4669_v37 }
 0xd25   :  { %3449 = vmatpush1.bf16.msra.mxu1 %v4664_v6  ;;  %3490 = vmatpush1.bf16.msra.mxu0 %v4667_v7 }
 0xd26   :  { %3450 = vmatprep.subr.bf16.mxu1 %v4672_v8  ;;  %3491 = vmatprep.subr.bf16.mxu0 %v4675_v9  ;;  %v3607_v9 = vrot.slane %v3602_v2, %v5499_v42 }
 0xd29   :  { %3451 = vmatpush1.bf16.msra.mxu1 %v4670_v11  ;;  %3492 = vmatpush1.bf16.msra.mxu0 %v4673_v13 }
 0xd2a   :  { %3452 = vmatprep.subr.bf16.mxu1 %v4678_v14  ;;  %3493 = vmatprep.subr.bf16.mxu0 %v4681_v15 }
 0xd2d   :  { %3453 = vmatpush1.bf16.msra.mxu1 %v4676_v16  ;;  %3494 = vmatpush1.bf16.msra.mxu0 %v4679_v17  ;;  %v3611_v16 = vrot.slane %v3602_v2, %v5505_v44 }
 0xd2e   :  { %3520 = vmatprep.subr.bf16.mxu1 %v4684_v18 }
 0xd30   :  { %3471 = vmatmul.mubr.bf16.vlgmr.msra.gmra.mrb[32].mxu1 %v5616_v52  ;;  %3512 = vmatmul.mubr.bf16.vlgmr.msra.gmra.mrb[36].mxu0 %v5616_v52 }
 0xd31   :  { %3521 = vmatpush1.bf16.msra.mxu1 %v4682_v19  ;;  %3552 = vmatprep.mubr.bf16.mxu1 %v5127_v57  ;;  %v4700_v57 = vld [vmem:[#allocation20 + $0x200] ss:$40 sps:$4 sm:$0xff]  }
 0xd32   :  { %3522 = vmatprep.subr.bf16.mxu1 %v4687_v20 }
 0xd35   :  { %3523 = vmatpush1.bf16.msra.mxu1 %v4685_v39 }
 0xd36   :  { %3524 = vmatprep.subr.bf16.mxu1 %v4690_v21  ;;  %v3615_v21 = vrot.slane %v3602_v2, %v5550_v10 }
 0xd39   :  { %3525 = vmatpush1.bf16.msra.mxu1 %v4688_v22 }
 0xd3a   :  { %3526 = vmatprep.subr.bf16.mxu1 %v4693_v23 }
 0xd3d   :  { %3527 = vmatpush1.bf16.msra.mxu1 %v4691_v24  ;;  %v3619_v24 = vrot.slane %v3602_v2, %v5556_v12 }
 0xd3e   :  { %3528 = vmatprep.subr.bf16.mxu1 %v4696_v25 }
 0xd41   :  { %3529 = vmatpush1.bf16.msra.mxu1 %v4694_v26 }
 0xd42   :  { %3530 = vmatprep.subr.bf16.mxu1 %v4699_v27  ;;  %v2902_v27 = vld [vmem:[%s5740_s22 + $0x8] sm:$0x3]  ;;  %s5130_s22 = smov [#allocation25]  }
 0xd43   :  { %s3707_s27 = sshll.u32 %s5130_s22, 4  ;;  %s3708_s27 = int_to_ptr.vmem [resolvable:$true] %s3707_s27 }
 0xd44   :  { %s5040_s24 = scalar_lea.vmem %s3708_s27, 128  ;;  %p5045_p1 = scmp.lt.s32.totalorder %s3708_s27, %s3708_s27 }
 0xd45   :  { %3531 = vmatpush1.bf16.msra.mxu1 %v4697_v28  ;;  %v2941_v28 = vrot.slane %v2902_v27, %v5499_v42  ;;  %p5041_p0 = scmp.ne.s32.totalorder %s3708_s27, %s5040_s24  ;;  %p5046_p2 = scmp.lt.s32.totalorder %s5040_s24, %s5040_s24 }
 0xd46   :  { %3532 = vmatprep.subr.bf16.mxu1 %v4702_v29  ;;  %v2945_v29 = vrot.slane %v2902_v27, %v5505_v44 }
 0xd47   :  { %p5047_p3 = por %p5046_p2, %p5045_p1 }
 0xd49   :  { %3533 = vmatpush1.bf16.msra.mxu1 %v4700_v57  ;;  %p5048_p4 = pnand %p5047_p3, %p5041_p0 }
 0xd4a   :  { %3534 = vmatprep.subr.bf16.mxu1 %v4705_v30 }
 0xd4d   :  { %3535 = vmatpush1.bf16.msra.mxu1 %v4703_v31  ;;  %v3623_v31 = vrot.slane %v3602_v2, %v2924_v60 }
 0xd50   :  { %3553 = vmatmul.mubr.bf16.vlgmr.msra.gmra.mrb[36].mxu1 %v5616_v52 }
 0xde3   :  { %v3390_v43 = vpop.f32.mrb[28].mxu1  ;;  %v3431_v45 = vpop.f32.mrb[32].mxu0 }
 0xde4   :  { %v5633_v46 = vadd.f32 %v3390_v43, %v2909_v33  ;;  %v5635_v47 = vadd.f32 %v3431_v45, %v2917_v34  ;;  %v3392_v48 = vpop.f32.mrb[29].mxu1  ;;  %v3433_v49 = vpop.f32.mrb[33].mxu0  ;;  %v3627_v33 = vrot.slane %v3602_v2, %v2928_v62 }
 0xde5   :  { %v5637_v50 = vadd.f32 %v3392_v48, %v2913_v36  ;;  %v5639_v51 = vadd.f32 %v3433_v49, %v2921_v38  ;;  %v3394_v52 = vpop.f32.mrb[30].mxu1  ;;  %v3435_v53 = vpop.f32.mrb[34].mxu0 }
 0xde6   :  { %3561 = vst [vmem:[%s5744_s26] sm:$0xff] %v5633_v46  ;;  %3563 = vst [vmem:[%s5744_s26 + $0x10] sm:$0xff] %v5635_v47  ;;  %v3395_v54 = vpop.f32.mrb[31].mxu1  ;;  %v3436_v55 = vpop.f32.mrb[35].mxu0 }
 0xde7   :  { %3562 = vst [vmem:[%s5744_s26 + $0x8] sm:$0xff] %v5637_v50  ;;  %3564 = vst [vmem:[%s5744_s26 + $0x18] sm:$0xff] %v5639_v51  ;;  %v3565_v56 = vmax.f32 %v5633_v46, %v5637_v50  ;;  %v3566_v58 = vmax.f32 %v5635_v47, %v5639_v51 }
 0xde9   :  { %v3567_v59 = vmax.f32 %v3565_v56, %v3566_v58 }
 0xdeb   :  { %3568 = vmax.xlane.f32.xlu0 %v3567_v59 }
 0xe03   :  { %v3472_v3 = vpop.f32.mrb[32].mxu1  ;;  %v3513_v5 = vpop.f32.mrb[36].mxu0 }
 0xe04   :  { %v3473_v37 = vadd.f32 %v3472_v3, %v2925_v4  ;;  %v3514_v6 = vadd.f32 %v3513_v5, %v2933_v0  ;;  %v3474_v7 = vpop.f32.mrb[33].mxu1  ;;  %v3515_v8 = vpop.f32.mrb[37].mxu0 }
 0xe05   :  { %v3475_v11 = vadd.f32 %v3474_v7, %v2929_v35  ;;  %v3516_v13 = vadd.f32 %v3515_v8, %v2937_v1  ;;  %v3476_v14 = vpop.f32.mrb[34].mxu1  ;;  %v3517_v15 = vpop.f32.mrb[38].mxu0 }
 0xe06   :  { %v3596_v41 = vmax.f32 %v3473_v37, 0.0  ;;  %v3477_v17 = vpop.f32.mrb[35].mxu1  ;;  %v3518_v18 = vpop.f32.mrb[39].mxu0  ;;  %v3598_v20 = vmax.f32 %v3514_v6, 0.0 }
 0xe07   :  { %v3597_v19 = vmax.f32 %v3475_v11, 0.0  ;;  %v3599_v22 = vmax.f32 %v3516_v13, 0.0 }
 0xe08   :  { %v3634_v39 = vmul.f32 %v3607_v9, %v3596_v41  ;;  %v3636_v25 = vmul.f32 %v3615_v21, %v3598_v20 }
 0xe09   :  { %v3635_v23 = vmul.f32 %v3611_v16, %v3597_v19  ;;  %v3637_v26 = vmul.f32 %v3619_v24, %v3599_v22 }
 0xe0a   :  { %3642 = vadd.xlane.f32.xlu1 %v3634_v39 }
 0xe0b   :  { %3649 = vadd.xlane.f32.xlu0 %v3635_v23 }
 0xe0e   :  { %3656 = vadd.xlane.f32.xlu1 %v3636_v25 }
 0xe0f   :  { %3663 = vadd.xlane.f32.xlu0 %v3637_v26 }
 0xe23   :  { %v3554_v57 = vpop.f32.mrb[36].mxu1 }
 0xe24   :  { %v3555_v10 = vadd.f32 %v3554_v57, %v2941_v28  ;;  %v3556_v30 = vpop.f32.mrb[37].mxu1 }
 0xe25   :  { %v3557_v32 = vadd.f32 %v3556_v30, %v2945_v29  ;;  %v3558_v12 = vpop.f32.mrb[38].mxu1 }
 0xe26   :  { %v3600_v34 = vmax.f32 %v3555_v10, 0.0  ;;  %v3559_v36 = vpop.f32.mrb[39].mxu1 }
 0xe27   :  { %v3601_v38 = vmax.f32 %v3557_v32, 0.0 }
 0xe28   :  { %v3638_v43 = vmul.f32 %v3623_v31, %v3600_v34 }
 0xe29   :  { %v3639_v45 = vmul.f32 %v3627_v33, %v3601_v38 }
 0xe2a   :  { %3670 = vadd.xlane.f32.xlu1 %v3638_v43 }
 0xe2b   :  { %3677 = vadd.xlane.f32.xlu0 %v3639_v45 }
 0xe78   :  { %v3569_v48 = vpop.xlane.xlu0 %3568 }
 0xe79   :  { %v3570_v49 = vsub.f32 %v5633_v46, %v3569_v48  ;;  %v3571_v42 = vsub.f32 %v5637_v50, %v3569_v48  ;;  %v3572_v44 = vsub.f32 %v5635_v47, %v3569_v48  ;;  %v3573_v52 = vsub.f32 %v5639_v51, %v3569_v48 }
 0xe7b   :  { %v3574_v53 = vmul.f32 1.442695, %v3570_v49  ;;  %v3576_v54 = vmul.f32 1.442695, %v3571_v42  ;;  %v3578_v55 = vmul.f32 1.442695, %v3572_v44 }
 0xe7c   :  { %v3580_v56 = vmul.f32 1.442695, %v3573_v52 }
 0xe7d   :  { %4718 = vpow2.f32 %v3574_v53 }
 0xe7e   :  { %4720 = vpow2.f32 %v3576_v54 }
 0xe7f   :  { %4722 = vpow2.f32 %v3578_v55 }
 0xe80   :  { %4724 = vpow2.f32 %v3580_v56 }
 0xe87   :  { %v5678_v58 = vpop.eup %4718 }
 0xe88   :  { %v5680_v59 = vpop.eup %4720 }
 0xe89   :  { %v3582_v46 = vadd.f32 %v5680_v59, %v5678_v58  ;;  %v5684_v50 = vpop.eup %4722 }
 0xe8a   :  { %v4725_v51 = vpop.eup %4724 }
 0xe8b   :  { %v3583_v47 = vadd.f32 %v5684_v50, %v3582_v46 }
 0xe8d   :  { %v3584_v60 = vadd.f32 %v4725_v51, %v3583_v47 }
 0xe8f   :  { %3585 = vadd.xlane.f32.xlu1 %v3584_v60 }
 0xe90   :  { %5051 = shalt.err (!%p5048_p4)
}
 0xe91   :  { %s5794_s28 = sld [smem:[#allocation51_spill]] }
 0xe97   :  { %s5052_s30 = scalar_lea.hbm %s5794_s28, 128 }
 0xe98   :  { %p5053_p5 = scmp.ne.s32.totalorder %s5794_s28, %s5052_s30  ;;  %p5056_p6 = scmp.lt.u32.totalorder %s5052_s30, %s5794_s28 }
 0xe9a   :  { %p5058_p7 = pnand %p5056_p6, %p5053_p5 }
 0xe9c   :  { %5061 = shalt.err (!%p5058_p7)
}
 0xe9d   :  { %3710 = dma.vmem_to_hbm [thread:$0]  %s3708_s27, 128, %s5794_s28, [#allocation4]   ;;  %v3641_v61 = vand.u32 127, %v643_v40  ;;  %v3643_v62 = vpop.xlane.xlu1 %3642  ;;  %v3650_v63 = vpop.xlane.xlu0 %3649  ;;  %v4072_v13 = vld [vmem:[#allocation23] ss:$0 sm:$0xff] }
 0xe9e   :  { %s5795_s15 = sld [smem:[#allocation53_spill]]  ;;  %s5131_s16 = smov [#allocation26]  }
 0xe9f   :  { %vm3644_vm1 = vcmp.eq.s32.totalorder %v3641_v61, 0  ;;  %vm3651_vm2 = vcmp.eq.s32.totalorder %v3641_v61, 1  ;;  %vm3658_vm3 = vcmp.eq.s32.totalorder %v3641_v61, 2  ;;  %vm3665_vm4 = vcmp.eq.s32.totalorder %v3641_v61, 3  ;;  %s3719_s6 = sshll.u32 %s5131_s16, 4  ;;  %s3720_s6 = int_to_ptr.vmem [resolvable:$true] %s3719_s6 }
 0xea0   :  { %v3647_v4 = vsel %vm3644_vm1, %v3643_v62, 0.0  ;;  %v3654_v0 = vsel %vm3651_vm2, %v3650_v63, 0.0  ;;  %vm3672_vm5 = vcmp.eq.s32.totalorder %v3641_v61, 4  ;;  %vm3679_vm6 = vcmp.eq.s32.totalorder %v3641_v61, 5  ;;  %s5062_s2 = scalar_lea.vmem %s3720_s6, 512  ;;  %p5067_p9 = scmp.lt.s32.totalorder %s3720_s6, %s3720_s6 }
 0xea1   :  { %v3657_v35 = vpop.xlane.xlu1 %3656  ;;  %v3655_v1 = vadd.f32 %v3654_v0, %v3647_v4  ;;  %v3664_v3 = vpop.xlane.xlu0 %3663  ;;  %p5063_p8 = scmp.ne.s32.totalorder %s3720_s6, %s5062_s2  ;;  %p5068_p10 = scmp.lt.s32.totalorder %s5062_s2, %s5062_s2 }
 0xea2   :  { %v3661_v2 = vsel %vm3658_vm3, %v3657_v35, 0.0  ;;  %v3668_v37 = vsel %vm3665_vm4, %v3664_v3, 0.0 }
 0xea3   :  { %v3662_v5 = vadd.f32 %v3661_v2, %v3655_v1  ;;  %p5069_p11 = por %p5068_p10, %p5067_p9 }
 0xea5   :  { %v3669_v6 = vadd.f32 %v3668_v37, %v3662_v5  ;;  %p5070_p12 = pnand %p5069_p11, %p5063_p8 }
 0xeb7   :  { %v3671_v7 = vpop.xlane.xlu1 %3670 }
 0xeb8   :  { %v3675_v8 = vsel %vm3672_vm5, %v3671_v7, 0.0  ;;  %v3678_v40 = vpop.xlane.xlu0 %3677 }
 0xeb9   :  { %v3676_v9 = vadd.f32 %v3675_v8, %v3669_v6  ;;  %v3682_v11 = vsel %vm3679_vm6, %v3678_v40, 0.0 }
 0xebb   :  { %v3683_v14 = vadd.f32 %v3682_v11, %v3676_v9 }
 0xebd   :  { %v3691_v15 = vadd.f32 %v4072_v13, %v3683_v14 }
 0xebf   :  { %v4073_v16 = vmul.f32 -1.442695, %v3691_v15 }
 0xec1   :  { %4726 = vpow2.f32 %v4073_v16 }
 0xecb   :  { %v4727_v41 = vpop.eup %4726 }
 0xecc   :  { %v3695_v17 = vadd.f32 1.0, %v4727_v41 }
 0xece   :  { %4728 = vrcp.f32 %v3695_v17 }
 0xed8   :  { %v4729_v18 = vpop.eup %4728 }
 0xed9   :  { %v3698_v19 = vmax.f32 %v4729_v18, 0.01 }
 0xedb   :  { %v3699_v20 = vmin.f32 %v3698_v19, 0.99 }
 0xedd   :  { %3700 = vst [vmem:[%s5795_s15] sm:$0xff] %v3699_v20 }
 0xf1c   :  { %v3586_v39 = vpop.xlane.xlu1 %3585 }
 0xf1d   :  { %4730 = vrcp.f32 %v3586_v39 }
 0xf27   :  { %v4731_v21 = vpop.eup %4730 }
 0xf28   :  { %v3588_v22 = vmul.f32 %v4731_v21, %v5678_v58  ;;  %v3589_v23 = vmul.f32 %v4731_v21, %v5680_v59  ;;  %v3590_v24 = vmul.f32 %v4731_v21, %v5684_v50  ;;  %v3591_v25 = vmul.f32 %v4731_v21, %v4725_v51 }
 0xf2a   :  { %3592 = vst [vmem:[#allocation26] sm:$0xff] %v3588_v22  ;;  %3593 = vst [vmem:[#allocation26 + $0x8] sm:$0xff] %v3589_v23 }
 0xf2b   :  { %3594 = vst [vmem:[#allocation26 + $0x10] sm:$0xff] %v3590_v24  ;;  %3595 = vst [vmem:[#allocation26 + $0x18] sm:$0xff] %v3591_v25 }
 0xf2c   :  { %5073 = shalt.err (!%p5070_p12)
}
 0xf2d   :  { %s5796_s11 = sld [smem:[#allocation52_spill]] }
 0xf33   :  { %s5074_s5 = scalar_lea.hbm %s5796_s11, 512 }
 0xf34   :  { %p5075_p13 = scmp.ne.s32.totalorder %s5796_s11, %s5074_s5  ;;  %p5078_p0 = scmp.lt.u32.totalorder %s5074_s5, %s5796_s11 }
 0xf36   :  { %p5080_p1 = pnand %p5078_p0, %p5075_p13 }
 0xf38   :  { %5083 = shalt.err (!%p5080_p1)
}
 0xf39   :  { %3722 = dma.vmem_to_hbm [thread:$0]  %s3720_s6, 512, %s5796_s11, [#allocation27]  }
 0xf3a   :  { %5100 = dma.done.wait [#allocation4], 128  }
 0xf3b   :  { %5101 = vsyncadd [#allocation4], 4294967168 }
 0xf3c   :  { %5102 = dma.done.wait [#allocation27], 512  }
 0xf3d   :  { %5103 = vsyncadd [#allocation27], 4294966784 }
 0xf3e   :  { %3735 = vsyncpa [#allocation3], 1 }
 0xf3f   :  { %3736 = vsyncpa [#allocation6], 1 }
 0xf40   :  { %3737 = vsyncpa [#allocation9], 1 }
 0xf41   :  { %3738 = vsyncpa [#allocation12], 1 }
 0xf42   :  { %3739 = vsyncpa [#allocation15], 1 }
 0xf43   :  { %3740 = vsyncpa [#allocation18], 1 }
 0xf44   :  { %3741 = vsyncpa [#allocation21], 1 }
 0xf45   :  { %3742 = vsyncpa [#allocation24], 1 }
 0xf46   :  { %3743 = vsyncpa [#allocation4], 1 }
 0xf47   :  { %3744 = vsyncpa [#allocation27], 1 }

</bundles_post_ra>
